<compile_context>
chip_gen: v5e
topology: v5e:2x2
jax: 0.10.0
libtpu: 0.0.40
codegen_flags: <defaults>
</compile_context>

<pallas_src>
import functools

import jax
import jax.numpy as jnp
from jax.experimental import pallas as pl
from jax.experimental.pallas import tpu as pltpu


# ------------------------------ helpers ---------------------------------------

def _round_up(x, m):
    return ((x + m - 1) // m) * m


def _pick_tile(dim, quantum, max_t):
    """Largest multiple of `quantum` that divides `dim` and is <= max_t."""
    assert dim % quantum == 0, (dim, quantum)
    best = quantum
    t = quantum
    limit = min(dim, max_t)
    while t <= limit:
        if dim % t == 0:
            best = t
        t += quantum
    return best


_TILE_CAPS = None


def _tile_caps():
    """(tm_max, tn_max, tk_max) derived once from this chip's VMEM capacity."""
    global _TILE_CAPS
    if _TILE_CAPS is None:
        try:
            info = pltpu.get_tpu_info()
            vmem = int(getattr(info, "vmem_capacity_bytes", 64 << 20))
        except Exception:  # interpret mode / older jax: fall back to safe caps
            vmem = 64 << 20
        if vmem >= (100 << 20):      # v5e / v6e: 128 MiB VMEM -> bigger tiles
            _TILE_CAPS = (512, 1024, 1024)
        else:                        # v7x: 64 MiB VMEM -> conservative tiles
            _TILE_CAPS = (256, 512, 1024)
    return _TILE_CAPS


# ------------------------------ linear (+ optional fused LN) -------------------

def _linear_kernel(*refs, activation, fuse_ln, eps, n_k):
    if fuse_ln:
        x_ref, g_ref, bln_ref, w_ref, b_ref, o_ref = refs[:6]
        acc_ref = refs[6] if len(refs) > 6 else None
    else:
        x_ref, w_ref, b_ref, o_ref = refs[:4]
        acc_ref = refs[4] if len(refs) > 4 else None

    if fuse_ln:
        # LayerNorm prologue in f32 on the full-K activation tile.
        # NOTE: zero-padded rows (Mp > M) go through LN with var=0 -> rsqrt(eps);
        # values are finite and sliced off by the wrapper — intentional, not a bug.
        x = x_ref[...].astype(jnp.float32)
        mu = jnp.mean(x, axis=-1, keepdims=True)
        var = jnp.mean(jnp.square(x - mu), axis=-1, keepdims=True)
        x = (x - mu) * jax.lax.rsqrt(var + eps) * g_ref[...] + bln_ref[...]
        x = x.astype(jnp.bfloat16)
    else:
        x = x_ref[...]
        if x.dtype != jnp.bfloat16:
            x = x.astype(jnp.bfloat16)

    part = jnp.dot(x, w_ref[...], preferred_element_type=jnp.float32)

    def epilogue(y):
        y = y + b_ref[...]
        if activation == "gelu":
            c = 0.7978845608028654          # sqrt(2/pi); GPT-2 "gelu_new" (tanh approx)
            y = 0.5 * y * (1.0 + jnp.tanh(c * (y + 0.044715 * y * y * y)))
        return y.astype(o_ref.dtype)

    if n_k == 1:
        # Single K block: skip the f32 accumulator round trip entirely.
        o_ref[...] = epilogue(part)
    else:
        k = pl.program_id(2)

        @pl.when(k == 0)
        def _init():
            acc_ref[...] = jnp.zeros_like(acc_ref)

        acc_ref[...] += part

        @pl.when(k == n_k - 1)
        def _finalize():
            o_ref[...] = epilogue(acc_ref[...])


def linear(x, w, b, *, activation=None, ln=None, eps=1e-5,
           out_dtype=jnp.float32, n_valid=None):
    """y = LN?(x) @ w + b (+ gelu).

    x:  (M, K) f32 or bf16 activations.
    w:  (K, Np) bf16, pre-padded at init so Np % 128 == 0.
    b:  (1, Np) f32, pre-reshaped at init.
    ln: optional (gamma, beta), each (1, K) f32.
    """
    M, K = x.shape
    Kw, Np = w.shape
    assert K == Kw

    tm_max, tn_max, tk_max = _tile_caps()

    Mp = _round_up(M, 8)
    if Mp != M:
        x = jnp.pad(x, ((0, Mp - M), (0, 0)))

    tm = _pick_tile(Mp, 8, tm_max)
    tn = _pick_tile(Np, 128, tn_max)
    if ln is not None or (K % 128 != 0):
        tk = K                      # fused LN needs the full feature dim per block
    else:
        tk = _pick_tile(K, 128, tk_max)
    n_k = K // tk
    grid = (Mp // tm, Np // tn, n_k)

    in_specs = [pl.BlockSpec((tm, tk), lambda i, j, k: (i, k))]
    inputs = [x]
    if ln is not None:
        gamma, beta = ln
        in_specs += [pl.BlockSpec((1, K), lambda i, j, k: (0, 0)),
                     pl.BlockSpec((1, K), lambda i, j, k: (0, 0))]
        inputs += [gamma, beta]
    in_specs += [pl.BlockSpec((tk, tn), lambda i, j, k: (k, j)),
                 pl.BlockSpec((1, tn), lambda i, j, k: (0, j))]
    inputs += [w, b]

    scratch = [] if n_k == 1 else [pltpu.VMEM((tm, tn), jnp.float32)]

    x_b = x.dtype.itemsize
    o_b = jnp.dtype(out_dtype).itemsize
    vmem = (2 * (tm * tk * x_b + tk * tn * 2 + tn * 4)      # double-buffered inputs
            + 2 * tm * tn * o_b                             # double-buffered output
            + (tm * tn * 4 if n_k > 1 else 0)               # f32 accumulator
            + (4 * K * 4 if ln is not None else 0))
    vmem_limit = int(min(96 << 20, max(32 << 20, 2 * vmem)))

    bytes_accessed = (Mp * K * x_b * (Np // tn)              # LHS re-read per j tile
                      + K * Np * 2 * (Mp // tm)              # weight re-read per i tile
                      + Mp * Np * o_b + Np * 4)

    out = pl.pallas_call(
        functools.partial(_linear_kernel, activation=activation,
                          fuse_ln=ln is not None, eps=eps, n_k=n_k),
        out_shape=jax.ShapeDtypeStruct((Mp, Np), out_dtype),
        grid=grid,
        in_specs=in_specs,
        out_specs=pl.BlockSpec((tm, tn), lambda i, j, k: (i, j)),
        scratch_shapes=scratch,
        compiler_params=pltpu.CompilerParams(
            dimension_semantics=("parallel", "parallel", "arbitrary"),
            vmem_limit_bytes=vmem_limit),
        cost_estimate=pl.CostEstimate(
            flops=2 * Mp * Np * K,
            transcendentals=Mp * Np if activation == "gelu" else 0,
            bytes_accessed=int(bytes_accessed)),
    )(*inputs)

    n_out = Np if n_valid is None else n_valid
    if Mp != M or n_out != Np:
        out = out[:M, :n_out]
    return out


# ------------------------------ standalone LayerNorm ---------------------------

def _ln_kernel(x_ref, g_ref, b_ref, o_ref, *, eps):
    x = x_ref[...].astype(jnp.float32)
    mu = jnp.mean(x, axis=-1, keepdims=True)
    var = jnp.mean(jnp.square(x - mu), axis=-1, keepdims=True)
    y = (x - mu) * jax.lax.rsqrt(var + eps) * g_ref[...] + b_ref[...]
    o_ref[...] = y.astype(o_ref.dtype)


def layernorm(x, gamma, beta, *, eps=1e-5, out_dtype=jnp.bfloat16):
    """Final LN run once into a bf16 buffer (so the LM head streams a bf16 LHS)."""
    M, K = x.shape
    Mp = _round_up(M, 8)
    if Mp != M:
        x = jnp.pad(x, ((0, Mp - M), (0, 0)))
    tm = _pick_tile(Mp, 8, 512)
    out = pl.pallas_call(
        functools.partial(_ln_kernel, eps=eps),
        out_shape=jax.ShapeDtypeStruct((Mp, K), out_dtype),
        grid=(Mp // tm,),
        in_specs=[pl.BlockSpec((tm, K), lambda i: (i, 0)),
                  pl.BlockSpec((1, K), lambda i: (0, 0)),
                  pl.BlockSpec((1, K), lambda i: (0, 0))],
        out_specs=pl.BlockSpec((tm, K), lambda i: (i, 0)),
        compiler_params=pltpu.CompilerParams(dimension_semantics=("parallel",)),
    )(x, gamma, beta)
    return out[:M] if Mp != M else out


# ------------------------------ flash-style causal attention -------------------

def _flash_attn_kernel(q_ref, k_ref, v_ref, o_ref, m_sc, l_sc, acc_sc, *,
                       scale, n_head, d_head, tq, tkv, n_kv):
    qi = pl.program_id(1)
    kvi = pl.program_id(2)

    @pl.when(kvi == 0)
    def _init():
        m_sc[...] = jnp.full_like(m_sc, -1e30)
        l_sc[...] = jnp.zeros_like(l_sc)
        acc_sc[...] = jnp.zeros_like(acc_sc)

    q_end = qi * tq + (tq - 1)
    kv_start = kvi * tkv

    # Skip kv blocks entirely above the causal diagonal (no MXU/VPU work).
    @pl.when(kv_start <= q_end)
    def _compute():
        q = (q_ref[0].astype(jnp.float32) * scale).astype(jnp.bfloat16)   # (tq, D)
        k = k_ref[0]                                                       # (tkv, D) bf16
        v = v_ref[0]                                                       # (tkv, D) bf16
        row = qi * tq + jax.lax.broadcasted_iota(jnp.int32, (tq, tkv), 0)
        col = kv_start + jax.lax.broadcasted_iota(jnp.int32, (tq, tkv), 1)
        causal = col <= row
        for h in range(n_head):                      # static unroll over heads
            hs = h * d_head
            s = jnp.einsum("qd,kd->qk", q[:, hs:hs + d_head], k[:, hs:hs + d_head],
                           preferred_element_type=jnp.float32)             # (tq, tkv)
            s = jnp.where(causal, s, -1e30)
            m_prev = m_sc[h]                         # (tq, 1)
            m_new = jnp.maximum(m_prev, jnp.max(s, axis=-1, keepdims=True))
            alpha = jnp.exp(m_prev - m_new)
            p = jnp.exp(s - m_new)
            l_sc[h] = alpha * l_sc[h] + jnp.sum(p, axis=-1, keepdims=True)
            m_sc[h] = m_new
            acc_sc[:, hs:hs + d_head] = (
                alpha * acc_sc[:, hs:hs + d_head]
                + jnp.dot(p.astype(jnp.bfloat16), v[:, hs:hs + d_head],
                          preferred_element_type=jnp.float32))

    @pl.when(kvi == n_kv - 1)
    def _finalize():
        # Exact divide (once per output) keeps softmax parity with PyTorch.
        outs = [acc_sc[:, h * d_head:(h + 1) * d_head] / l_sc[h]
                for h in range(n_head)]
        o_ref[0] = jnp.concatenate(outs, axis=-1).astype(o_ref.dtype)  # lane-dense (tq, D)


def causal_attention(qkv, *, n_head, tq_max=128, tkv_max=256):
    """Multi-head causal flash attention over a fused (B, T, 3D) bf16 qkv tensor.

    All heads are processed per grid step, so the output is a lane-dense (tq, D)
    block and no head split/merge transposes are needed outside the kernel.
    Returns (B, T, D) in qkv.dtype.
    """
    B, T, threeD = qkv.shape
    D = threeD // 3
    d_head = D // n_head
    scale = 1.0 / (d_head ** 0.5)
    assert T % 8 == 0 and D % 128 == 0

    quantum = 128 if T % 128 == 0 else 8
    tq = _pick_tile(T, quantum, tq_max)
    tkv = _pick_tile(T, quantum, tkv_max)
    n_kv = T // tkv

    q_spec = pl.BlockSpec((1, tq, D), lambda b, qi, kvi: (b, qi, 0))
    k_spec = pl.BlockSpec((1, tkv, D), lambda b, qi, kvi: (b, kvi, 1))
    v_spec = pl.BlockSpec((1, tkv, D), lambda b, qi, kvi: (b, kvi, 2))
    o_spec = pl.BlockSpec((1, tq, D), lambda b, qi, kvi: (b, qi, 0))

    vmem = (2 * (tq * D * 2 + 2 * tkv * D * 2 + tq * D * 2)   # double-buffered q/k/v/out
            + tq * D * 4 + 4 * n_head * tq * 4)               # f32 acc + m/l stats
    vmem_limit = int(min(96 << 20, max(32 << 20, 2 * vmem)))

    return pl.pallas_call(
        functools.partial(_flash_attn_kernel, scale=scale, n_head=n_head,
                          d_head=d_head, tq=tq, tkv=tkv, n_kv=n_kv),
        out_shape=jax.ShapeDtypeStruct((B, T, D), qkv.dtype),
        grid=(B, T // tq, n_kv),
        in_specs=[q_spec, k_spec, v_spec],
        out_specs=o_spec,
        scratch_shapes=[pltpu.VMEM((n_head, tq, 1), jnp.float32),
                        pltpu.VMEM((n_head, tq, 1), jnp.float32),
                        pltpu.VMEM((tq, D), jnp.float32)],
        compiler_params=pltpu.CompilerParams(
            dimension_semantics=("parallel", "parallel", "arbitrary"),
            vmem_limit_bytes=vmem_limit),
        cost_estimate=pl.CostEstimate(
            flops=2 * B * T * T * D,                 # ~ causal-halved QK^T + PV
            transcendentals=B * n_head * T * T // 2,
            bytes_accessed=B * T * 4 * D * 2),
    )(qkv, qkv, qkv)


# ------------------------------ model glue -------------------------------------

@functools.partial(jax.jit, static_argnames=("n_head", "vocab_size"))
def gpt2_lm_forward(params, input_ids, *, n_head, vocab_size):
    """GPT2Model(input_ids).last_hidden_state -> Linear(n_embd, vocab) logits."""
    B, T = input_ids.shape
    D = params["wte"].shape[1]

    # embeddings (gather stays in JAX); residual stream kept in f32.
    h = jnp.take(params["wte"], input_ids, axis=0) + params["wpe"][:T][None, :, :]
    h = h.astype(jnp.float32)

    Tp = _round_up(T, 8)

    for layer in params["layers"]:
        # --- attention block (LN1 fused into the QKV projection, bf16 output) ---
        x2 = h.reshape(B * T, D)
        qkv = linear(x2, layer["attn_w"], layer["attn_b"],
                     ln=(layer["ln1_g"], layer["ln1_b"]),
                     out_dtype=jnp.bfloat16)                     # (B*T, 3D) bf16
        qkv = qkv.reshape(B, T, 3 * D)
        if Tp != T:
            qkv = jnp.pad(qkv, ((0, 0), (0, Tp - T), (0, 0)))
        attn = causal_attention(qkv, n_head=n_head)              # (B, Tp, D) bf16
        if Tp != T:
            attn = attn[:, :T]
        proj = linear(attn.reshape(B * T, D), layer["proj_w"], layer["proj_b"],
                      out_dtype=jnp.float32)
        h = h + proj.reshape(B, T, D)

        # --- MLP block (LN2 fused into fc; fc output stays bf16) ---
        x2 = h.reshape(B * T, D)
        fc = linear(x2, layer["fc_w"], layer["fc_b"],
                    ln=(layer["ln2_g"], layer["ln2_b"]),
                    activation="gelu", out_dtype=jnp.bfloat16)   # (B*T, 4D) bf16
        mlp = linear(fc, layer["mproj_w"], layer["mproj_b"], out_dtype=jnp.float32)
        h = h + mlp.reshape(B, T, D)

    # final LN once into bf16, then the unfused LM head streams a bf16 LHS.
    xn = layernorm(h.reshape(B * T, D), params["lnf_g"], params["lnf_b"])
    logits = linear(xn, params["head_w"], params["head_b"],
                    out_dtype=jnp.float32, n_valid=vocab_size)   # (B*T, V)
    return logits.reshape(B, T, vocab_size)


def init_params(key, *, n_layer, n_embd, n_head, vocab_size, max_pos):
    """Matmul weights stored bf16 and pre-padded (N -> multiple of 128); biases
    pre-reshaped to (1, Np) f32; LN params pre-reshaped to (1, D) f32.  No
    per-forward padding / reshaping of weights remains inside the jitted graph."""
    assert n_embd % 128 == 0 and n_embd % n_head == 0
    keys = iter(jax.random.split(key, 4 + 4 * n_layer))
    s = 0.02

    def rnd(shape):
        return (s * jax.random.normal(next(keys), shape)).astype(jnp.float32)

    def weight(k_dim, n_dim):
        w = rnd((k_dim, n_dim))
        npad = _round_up(n_dim, 128) - n_dim
        if npad:
            w = jnp.pad(w, ((0, 0), (0, npad)))
        return w.astype(jnp.bfloat16)

    def bias(n_dim):
        return jnp.zeros((1, _round_up(n_dim, 128)), jnp.float32)

    def ln_param(val):
        return jnp.full((1, n_embd), val, jnp.float32)

    params = {
        "wte": rnd((vocab_size, n_embd)),
        "wpe": rnd((max_pos, n_embd)),
        "lnf_g": ln_param(1.0),
        "lnf_b": ln_param(0.0),
        "head_w": weight(n_embd, vocab_size),
        "head_b": bias(vocab_size),
        "layers": [],
    }
    for _ in range(n_layer):
        params["layers"].append({
            "ln1_g": ln_param(1.0),
            "ln1_b": ln_param(0.0),
            "attn_w": weight(n_embd, 3 * n_embd),
            "attn_b": bias(3 * n_embd),
            "proj_w": weight(n_embd, n_embd),
            "proj_b": bias(n_embd),
            "ln2_g": ln_param(1.0),
            "ln2_b": ln_param(0.0),
            "fc_w": weight(n_embd, 4 * n_embd),
            "fc_b": bias(4 * n_embd),
            "mproj_w": weight(4 * n_embd, n_embd),
            "mproj_b": bias(n_embd),
        })
    return params


if __name__ == "__main__":
    # Small, module-consistent shapes: 2 layers, 8 heads (like the reference config),
    # scaled-down hidden / vocab / seq.
    B, T = 2, 8
    n_embd, n_head, n_layer = 128, 8, 2
    vocab_size = 256
    max_pos = 32

    key = jax.random.PRNGKey(0)
    pkey, ikey = jax.random.split(key)
    params = init_params(pkey, n_layer=n_layer, n_embd=n_embd, n_head=n_head,
                         vocab_size=vocab_size, max_pos=max_pos)
    input_ids = jax.random.randint(ikey, (B, T), 0, vocab_size, dtype=jnp.int32)

    logits = gpt2_lm_forward(params, input_ids, n_head=n_head, vocab_size=vocab_size)
    logits = jax.block_until_ready(logits)
    assert logits.shape == (B, T, vocab_size)
    assert logits.dtype == jnp.float32
    print("KERNEL_OK")
</pallas_src>

<mosaic_0001>
module attributes {stable_mosaic.version = 11 : i64} {
  func.func @_flash_attn_kernel(%arg0: i32, %arg1: i32, %arg2: i32, %arg3: memref<1x8x128xbf16, #tpu.memory_space<vmem>>, %arg4: memref<1x8x128xbf16, #tpu.memory_space<vmem>>, %arg5: memref<1x8x128xbf16, #tpu.memory_space<vmem>>, %arg6: memref<1x8x128xbf16, #tpu.memory_space<vmem>>, %arg7: memref<8x8x1xf32, #tpu.memory_space<vmem>>, %arg8: memref<8x8x1xf32, #tpu.memory_space<vmem>>, %arg9: memref<8x128xf32, #tpu.memory_space<vmem>>) attributes {dimension_semantics = [#tpu.dimension_semantics<parallel>, #tpu.dimension_semantics<parallel>, #tpu.dimension_semantics<arbitrary>], iteration_bounds = array<i64: 2, 1, 1>, scalar_prefetch = 0 : i64, scratch_operands = 3 : i64, tpu.core_type = #tpu.core_type<tc>, window_params = [{transform_indices = @transform_0, window_bounds = array<i64: 1, 8, 128>}, {transform_indices = @transform_1, window_bounds = array<i64: 1, 8, 128>}, {transform_indices = @transform_2, window_bounds = array<i64: 1, 8, 128>}, {transform_indices = @transform_3, window_bounds = array<i64: 1, 8, 128>}]} {
    %c0_i32 = arith.constant 0 : i32
    %0 = arith.cmpi eq, %arg2, %c0_i32 : i32
    %1 = arith.extui %0 : i1 to i32
    %c0_i32_0 = arith.constant 0 : i32
    %2 = arith.cmpi ne, %1, %c0_i32_0 : i32
    scf.if %2 {
      %cst = arith.constant -1.000000e+30 : f32
      %12 = vector.broadcast %cst : f32 to vector<8x8x1xf32>
      %c0 = arith.constant 0 : index
      %c0_5 = arith.constant 0 : index
      %c0_6 = arith.constant 0 : index
      %13 = vector.load %arg7[%c0, %c0_5, %c0_6] : memref<8x8x1xf32, #tpu.memory_space<vmem>>, vector<8x8x1xf32>
      tpu.vector_store %arg7[%c0, %c0_5, %c0_6], %12 {strides = array<i32>} : memref<8x8x1xf32, #tpu.memory_space<vmem>>, vector<8x8x1xf32>,
      %cst_7 = arith.constant 0.000000e+00 : f32
      %14 = vector.broadcast %cst_7 : f32 to vector<8x8x1xf32>
      %c0_8 = arith.constant 0 : index
      %c0_9 = arith.constant 0 : index
      %c0_10 = arith.constant 0 : index
      %15 = vector.load %arg8[%c0_8, %c0_9, %c0_10] : memref<8x8x1xf32, #tpu.memory_space<vmem>>, vector<8x8x1xf32>
      tpu.vector_store %arg8[%c0_8, %c0_9, %c0_10], %14 {strides = array<i32>} : memref<8x8x1xf32, #tpu.memory_space<vmem>>, vector<8x8x1xf32>,
      %cst_11 = arith.constant 0.000000e+00 : f32
      %16 = vector.broadcast %cst_11 : f32 to vector<8x128xf32>
      %c0_12 = arith.constant 0 : index
      %c0_13 = arith.constant 0 : index
      %17 = vector.load %arg9[%c0_12, %c0_13] : memref<8x128xf32, #tpu.memory_space<vmem>>, vector<8x128xf32>
      tpu.vector_store %arg9[%c0_12, %c0_13], %16 {strides = array<i32>} : memref<8x128xf32, #tpu.memory_space<vmem>>, vector<8x128xf32>,
    } else {
    }
    %c8_i32 = arith.constant 8 : i32
    %3 = arith.muli %arg1, %c8_i32 : i32
    %c7_i32 = arith.constant 7 : i32
    %4 = arith.addi %3, %c7_i32 : i32
    %c8_i32_1 = arith.constant 8 : i32
    %5 = arith.muli %arg2, %c8_i32_1 : i32
    %6 = arith.cmpi sle, %5, %4 : i32
    %7 = arith.extui %6 : i1 to i32
    %c0_i32_2 = arith.constant 0 : i32
    %8 = arith.cmpi ne, %7, %c0_i32_2 : i32
    scf.if %8 {
      %c0 = arith.constant 0 : index
      %c0_5 = arith.constant 0 : index
      %c0_6 = arith.constant 0 : index
      %12 = vector.load %arg3[%c0, %c0_5, %c0_6] : memref<1x8x128xbf16, #tpu.memory_space<vmem>>, vector<1x8x128xbf16>
      %13 = vector.shape_cast %12 : vector<1x8x128xbf16> to vector<8x128xbf16>
      %14 = arith.extf %13 : vector<8x128xbf16> to vector<8x128xf32>
      %cst = arith.constant 2.500000e-01 : f32
      %15 = vector.broadcast %cst : f32 to vector<8x128xf32>
      %16 = arith.mulf %14, %15 : vector<8x128xf32>
      %17 = arith.truncf %16 : vector<8x128xf32> to vector<8x128xbf16>
      %c0_7 = arith.constant 0 : index
      %c0_8 = arith.constant 0 : index
      %c0_9 = arith.constant 0 : index
      %18 = vector.load %arg4[%c0_7, %c0_8, %c0_9] : memref<1x8x128xbf16, #tpu.memory_space<vmem>>, vector<1x8x128xbf16>
      %19 = vector.shape_cast %18 : vector<1x8x128xbf16> to vector<8x128xbf16>
      %c0_10 = arith.constant 0 : index
      %c0_11 = arith.constant 0 : index
      %c0_12 = arith.constant 0 : index
      %20 = vector.load %arg5[%c0_10, %c0_11, %c0_12] : memref<1x8x128xbf16, #tpu.memory_space<vmem>>, vector<1x8x128xbf16>
      %21 = vector.shape_cast %20 : vector<1x8x128xbf16> to vector<8x128xbf16>
      %c8_i32_13 = arith.constant 8 : i32
      %22 = arith.muli %arg1, %c8_i32_13 : i32
      %23 = tpu.iota {dimensions = array<i32: 0>} : vector<8x8xi32>
      %24 = vector.broadcast %22 : i32 to vector<8x8xi32>
      %25 = arith.addi %24, %23 : vector<8x8xi32>
      %26 = tpu.iota {dimensions = array<i32: 1>} : vector<8x8xi32>
      %27 = vector.broadcast %5 : i32 to vector<8x8xi32>
      %28 = arith.addi %27, %26 : vector<8x8xi32>
      %29 = arith.cmpi sle, %28, %25 : vector<8x8xi32>
      %30 = vector.extract_strided_slice %17 {offsets = [0, 0], sizes = [8, 16], strides = [1, 1]} : vector<8x128xbf16> to vector<8x16xbf16>
      %31 = vector.extract_strided_slice %19 {offsets = [0, 0], sizes = [8, 16], strides = [1, 1]} : vector<8x128xbf16> to vector<8x16xbf16>
      "tpu.trace_start"() <{level = 10 : i32, message = "qd,kd->qk"}> : () -> ()
      %cst_14 = arith.constant dense<0.000000e+00> : vector<8x8xf32>
      %32 = tpu.matmul %30, %31, %cst_14 {dimension_numbers = #tpu.dot_dimension_numbers<[1], [1], [0], [0], [0, 0, 1, 0], [], []>} : vector<8x16xbf16>, vector<8x16xbf16>, vector<8x8xf32> -> vector<8x8xf32>
      %cst_15 = arith.constant -1.000000e+30 : f32
      "tpu.trace_stop"() : () -> ()
      %33 = vector.broadcast %cst_15 : f32 to vector<8x8xf32>
      %34 = arith.select %29, %32, %33 : vector<8x8xi1>, vector<8x8xf32>
      %c0_16 = arith.constant 0 : index
      %c0_17 = arith.constant 0 : index
      %c0_18 = arith.constant 0 : index
      %35 = vector.load %arg7[%c0_16, %c0_17, %c0_18] : memref<8x8x1xf32, #tpu.memory_space<vmem>>, vector<1x8x1xf32>
      %36 = vector.shape_cast %35 : vector<1x8x1xf32> to vector<8x1xf32>
      %cst_19 = arith.constant dense<0xFF800000> : vector<8xf32>
      %37 = vector.multi_reduction <maximumf>, %34, %cst_19 [1] : vector<8x8xf32> to vector<8xf32>
      %38 = vector.shape_cast %37 : vector<8xf32> to vector<8x1xf32>
      %39 = arith.maximumf %36, %38 : vector<8x1xf32>
      %40 = arith.subf %36, %39 : vector<8x1xf32>
      %41 = math.exp %40 : vector<8x1xf32>
      %42 = vector.broadcast %39 : vector<8x1xf32> to vector<8x8xf32>
      %43 = arith.subf %34, %42 : vector<8x8xf32>
      %44 = math.exp %43 : vector<8x8xf32>
      %c0_20 = arith.constant 0 : index
      %c0_21 = arith.constant 0 : index
      %c0_22 = arith.constant 0 : index
      %45 = vector.load %arg8[%c0_20, %c0_21, %c0_22] : memref<8x8x1xf32, #tpu.memory_space<vmem>>, vector<1x8x1xf32>
      %46 = vector.shape_cast %45 : vector<1x8x1xf32> to vector<8x1xf32>
      %47 = arith.mulf %41, %46 : vector<8x1xf32>
      %cst_23 = arith.constant dense<0.000000e+00> : vector<8xf32>
      %48 = vector.multi_reduction <add>, %44, %cst_23 [1] : vector<8x8xf32> to vector<8xf32>
      %49 = vector.shape_cast %48 : vector<8xf32> to vector<8x1xf32>
      %50 = arith.addf %47, %49 : vector<8x1xf32>
      %c0_24 = arith.constant 0 : index
      %c0_25 = arith.constant 0 : index
      %c0_26 = arith.constant 0 : index
      %51 = vector.load %arg8[%c0_24, %c0_25, %c0_26] : memref<8x8x1xf32, #tpu.memory_space<vmem>>, vector<1x8x1xf32>
      %52 = vector.shape_cast %51 : vector<1x8x1xf32> to vector<8x1xf32>
      %53 = vector.shape_cast %50 : vector<8x1xf32> to vector<1x8x1xf32>
      tpu.vector_store %arg8[%c0_24, %c0_25, %c0_26], %53 {strides = array<i32>} : memref<8x8x1xf32, #tpu.memory_space<vmem>>, vector<1x8x1xf32>,
      %c0_27 = arith.constant 0 : index
      %c0_28 = arith.constant 0 : index
      %c0_29 = arith.constant 0 : index
      %54 = vector.load %arg7[%c0_27, %c0_28, %c0_29] : memref<8x8x1xf32, #tpu.memory_space<vmem>>, vector<1x8x1xf32>
      %55 = vector.shape_cast %54 : vector<1x8x1xf32> to vector<8x1xf32>
      %56 = vector.shape_cast %39 : vector<8x1xf32> to vector<1x8x1xf32>
      tpu.vector_store %arg7[%c0_27, %c0_28, %c0_29], %56 {strides = array<i32>} : memref<8x8x1xf32, #tpu.memory_space<vmem>>, vector<1x8x1xf32>,
      %c0_30 = arith.constant 0 : index
      %c0_31 = arith.constant 0 : index
      %57 = vector.load %arg9[%c0_30, %c0_31] : memref<8x128xf32, #tpu.memory_space<vmem>>, vector<8x16xf32>
      %58 = vector.broadcast %41 : vector<8x1xf32> to vector<8x16xf32>
      %59 = arith.mulf %58, %57 : vector<8x16xf32>
      %60 = arith.truncf %44 : vector<8x8xf32> to vector<8x8xbf16>
      %61 = vector.extract_strided_slice %21 {offsets = [0, 0], sizes = [8, 16], strides = [1, 1]} : vector<8x128xbf16> to vector<8x16xbf16>
      %cst_32 = arith.constant dense<0.000000e+00> : vector<8x16xf32>
      %62 = tpu.matmul %60, %61, %cst_32 {dimension_numbers = #tpu.dot_dimension_numbers<[1], [0], [0], [1], [0, 0, 1, 1], [], []>} : vector<8x8xbf16>, vector<8x16xbf16>, vector<8x16xf32> -> vector<8x16xf32>
      %63 = arith.addf %59, %62 : vector<8x16xf32>
      %c0_33 = arith.constant 0 : index
      %c0_34 = arith.constant 0 : index
      %64 = vector.load %arg9[%c0_33, %c0_34] : memref<8x128xf32, #tpu.memory_space<vmem>>, vector<8x16xf32>
      tpu.vector_store %arg9[%c0_33, %c0_34], %63 {strides = array<i32>} : memref<8x128xf32, #tpu.memory_space<vmem>>, vector<8x16xf32>,
      %65 = vector.extract_strided_slice %17 {offsets = [0, 16], sizes = [8, 16], strides = [1, 1]} : vector<8x128xbf16> to vector<8x16xbf16>
      %66 = vector.extract_strided_slice %19 {offsets = [0, 16], sizes = [8, 16], strides = [1, 1]} : vector<8x128xbf16> to vector<8x16xbf16>
      "tpu.trace_start"() <{level = 10 : i32, message = "qd,kd->qk"}> : () -> ()
      %cst_35 = arith.constant dense<0.000000e+00> : vector<8x8xf32>
      %67 = tpu.matmul %65, %66, %cst_35 {dimension_numbers = #tpu.dot_dimension_numbers<[1], [1], [0], [0], [0, 0, 1, 0], [], []>} : vector<8x16xbf16>, vector<8x16xbf16>, vector<8x8xf32> -> vector<8x8xf32>
      %cst_36 = arith.constant -1.000000e+30 : f32
      "tpu.trace_stop"() : () -> ()
      %68 = vector.broadcast %cst_36 : f32 to vector<8x8xf32>
      %69 = arith.select %29, %67, %68 : vector<8x8xi1>, vector<8x8xf32>
      %c1 = arith.constant 1 : index
      %c0_37 = arith.constant 0 : index
      %c0_38 = arith.constant 0 : index
      %70 = vector.load %arg7[%c1, %c0_37, %c0_38] : memref<8x8x1xf32, #tpu.memory_space<vmem>>, vector<1x8x1xf32>
      %71 = vector.shape_cast %70 : vector<1x8x1xf32> to vector<8x1xf32>
      %cst_39 = arith.constant dense<0xFF800000> : vector<8xf32>
      %72 = vector.multi_reduction <maximumf>, %69, %cst_39 [1] : vector<8x8xf32> to vector<8xf32>
      %73 = vector.shape_cast %72 : vector<8xf32> to vector<8x1xf32>
      %74 = arith.maximumf %71, %73 : vector<8x1xf32>
      %75 = arith.subf %71, %74 : vector<8x1xf32>
      %76 = math.exp %75 : vector<8x1xf32>
      %77 = vector.broadcast %74 : vector<8x1xf32> to vector<8x8xf32>
      %78 = arith.subf %69, %77 : vector<8x8xf32>
      %79 = math.exp %78 : vector<8x8xf32>
      %c1_40 = arith.constant 1 : index
      %c0_41 = arith.constant 0 : index
      %c0_42 = arith.constant 0 : index
      %80 = vector.load %arg8[%c1_40, %c0_41, %c0_42] : memref<8x8x1xf32, #tpu.memory_space<vmem>>, vector<1x8x1xf32>
      %81 = vector.shape_cast %80 : vector<1x8x1xf32> to vector<8x1xf32>
      %82 = arith.mulf %76, %81 : vector<8x1xf32>
      %cst_43 = arith.constant dense<0.000000e+00> : vector<8xf32>
      %83 = vector.multi_reduction <add>, %79, %cst_43 [1] : vector<8x8xf32> to vector<8xf32>
      %84 = vector.shape_cast %83 : vector<8xf32> to vector<8x1xf32>
      %85 = arith.addf %82, %84 : vector<8x1xf32>
      %c1_44 = arith.constant 1 : index
      %c0_45 = arith.constant 0 : index
      %c0_46 = arith.constant 0 : index
      %86 = vector.load %arg8[%c1_44, %c0_45, %c0_46] : memref<8x8x1xf32, #tpu.memory_space<vmem>>, vector<1x8x1xf32>
      %87 = vector.shape_cast %86 : vector<1x8x1xf32> to vector<8x1xf32>
      %88 = vector.shape_cast %85 : vector<8x1xf32> to vector<1x8x1xf32>
      tpu.vector_store %arg8[%c1_44, %c0_45, %c0_46], %88 {strides = array<i32>} : memref<8x8x1xf32, #tpu.memory_space<vmem>>, vector<1x8x1xf32>,
      %c1_47 = arith.constant 1 : index
      %c0_48 = arith.constant 0 : index
      %c0_49 = arith.constant 0 : index
      %89 = vector.load %arg7[%c1_47, %c0_48, %c0_49] : memref<8x8x1xf32, #tpu.memory_space<vmem>>, vector<1x8x1xf32>
      %90 = vector.shape_cast %89 : vector<1x8x1xf32> to vector<8x1xf32>
      %91 = vector.shape_cast %74 : vector<8x1xf32> to vector<1x8x1xf32>
      tpu.vector_store %arg7[%c1_47, %c0_48, %c0_49], %91 {strides = array<i32>} : memref<8x8x1xf32, #tpu.memory_space<vmem>>, vector<1x8x1xf32>,
      %c0_50 = arith.constant 0 : index
      %c16 = arith.constant 16 : index
      %92 = vector.load %arg9[%c0_50, %c16] : memref<8x128xf32, #tpu.memory_space<vmem>>, vector<8x16xf32>
      %93 = vector.broadcast %76 : vector<8x1xf32> to vector<8x16xf32>
      %94 = arith.mulf %93, %92 : vector<8x16xf32>
      %95 = arith.truncf %79 : vector<8x8xf32> to vector<8x8xbf16>
      %96 = vector.extract_strided_slice %21 {offsets = [0, 16], sizes = [8, 16], strides = [1, 1]} : vector<8x128xbf16> to vector<8x16xbf16>
      %cst_51 = arith.constant dense<0.000000e+00> : vector<8x16xf32>
      %97 = tpu.matmul %95, %96, %cst_51 {dimension_numbers = #tpu.dot_dimension_numbers<[1], [0], [0], [1], [0, 0, 1, 1], [], []>} : vector<8x8xbf16>, vector<8x16xbf16>, vector<8x16xf32> -> vector<8x16xf32>
      %98 = arith.addf %94, %97 : vector<8x16xf32>
      %c0_52 = arith.constant 0 : index
      %c16_53 = arith.constant 16 : index
      %99 = vector.load %arg9[%c0_52, %c16_53] : memref<8x128xf32, #tpu.memory_space<vmem>>, vector<8x16xf32>
      tpu.vector_store %arg9[%c0_52, %c16_53], %98 {strides = array<i32>} : memref<8x128xf32, #tpu.memory_space<vmem>>, vector<8x16xf32>,
      %100 = vector.extract_strided_slice %17 {offsets = [0, 32], sizes = [8, 16], strides = [1, 1]} : vector<8x128xbf16> to vector<8x16xbf16>
      %101 = vector.extract_strided_slice %19 {offsets = [0, 32], sizes = [8, 16], strides = [1, 1]} : vector<8x128xbf16> to vector<8x16xbf16>
      "tpu.trace_start"() <{level = 10 : i32, message = "qd,kd->qk"}> : () -> ()
      %cst_54 = arith.constant dense<0.000000e+00> : vector<8x8xf32>
      %102 = tpu.matmul %100, %101, %cst_54 {dimension_numbers = #tpu.dot_dimension_numbers<[1], [1], [0], [0], [0, 0, 1, 0], [], []>} : vector<8x16xbf16>, vector<8x16xbf16>, vector<8x8xf32> -> vector<8x8xf32>
      %cst_55 = arith.constant -1.000000e+30 : f32
      "tpu.trace_stop"() : () -> ()
      %103 = vector.broadcast %cst_55 : f32 to vector<8x8xf32>
      %104 = arith.select %29, %102, %103 : vector<8x8xi1>, vector<8x8xf32>
      %c2 = arith.constant 2 : index
      %c0_56 = arith.constant 0 : index
      %c0_57 = arith.constant 0 : index
      %105 = vector.load %arg7[%c2, %c0_56, %c0_57] : memref<8x8x1xf32, #tpu.memory_space<vmem>>, vector<1x8x1xf32>
      %106 = vector.shape_cast %105 : vector<1x8x1xf32> to vector<8x1xf32>
      %cst_58 = arith.constant dense<0xFF800000> : vector<8xf32>
      %107 = vector.multi_reduction <maximumf>, %104, %cst_58 [1] : vector<8x8xf32> to vector<8xf32>
      %108 = vector.shape_cast %107 : vector<8xf32> to vector<8x1xf32>
      %109 = arith.maximumf %106, %108 : vector<8x1xf32>
      %110 = arith.subf %106, %109 : vector<8x1xf32>
      %111 = math.exp %110 : vector<8x1xf32>
      %112 = vector.broadcast %109 : vector<8x1xf32> to vector<8x8xf32>
      %113 = arith.subf %104, %112 : vector<8x8xf32>
      %114 = math.exp %113 : vector<8x8xf32>
      %c2_59 = arith.constant 2 : index
      %c0_60 = arith.constant 0 : index
      %c0_61 = arith.constant 0 : index
      %115 = vector.load %arg8[%c2_59, %c0_60, %c0_61] : memref<8x8x1xf32, #tpu.memory_space<vmem>>, vector<1x8x1xf32>
      %116 = vector.shape_cast %115 : vector<1x8x1xf32> to vector<8x1xf32>
      %117 = arith.mulf %111, %116 : vector<8x1xf32>
      %cst_62 = arith.constant dense<0.000000e+00> : vector<8xf32>
      %118 = vector.multi_reduction <add>, %114, %cst_62 [1] : vector<8x8xf32> to vector<8xf32>
      %119 = vector.shape_cast %118 : vector<8xf32> to vector<8x1xf32>
      %120 = arith.addf %117, %119 : vector<8x1xf32>
      %c2_63 = arith.constant 2 : index
      %c0_64 = arith.constant 0 : index
      %c0_65 = arith.constant 0 : index
      %121 = vector.load %arg8[%c2_63, %c0_64, %c0_65] : memref<8x8x1xf32, #tpu.memory_space<vmem>>, vector<1x8x1xf32>
      %122 = vector.shape_cast %121 : vector<1x8x1xf32> to vector<8x1xf32>
      %123 = vector.shape_cast %120 : vector<8x1xf32> to vector<1x8x1xf32>
      tpu.vector_store %arg8[%c2_63, %c0_64, %c0_65], %123 {strides = array<i32>} : memref<8x8x1xf32, #tpu.memory_space<vmem>>, vector<1x8x1xf32>,
      %c2_66 = arith.constant 2 : index
      %c0_67 = arith.constant 0 : index
      %c0_68 = arith.constant 0 : index
      %124 = vector.load %arg7[%c2_66, %c0_67, %c0_68] : memref<8x8x1xf32, #tpu.memory_space<vmem>>, vector<1x8x1xf32>
      %125 = vector.shape_cast %124 : vector<1x8x1xf32> to vector<8x1xf32>
      %126 = vector.shape_cast %109 : vector<8x1xf32> to vector<1x8x1xf32>
      tpu.vector_store %arg7[%c2_66, %c0_67, %c0_68], %126 {strides = array<i32>} : memref<8x8x1xf32, #tpu.memory_space<vmem>>, vector<1x8x1xf32>,
      %c0_69 = arith.constant 0 : index
      %c32 = arith.constant 32 : index
      %127 = vector.load %arg9[%c0_69, %c32] : memref<8x128xf32, #tpu.memory_space<vmem>>, vector<8x16xf32>
      %128 = vector.broadcast %111 : vector<8x1xf32> to vector<8x16xf32>
      %129 = arith.mulf %128, %127 : vector<8x16xf32>
      %130 = arith.truncf %114 : vector<8x8xf32> to vector<8x8xbf16>
      %131 = vector.extract_strided_slice %21 {offsets = [0, 32], sizes = [8, 16], strides = [1, 1]} : vector<8x128xbf16> to vector<8x16xbf16>
      %cst_70 = arith.constant dense<0.000000e+00> : vector<8x16xf32>
      %132 = tpu.matmul %130, %131, %cst_70 {dimension_numbers = #tpu.dot_dimension_numbers<[1], [0], [0], [1], [0, 0, 1, 1], [], []>} : vector<8x8xbf16>, vector<8x16xbf16>, vector<8x16xf32> -> vector<8x16xf32>
      %133 = arith.addf %129, %132 : vector<8x16xf32>
      %c0_71 = arith.constant 0 : index
      %c32_72 = arith.constant 32 : index
      %134 = vector.load %arg9[%c0_71, %c32_72] : memref<8x128xf32, #tpu.memory_space<vmem>>, vector<8x16xf32>
      tpu.vector_store %arg9[%c0_71, %c32_72], %133 {strides = array<i32>} : memref<8x128xf32, #tpu.memory_space<vmem>>, vector<8x16xf32>,
      %135 = vector.extract_strided_slice %17 {offsets = [0, 48], sizes = [8, 16], strides = [1, 1]} : vector<8x128xbf16> to vector<8x16xbf16>
      %136 = vector.extract_strided_slice %19 {offsets = [0, 48], sizes = [8, 16], strides = [1, 1]} : vector<8x128xbf16> to vector<8x16xbf16>
      "tpu.trace_start"() <{level = 10 : i32, message = "qd,kd->qk"}> : () -> ()
      %cst_73 = arith.constant dense<0.000000e+00> : vector<8x8xf32>
      %137 = tpu.matmul %135, %136, %cst_73 {dimension_numbers = #tpu.dot_dimension_numbers<[1], [1], [0], [0], [0, 0, 1, 0], [], []>} : vector<8x16xbf16>, vector<8x16xbf16>, vector<8x8xf32> -> vector<8x8xf32>
      %cst_74 = arith.constant -1.000000e+30 : f32
      "tpu.trace_stop"() : () -> ()
      %138 = vector.broadcast %cst_74 : f32 to vector<8x8xf32>
      %139 = arith.select %29, %137, %138 : vector<8x8xi1>, vector<8x8xf32>
      %c3 = arith.constant 3 : index
      %c0_75 = arith.constant 0 : index
      %c0_76 = arith.constant 0 : index
      %140 = vector.load %arg7[%c3, %c0_75, %c0_76] : memref<8x8x1xf32, #tpu.memory_space<vmem>>, vector<1x8x1xf32>
      %141 = vector.shape_cast %140 : vector<1x8x1xf32> to vector<8x1xf32>
      %cst_77 = arith.constant dense<0xFF800000> : vector<8xf32>
      %142 = vector.multi_reduction <maximumf>, %139, %cst_77 [1] : vector<8x8xf32> to vector<8xf32>
      %143 = vector.shape_cast %142 : vector<8xf32> to vector<8x1xf32>
      %144 = arith.maximumf %141, %143 : vector<8x1xf32>
      %145 = arith.subf %141, %144 : vector<8x1xf32>
      %146 = math.exp %145 : vector<8x1xf32>
      %147 = vector.broadcast %144 : vector<8x1xf32> to vector<8x8xf32>
      %148 = arith.subf %139, %147 : vector<8x8xf32>
      %149 = math.exp %148 : vector<8x8xf32>
      %c3_78 = arith.constant 3 : index
      %c0_79 = arith.constant 0 : index
      %c0_80 = arith.constant 0 : index
      %150 = vector.load %arg8[%c3_78, %c0_79, %c0_80] : memref<8x8x1xf32, #tpu.memory_space<vmem>>, vector<1x8x1xf32>
      %151 = vector.shape_cast %150 : vector<1x8x1xf32> to vector<8x1xf32>
      %152 = arith.mulf %146, %151 : vector<8x1xf32>
      %cst_81 = arith.constant dense<0.000000e+00> : vector<8xf32>
      %153 = vector.multi_reduction <add>, %149, %cst_81 [1] : vector<8x8xf32> to vector<8xf32>
      %154 = vector.shape_cast %153 : vector<8xf32> to vector<8x1xf32>
      %155 = arith.addf %152, %154 : vector<8x1xf32>
      %c3_82 = arith.constant 3 : index
      %c0_83 = arith.constant 0 : index
      %c0_84 = arith.constant 0 : index
      %156 = vector.load %arg8[%c3_82, %c0_83, %c0_84] : memref<8x8x1xf32, #tpu.memory_space<vmem>>, vector<1x8x1xf32>
      %157 = vector.shape_cast %156 : vector<1x8x1xf32> to vector<8x1xf32>
      %158 = vector.shape_cast %155 : vector<8x1xf32> to vector<1x8x1xf32>
      tpu.vector_store %arg8[%c3_82, %c0_83, %c0_84], %158 {strides = array<i32>} : memref<8x8x1xf32, #tpu.memory_space<vmem>>, vector<1x8x1xf32>,
      %c3_85 = arith.constant 3 : index
      %c0_86 = arith.constant 0 : index
      %c0_87 = arith.constant 0 : index
      %159 = vector.load %arg7[%c3_85, %c0_86, %c0_87] : memref<8x8x1xf32, #tpu.memory_space<vmem>>, vector<1x8x1xf32>
      %160 = vector.shape_cast %159 : vector<1x8x1xf32> to vector<8x1xf32>
      %161 = vector.shape_cast %144 : vector<8x1xf32> to vector<1x8x1xf32>
      tpu.vector_store %arg7[%c3_85, %c0_86, %c0_87], %161 {strides = array<i32>} : memref<8x8x1xf32, #tpu.memory_space<vmem>>, vector<1x8x1xf32>,
      %c0_88 = arith.constant 0 : index
      %c48 = arith.constant 48 : index
      %162 = vector.load %arg9[%c0_88, %c48] : memref<8x128xf32, #tpu.memory_space<vmem>>, vector<8x16xf32>
      %163 = vector.broadcast %146 : vector<8x1xf32> to vector<8x16xf32>
      %164 = arith.mulf %163, %162 : vector<8x16xf32>
      %165 = arith.truncf %149 : vector<8x8xf32> to vector<8x8xbf16>
      %166 = vector.extract_strided_slice %21 {offsets = [0, 48], sizes = [8, 16], strides = [1, 1]} : vector<8x128xbf16> to vector<8x16xbf16>
      %cst_89 = arith.constant dense<0.000000e+00> : vector<8x16xf32>
      %167 = tpu.matmul %165, %166, %cst_89 {dimension_numbers = #tpu.dot_dimension_numbers<[1], [0], [0], [1], [0, 0, 1, 1], [], []>} : vector<8x8xbf16>, vector<8x16xbf16>, vector<8x16xf32> -> vector<8x16xf32>
      %168 = arith.addf %164, %167 : vector<8x16xf32>
      %c0_90 = arith.constant 0 : index
      %c48_91 = arith.constant 48 : index
      %169 = vector.load %arg9[%c0_90, %c48_91] : memref<8x128xf32, #tpu.memory_space<vmem>>, vector<8x16xf32>
      tpu.vector_store %arg9[%c0_90, %c48_91], %168 {strides = array<i32>} : memref<8x128xf32, #tpu.memory_space<vmem>>, vector<8x16xf32>,
      %170 = vector.extract_strided_slice %17 {offsets = [0, 64], sizes = [8, 16], strides = [1, 1]} : vector<8x128xbf16> to vector<8x16xbf16>
      %171 = vector.extract_strided_slice %19 {offsets = [0, 64], sizes = [8, 16], strides = [1, 1]} : vector<8x128xbf16> to vector<8x16xbf16>
      "tpu.trace_start"() <{level = 10 : i32, message = "qd,kd->qk"}> : () -> ()
      %cst_92 = arith.constant dense<0.000000e+00> : vector<8x8xf32>
      %172 = tpu.matmul %170, %171, %cst_92 {dimension_numbers = #tpu.dot_dimension_numbers<[1], [1], [0], [0], [0, 0, 1, 0], [], []>} : vector<8x16xbf16>, vector<8x16xbf16>, vector<8x8xf32> -> vector<8x8xf32>
      %cst_93 = arith.constant -1.000000e+30 : f32
      "tpu.trace_stop"() : () -> ()
      %173 = vector.broadcast %cst_93 : f32 to vector<8x8xf32>
      %174 = arith.select %29, %172, %173 : vector<8x8xi1>, vector<8x8xf32>
      %c4 = arith.constant 4 : index
      %c0_94 = arith.constant 0 : index
      %c0_95 = arith.constant 0 : index
      %175 = vector.load %arg7[%c4, %c0_94, %c0_95] : memref<8x8x1xf32, #tpu.memory_space<vmem>>, vector<1x8x1xf32>
      %176 = vector.shape_cast %175 : vector<1x8x1xf32> to vector<8x1xf32>
      %cst_96 = arith.constant dense<0xFF800000> : vector<8xf32>
      %177 = vector.multi_reduction <maximumf>, %174, %cst_96 [1] : vector<8x8xf32> to vector<8xf32>
      %178 = vector.shape_cast %177 : vector<8xf32> to vector<8x1xf32>
      %179 = arith.maximumf %176, %178 : vector<8x1xf32>
      %180 = arith.subf %176, %179 : vector<8x1xf32>
      %181 = math.exp %180 : vector<8x1xf32>
      %182 = vector.broadcast %179 : vector<8x1xf32> to vector<8x8xf32>
      %183 = arith.subf %174, %182 : vector<8x8xf32>
      %184 = math.exp %183 : vector<8x8xf32>
      %c4_97 = arith.constant 4 : index
      %c0_98 = arith.constant 0 : index
      %c0_99 = arith.constant 0 : index
      %185 = vector.load %arg8[%c4_97, %c0_98, %c0_99] : memref<8x8x1xf32, #tpu.memory_space<vmem>>, vector<1x8x1xf32>
      %186 = vector.shape_cast %185 : vector<1x8x1xf32> to vector<8x1xf32>
      %187 = arith.mulf %181, %186 : vector<8x1xf32>
      %cst_100 = arith.constant dense<0.000000e+00> : vector<8xf32>
      %188 = vector.multi_reduction <add>, %184, %cst_100 [1] : vector<8x8xf32> to vector<8xf32>
      %189 = vector.shape_cast %188 : vector<8xf32> to vector<8x1xf32>
      %190 = arith.addf %187, %189 : vector<8x1xf32>
      %c4_101 = arith.constant 4 : index
      %c0_102 = arith.constant 0 : index
      %c0_103 = arith.constant 0 : index
      %191 = vector.load %arg8[%c4_101, %c0_102, %c0_103] : memref<8x8x1xf32, #tpu.memory_space<vmem>>, vector<1x8x1xf32>
      %192 = vector.shape_cast %191 : vector<1x8x1xf32> to vector<8x1xf32>
      %193 = vector.shape_cast %190 : vector<8x1xf32> to vector<1x8x1xf32>
      tpu.vector_store %arg8[%c4_101, %c0_102, %c0_103], %193 {strides = array<i32>} : memref<8x8x1xf32, #tpu.memory_space<vmem>>, vector<1x8x1xf32>,
      %c4_104 = arith.constant 4 : index
      %c0_105 = arith.constant 0 : index
      %c0_106 = arith.constant 0 : index
      %194 = vector.load %arg7[%c4_104, %c0_105, %c0_106] : memref<8x8x1xf32, #tpu.memory_space<vmem>>, vector<1x8x1xf32>
      %195 = vector.shape_cast %194 : vector<1x8x1xf32> to vector<8x1xf32>
      %196 = vector.shape_cast %179 : vector<8x1xf32> to vector<1x8x1xf32>
      tpu.vector_store %arg7[%c4_104, %c0_105, %c0_106], %196 {strides = array<i32>} : memref<8x8x1xf32, #tpu.memory_space<vmem>>, vector<1x8x1xf32>,
      %c0_107 = arith.constant 0 : index
      %c64 = arith.constant 64 : index
      %197 = vector.load %arg9[%c0_107, %c64] : memref<8x128xf32, #tpu.memory_space<vmem>>, vector<8x16xf32>
      %198 = vector.broadcast %181 : vector<8x1xf32> to vector<8x16xf32>
      %199 = arith.mulf %198, %197 : vector<8x16xf32>
      %200 = arith.truncf %184 : vector<8x8xf32> to vector<8x8xbf16>
      %201 = vector.extract_strided_slice %21 {offsets = [0, 64], sizes = [8, 16], strides = [1, 1]} : vector<8x128xbf16> to vector<8x16xbf16>
      %cst_108 = arith.constant dense<0.000000e+00> : vector<8x16xf32>
      %202 = tpu.matmul %200, %201, %cst_108 {dimension_numbers = #tpu.dot_dimension_numbers<[1], [0], [0], [1], [0, 0, 1, 1], [], []>} : vector<8x8xbf16>, vector<8x16xbf16>, vector<8x16xf32> -> vector<8x16xf32>
      %203 = arith.addf %199, %202 : vector<8x16xf32>
      %c0_109 = arith.constant 0 : index
      %c64_110 = arith.constant 64 : index
      %204 = vector.load %arg9[%c0_109, %c64_110] : memref<8x128xf32, #tpu.memory_space<vmem>>, vector<8x16xf32>
      tpu.vector_store %arg9[%c0_109, %c64_110], %203 {strides = array<i32>} : memref<8x128xf32, #tpu.memory_space<vmem>>, vector<8x16xf32>,
      %205 = vector.extract_strided_slice %17 {offsets = [0, 80], sizes = [8, 16], strides = [1, 1]} : vector<8x128xbf16> to vector<8x16xbf16>
      %206 = vector.extract_strided_slice %19 {offsets = [0, 80], sizes = [8, 16], strides = [1, 1]} : vector<8x128xbf16> to vector<8x16xbf16>
      "tpu.trace_start"() <{level = 10 : i32, message = "qd,kd->qk"}> : () -> ()
      %cst_111 = arith.constant dense<0.000000e+00> : vector<8x8xf32>
      %207 = tpu.matmul %205, %206, %cst_111 {dimension_numbers = #tpu.dot_dimension_numbers<[1], [1], [0], [0], [0, 0, 1, 0], [], []>} : vector<8x16xbf16>, vector<8x16xbf16>, vector<8x8xf32> -> vector<8x8xf32>
      %cst_112 = arith.constant -1.000000e+30 : f32
      "tpu.trace_stop"() : () -> ()
      %208 = vector.broadcast %cst_112 : f32 to vector<8x8xf32>
      %209 = arith.select %29, %207, %208 : vector<8x8xi1>, vector<8x8xf32>
      %c5 = arith.constant 5 : index
      %c0_113 = arith.constant 0 : index
      %c0_114 = arith.constant 0 : index
      %210 = vector.load %arg7[%c5, %c0_113, %c0_114] : memref<8x8x1xf32, #tpu.memory_space<vmem>>, vector<1x8x1xf32>
      %211 = vector.shape_cast %210 : vector<1x8x1xf32> to vector<8x1xf32>
      %cst_115 = arith.constant dense<0xFF800000> : vector<8xf32>
      %212 = vector.multi_reduction <maximumf>, %209, %cst_115 [1] : vector<8x8xf32> to vector<8xf32>
      %213 = vector.shape_cast %212 : vector<8xf32> to vector<8x1xf32>
      %214 = arith.maximumf %211, %213 : vector<8x1xf32>
      %215 = arith.subf %211, %214 : vector<8x1xf32>
      %216 = math.exp %215 : vector<8x1xf32>
      %217 = vector.broadcast %214 : vector<8x1xf32> to vector<8x8xf32>
      %218 = arith.subf %209, %217 : vector<8x8xf32>
      %219 = math.exp %218 : vector<8x8xf32>
      %c5_116 = arith.constant 5 : index
      %c0_117 = arith.constant 0 : index
      %c0_118 = arith.constant 0 : index
      %220 = vector.load %arg8[%c5_116, %c0_117, %c0_118] : memref<8x8x1xf32, #tpu.memory_space<vmem>>, vector<1x8x1xf32>
      %221 = vector.shape_cast %220 : vector<1x8x1xf32> to vector<8x1xf32>
      %222 = arith.mulf %216, %221 : vector<8x1xf32>
      %cst_119 = arith.constant dense<0.000000e+00> : vector<8xf32>
      %223 = vector.multi_reduction <add>, %219, %cst_119 [1] : vector<8x8xf32> to vector<8xf32>
      %224 = vector.shape_cast %223 : vector<8xf32> to vector<8x1xf32>
      %225 = arith.addf %222, %224 : vector<8x1xf32>
      %c5_120 = arith.constant 5 : index
      %c0_121 = arith.constant 0 : index
      %c0_122 = arith.constant 0 : index
      %226 = vector.load %arg8[%c5_120, %c0_121, %c0_122] : memref<8x8x1xf32, #tpu.memory_space<vmem>>, vector<1x8x1xf32>
      %227 = vector.shape_cast %226 : vector<1x8x1xf32> to vector<8x1xf32>
      %228 = vector.shape_cast %225 : vector<8x1xf32> to vector<1x8x1xf32>
      tpu.vector_store %arg8[%c5_120, %c0_121, %c0_122], %228 {strides = array<i32>} : memref<8x8x1xf32, #tpu.memory_space<vmem>>, vector<1x8x1xf32>,
      %c5_123 = arith.constant 5 : index
      %c0_124 = arith.constant 0 : index
      %c0_125 = arith.constant 0 : index
      %229 = vector.load %arg7[%c5_123, %c0_124, %c0_125] : memref<8x8x1xf32, #tpu.memory_space<vmem>>, vector<1x8x1xf32>
      %230 = vector.shape_cast %229 : vector<1x8x1xf32> to vector<8x1xf32>
      %231 = vector.shape_cast %214 : vector<8x1xf32> to vector<1x8x1xf32>
      tpu.vector_store %arg7[%c5_123, %c0_124, %c0_125], %231 {strides = array<i32>} : memref<8x8x1xf32, #tpu.memory_space<vmem>>, vector<1x8x1xf32>,
      %c0_126 = arith.constant 0 : index
      %c80 = arith.constant 80 : index
      %232 = vector.load %arg9[%c0_126, %c80] : memref<8x128xf32, #tpu.memory_space<vmem>>, vector<8x16xf32>
      %233 = vector.broadcast %216 : vector<8x1xf32> to vector<8x16xf32>
      %234 = arith.mulf %233, %232 : vector<8x16xf32>
      %235 = arith.truncf %219 : vector<8x8xf32> to vector<8x8xbf16>
      %236 = vector.extract_strided_slice %21 {offsets = [0, 80], sizes = [8, 16], strides = [1, 1]} : vector<8x128xbf16> to vector<8x16xbf16>
      %cst_127 = arith.constant dense<0.000000e+00> : vector<8x16xf32>
      %237 = tpu.matmul %235, %236, %cst_127 {dimension_numbers = #tpu.dot_dimension_numbers<[1], [0], [0], [1], [0, 0, 1, 1], [], []>} : vector<8x8xbf16>, vector<8x16xbf16>, vector<8x16xf32> -> vector<8x16xf32>
      %238 = arith.addf %234, %237 : vector<8x16xf32>
      %c0_128 = arith.constant 0 : index
      %c80_129 = arith.constant 80 : index
      %239 = vector.load %arg9[%c0_128, %c80_129] : memref<8x128xf32, #tpu.memory_space<vmem>>, vector<8x16xf32>
      tpu.vector_store %arg9[%c0_128, %c80_129], %238 {strides = array<i32>} : memref<8x128xf32, #tpu.memory_space<vmem>>, vector<8x16xf32>,
      %240 = vector.extract_strided_slice %17 {offsets = [0, 96], sizes = [8, 16], strides = [1, 1]} : vector<8x128xbf16> to vector<8x16xbf16>
      %241 = vector.extract_strided_slice %19 {offsets = [0, 96], sizes = [8, 16], strides = [1, 1]} : vector<8x128xbf16> to vector<8x16xbf16>
      "tpu.trace_start"() <{level = 10 : i32, message = "qd,kd->qk"}> : () -> ()
      %cst_130 = arith.constant dense<0.000000e+00> : vector<8x8xf32>
      %242 = tpu.matmul %240, %241, %cst_130 {dimension_numbers = #tpu.dot_dimension_numbers<[1], [1], [0], [0], [0, 0, 1, 0], [], []>} : vector<8x16xbf16>, vector<8x16xbf16>, vector<8x8xf32> -> vector<8x8xf32>
      %cst_131 = arith.constant -1.000000e+30 : f32
      "tpu.trace_stop"() : () -> ()
      %243 = vector.broadcast %cst_131 : f32 to vector<8x8xf32>
      %244 = arith.select %29, %242, %243 : vector<8x8xi1>, vector<8x8xf32>
      %c6 = arith.constant 6 : index
      %c0_132 = arith.constant 0 : index
      %c0_133 = arith.constant 0 : index
      %245 = vector.load %arg7[%c6, %c0_132, %c0_133] : memref<8x8x1xf32, #tpu.memory_space<vmem>>, vector<1x8x1xf32>
      %246 = vector.shape_cast %245 : vector<1x8x1xf32> to vector<8x1xf32>
      %cst_134 = arith.constant dense<0xFF800000> : vector<8xf32>
      %247 = vector.multi_reduction <maximumf>, %244, %cst_134 [1] : vector<8x8xf32> to vector<8xf32>
      %248 = vector.shape_cast %247 : vector<8xf32> to vector<8x1xf32>
      %249 = arith.maximumf %246, %248 : vector<8x1xf32>
      %250 = arith.subf %246, %249 : vector<8x1xf32>
      %251 = math.exp %250 : vector<8x1xf32>
      %252 = vector.broadcast %249 : vector<8x1xf32> to vector<8x8xf32>
      %253 = arith.subf %244, %252 : vector<8x8xf32>
      %254 = math.exp %253 : vector<8x8xf32>
      %c6_135 = arith.constant 6 : index
      %c0_136 = arith.constant 0 : index
      %c0_137 = arith.constant 0 : index
      %255 = vector.load %arg8[%c6_135, %c0_136, %c0_137] : memref<8x8x1xf32, #tpu.memory_space<vmem>>, vector<1x8x1xf32>
      %256 = vector.shape_cast %255 : vector<1x8x1xf32> to vector<8x1xf32>
      %257 = arith.mulf %251, %256 : vector<8x1xf32>
      %cst_138 = arith.constant dense<0.000000e+00> : vector<8xf32>
      %258 = vector.multi_reduction <add>, %254, %cst_138 [1] : vector<8x8xf32> to vector<8xf32>
      %259 = vector.shape_cast %258 : vector<8xf32> to vector<8x1xf32>
      %260 = arith.addf %257, %259 : vector<8x1xf32>
      %c6_139 = arith.constant 6 : index
      %c0_140 = arith.constant 0 : index
      %c0_141 = arith.constant 0 : index
      %261 = vector.load %arg8[%c6_139, %c0_140, %c0_141] : memref<8x8x1xf32, #tpu.memory_space<vmem>>, vector<1x8x1xf32>
      %262 = vector.shape_cast %261 : vector<1x8x1xf32> to vector<8x1xf32>
      %263 = vector.shape_cast %260 : vector<8x1xf32> to vector<1x8x1xf32>
      tpu.vector_store %arg8[%c6_139, %c0_140, %c0_141], %263 {strides = array<i32>} : memref<8x8x1xf32, #tpu.memory_space<vmem>>, vector<1x8x1xf32>,
      %c6_142 = arith.constant 6 : index
      %c0_143 = arith.constant 0 : index
      %c0_144 = arith.constant 0 : index
      %264 = vector.load %arg7[%c6_142, %c0_143, %c0_144] : memref<8x8x1xf32, #tpu.memory_space<vmem>>, vector<1x8x1xf32>
      %265 = vector.shape_cast %264 : vector<1x8x1xf32> to vector<8x1xf32>
      %266 = vector.shape_cast %249 : vector<8x1xf32> to vector<1x8x1xf32>
      tpu.vector_store %arg7[%c6_142, %c0_143, %c0_144], %266 {strides = array<i32>} : memref<8x8x1xf32, #tpu.memory_space<vmem>>, vector<1x8x1xf32>,
      %c0_145 = arith.constant 0 : index
      %c96 = arith.constant 96 : index
      %267 = vector.load %arg9[%c0_145, %c96] : memref<8x128xf32, #tpu.memory_space<vmem>>, vector<8x16xf32>
      %268 = vector.broadcast %251 : vector<8x1xf32> to vector<8x16xf32>
      %269 = arith.mulf %268, %267 : vector<8x16xf32>
      %270 = arith.truncf %254 : vector<8x8xf32> to vector<8x8xbf16>
      %271 = vector.extract_strided_slice %21 {offsets = [0, 96], sizes = [8, 16], strides = [1, 1]} : vector<8x128xbf16> to vector<8x16xbf16>
      %cst_146 = arith.constant dense<0.000000e+00> : vector<8x16xf32>
      %272 = tpu.matmul %270, %271, %cst_146 {dimension_numbers = #tpu.dot_dimension_numbers<[1], [0], [0], [1], [0, 0, 1, 1], [], []>} : vector<8x8xbf16>, vector<8x16xbf16>, vector<8x16xf32> -> vector<8x16xf32>
      %273 = arith.addf %269, %272 : vector<8x16xf32>
      %c0_147 = arith.constant 0 : index
      %c96_148 = arith.constant 96 : index
      %274 = vector.load %arg9[%c0_147, %c96_148] : memref<8x128xf32, #tpu.memory_space<vmem>>, vector<8x16xf32>
      tpu.vector_store %arg9[%c0_147, %c96_148], %273 {strides = array<i32>} : memref<8x128xf32, #tpu.memory_space<vmem>>, vector<8x16xf32>,
      %275 = vector.extract_strided_slice %17 {offsets = [0, 112], sizes = [8, 16], strides = [1, 1]} : vector<8x128xbf16> to vector<8x16xbf16>
      %276 = vector.extract_strided_slice %19 {offsets = [0, 112], sizes = [8, 16], strides = [1, 1]} : vector<8x128xbf16> to vector<8x16xbf16>
      "tpu.trace_start"() <{level = 10 : i32, message = "qd,kd->qk"}> : () -> ()
      %cst_149 = arith.constant dense<0.000000e+00> : vector<8x8xf32>
      %277 = tpu.matmul %275, %276, %cst_149 {dimension_numbers = #tpu.dot_dimension_numbers<[1], [1], [0], [0], [0, 0, 1, 0], [], []>} : vector<8x16xbf16>, vector<8x16xbf16>, vector<8x8xf32> -> vector<8x8xf32>
      %cst_150 = arith.constant -1.000000e+30 : f32
      "tpu.trace_stop"() : () -> ()
      %278 = vector.broadcast %cst_150 : f32 to vector<8x8xf32>
      %279 = arith.select %29, %277, %278 : vector<8x8xi1>, vector<8x8xf32>
      %c7 = arith.constant 7 : index
      %c0_151 = arith.constant 0 : index
      %c0_152 = arith.constant 0 : index
      %280 = vector.load %arg7[%c7, %c0_151, %c0_152] : memref<8x8x1xf32, #tpu.memory_space<vmem>>, vector<1x8x1xf32>
      %281 = vector.shape_cast %280 : vector<1x8x1xf32> to vector<8x1xf32>
      %cst_153 = arith.constant dense<0xFF800000> : vector<8xf32>
      %282 = vector.multi_reduction <maximumf>, %279, %cst_153 [1] : vector<8x8xf32> to vector<8xf32>
      %283 = vector.shape_cast %282 : vector<8xf32> to vector<8x1xf32>
      %284 = arith.maximumf %281, %283 : vector<8x1xf32>
      %285 = arith.subf %281, %284 : vector<8x1xf32>
      %286 = math.exp %285 : vector<8x1xf32>
      %287 = vector.broadcast %284 : vector<8x1xf32> to vector<8x8xf32>
      %288 = arith.subf %279, %287 : vector<8x8xf32>
      %289 = math.exp %288 : vector<8x8xf32>
      %c7_154 = arith.constant 7 : index
      %c0_155 = arith.constant 0 : index
      %c0_156 = arith.constant 0 : index
      %290 = vector.load %arg8[%c7_154, %c0_155, %c0_156] : memref<8x8x1xf32, #tpu.memory_space<vmem>>, vector<1x8x1xf32>
      %291 = vector.shape_cast %290 : vector<1x8x1xf32> to vector<8x1xf32>
      %292 = arith.mulf %286, %291 : vector<8x1xf32>
      %cst_157 = arith.constant dense<0.000000e+00> : vector<8xf32>
      %293 = vector.multi_reduction <add>, %289, %cst_157 [1] : vector<8x8xf32> to vector<8xf32>
      %294 = vector.shape_cast %293 : vector<8xf32> to vector<8x1xf32>
      %295 = arith.addf %292, %294 : vector<8x1xf32>
      %c7_158 = arith.constant 7 : index
      %c0_159 = arith.constant 0 : index
      %c0_160 = arith.constant 0 : index
      %296 = vector.load %arg8[%c7_158, %c0_159, %c0_160] : memref<8x8x1xf32, #tpu.memory_space<vmem>>, vector<1x8x1xf32>
      %297 = vector.shape_cast %296 : vector<1x8x1xf32> to vector<8x1xf32>
      %298 = vector.shape_cast %295 : vector<8x1xf32> to vector<1x8x1xf32>
      tpu.vector_store %arg8[%c7_158, %c0_159, %c0_160], %298 {strides = array<i32>} : memref<8x8x1xf32, #tpu.memory_space<vmem>>, vector<1x8x1xf32>,
      %c7_161 = arith.constant 7 : index
      %c0_162 = arith.constant 0 : index
      %c0_163 = arith.constant 0 : index
      %299 = vector.load %arg7[%c7_161, %c0_162, %c0_163] : memref<8x8x1xf32, #tpu.memory_space<vmem>>, vector<1x8x1xf32>
      %300 = vector.shape_cast %299 : vector<1x8x1xf32> to vector<8x1xf32>
      %301 = vector.shape_cast %284 : vector<8x1xf32> to vector<1x8x1xf32>
      tpu.vector_store %arg7[%c7_161, %c0_162, %c0_163], %301 {strides = array<i32>} : memref<8x8x1xf32, #tpu.memory_space<vmem>>, vector<1x8x1xf32>,
      %c0_164 = arith.constant 0 : index
      %c112 = arith.constant 112 : index
      %302 = vector.load %arg9[%c0_164, %c112] : memref<8x128xf32, #tpu.memory_space<vmem>>, vector<8x16xf32>
      %303 = vector.broadcast %286 : vector<8x1xf32> to vector<8x16xf32>
      %304 = arith.mulf %303, %302 : vector<8x16xf32>
      %305 = arith.truncf %289 : vector<8x8xf32> to vector<8x8xbf16>
      %306 = vector.extract_strided_slice %21 {offsets = [0, 112], sizes = [8, 16], strides = [1, 1]} : vector<8x128xbf16> to vector<8x16xbf16>
      %cst_165 = arith.constant dense<0.000000e+00> : vector<8x16xf32>
      %307 = tpu.matmul %305, %306, %cst_165 {dimension_numbers = #tpu.dot_dimension_numbers<[1], [0], [0], [1], [0, 0, 1, 1], [], []>} : vector<8x8xbf16>, vector<8x16xbf16>, vector<8x16xf32> -> vector<8x16xf32>
      %308 = arith.addf %304, %307 : vector<8x16xf32>
      %c0_166 = arith.constant 0 : index
      %c112_167 = arith.constant 112 : index
      %309 = vector.load %arg9[%c0_166, %c112_167] : memref<8x128xf32, #tpu.memory_space<vmem>>, vector<8x16xf32>
      tpu.vector_store %arg9[%c0_166, %c112_167], %308 {strides = array<i32>} : memref<8x128xf32, #tpu.memory_space<vmem>>, vector<8x16xf32>,
    } else {
    }
    %c0_i32_3 = arith.constant 0 : i32
    %9 = arith.cmpi eq, %arg2, %c0_i32_3 : i32
    %10 = arith.extui %9 : i1 to i32
    %c0_i32_4 = arith.constant 0 : i32
    %11 = arith.cmpi ne, %10, %c0_i32_4 : i32
    scf.if %11 {
      %c0 = arith.constant 0 : index
      %c0_5 = arith.constant 0 : index
      %12 = vector.load %arg9[%c0, %c0_5] : memref<8x128xf32, #tpu.memory_space<vmem>>, vector<8x16xf32>
      %c0_6 = arith.constant 0 : index
      %c0_7 = arith.constant 0 : index
      %c0_8 = arith.constant 0 : index
      %13 = vector.load %arg8[%c0_6, %c0_7, %c0_8] : memref<8x8x1xf32, #tpu.memory_space<vmem>>, vector<1x8x1xf32>
      %14 = vector.shape_cast %13 : vector<1x8x1xf32> to vector<8x1xf32>
      %15 = vector.broadcast %14 : vector<8x1xf32> to vector<8x16xf32>
      %16 = arith.divf %12, %15 : vector<8x16xf32>
      %c0_9 = arith.constant 0 : index
      %c16 = arith.constant 16 : index
      %17 = vector.load %arg9[%c0_9, %c16] : memref<8x128xf32, #tpu.memory_space<vmem>>, vector<8x16xf32>
      %c1 = arith.constant 1 : index
      %c0_10 = arith.constant 0 : index
      %c0_11 = arith.constant 0 : index
      %18 = vector.load %arg8[%c1, %c0_10, %c0_11] : memref<8x8x1xf32, #tpu.memory_space<vmem>>, vector<1x8x1xf32>
      %19 = vector.shape_cast %18 : vector<1x8x1xf32> to vector<8x1xf32>
      %20 = vector.broadcast %19 : vector<8x1xf32> to vector<8x16xf32>
      %21 = arith.divf %17, %20 : vector<8x16xf32>
      %c0_12 = arith.constant 0 : index
      %c32 = arith.constant 32 : index
      %22 = vector.load %arg9[%c0_12, %c32] : memref<8x128xf32, #tpu.memory_space<vmem>>, vector<8x16xf32>
      %c2 = arith.constant 2 : index
      %c0_13 = arith.constant 0 : index
      %c0_14 = arith.constant 0 : index
      %23 = vector.load %arg8[%c2, %c0_13, %c0_14] : memref<8x8x1xf32, #tpu.memory_space<vmem>>, vector<1x8x1xf32>
      %24 = vector.shape_cast %23 : vector<1x8x1xf32> to vector<8x1xf32>
      %25 = vector.broadcast %24 : vector<8x1xf32> to vector<8x16xf32>
      %26 = arith.divf %22, %25 : vector<8x16xf32>
      %c0_15 = arith.constant 0 : index
      %c48 = arith.constant 48 : index
      %27 = vector.load %arg9[%c0_15, %c48] : memref<8x128xf32, #tpu.memory_space<vmem>>, vector<8x16xf32>
      %c3 = arith.constant 3 : index
      %c0_16 = arith.constant 0 : index
      %c0_17 = arith.constant 0 : index
      %28 = vector.load %arg8[%c3, %c0_16, %c0_17] : memref<8x8x1xf32, #tpu.memory_space<vmem>>, vector<1x8x1xf32>
      %29 = vector.shape_cast %28 : vector<1x8x1xf32> to vector<8x1xf32>
      %30 = vector.broadcast %29 : vector<8x1xf32> to vector<8x16xf32>
      %31 = arith.divf %27, %30 : vector<8x16xf32>
      %c0_18 = arith.constant 0 : index
      %c64 = arith.constant 64 : index
      %32 = vector.load %arg9[%c0_18, %c64] : memref<8x128xf32, #tpu.memory_space<vmem>>, vector<8x16xf32>
      %c4 = arith.constant 4 : index
      %c0_19 = arith.constant 0 : index
      %c0_20 = arith.constant 0 : index
      %33 = vector.load %arg8[%c4, %c0_19, %c0_20] : memref<8x8x1xf32, #tpu.memory_space<vmem>>, vector<1x8x1xf32>
      %34 = vector.shape_cast %33 : vector<1x8x1xf32> to vector<8x1xf32>
      %35 = vector.broadcast %34 : vector<8x1xf32> to vector<8x16xf32>
      %36 = arith.divf %32, %35 : vector<8x16xf32>
      %c0_21 = arith.constant 0 : index
      %c80 = arith.constant 80 : index
      %37 = vector.load %arg9[%c0_21, %c80] : memref<8x128xf32, #tpu.memory_space<vmem>>, vector<8x16xf32>
      %c5 = arith.constant 5 : index
      %c0_22 = arith.constant 0 : index
      %c0_23 = arith.constant 0 : index
      %38 = vector.load %arg8[%c5, %c0_22, %c0_23] : memref<8x8x1xf32, #tpu.memory_space<vmem>>, vector<1x8x1xf32>
      %39 = vector.shape_cast %38 : vector<1x8x1xf32> to vector<8x1xf32>
      %40 = vector.broadcast %39 : vector<8x1xf32> to vector<8x16xf32>
      %41 = arith.divf %37, %40 : vector<8x16xf32>
      %c0_24 = arith.constant 0 : index
      %c96 = arith.constant 96 : index
      %42 = vector.load %arg9[%c0_24, %c96] : memref<8x128xf32, #tpu.memory_space<vmem>>, vector<8x16xf32>
      %c6 = arith.constant 6 : index
      %c0_25 = arith.constant 0 : index
      %c0_26 = arith.constant 0 : index
      %43 = vector.load %arg8[%c6, %c0_25, %c0_26] : memref<8x8x1xf32, #tpu.memory_space<vmem>>, vector<1x8x1xf32>
      %44 = vector.shape_cast %43 : vector<1x8x1xf32> to vector<8x1xf32>
      %45 = vector.broadcast %44 : vector<8x1xf32> to vector<8x16xf32>
      %46 = arith.divf %42, %45 : vector<8x16xf32>
      %c0_27 = arith.constant 0 : index
      %c112 = arith.constant 112 : index
      %47 = vector.load %arg9[%c0_27, %c112] : memref<8x128xf32, #tpu.memory_space<vmem>>, vector<8x16xf32>
      %c7 = arith.constant 7 : index
      %c0_28 = arith.constant 0 : index
      %c0_29 = arith.constant 0 : index
      %48 = vector.load %arg8[%c7, %c0_28, %c0_29] : memref<8x8x1xf32, #tpu.memory_space<vmem>>, vector<1x8x1xf32>
      %49 = vector.shape_cast %48 : vector<1x8x1xf32> to vector<8x1xf32>
      %50 = vector.broadcast %49 : vector<8x1xf32> to vector<8x16xf32>
      %51 = arith.divf %47, %50 : vector<8x16xf32>
      %52 = tpu.concatenate %16, %21, %26, %31, %36, %41, %46, %51 in 1 : vector<8x16xf32>, vector<8x16xf32>, vector<8x16xf32>, vector<8x16xf32>, vector<8x16xf32>, vector<8x16xf32>, vector<8x16xf32>, vector<8x16xf32> -> vector<8x128xf32>
      %53 = arith.truncf %52 : vector<8x128xf32> to vector<8x128xbf16>
      %c0_30 = arith.constant 0 : index
      %c0_31 = arith.constant 0 : index
      %c0_32 = arith.constant 0 : index
      %54 = vector.load %arg6[%c0_30, %c0_31, %c0_32] : memref<1x8x128xbf16, #tpu.memory_space<vmem>>, vector<1x8x128xbf16>
      %55 = vector.shape_cast %54 : vector<1x8x128xbf16> to vector<8x128xbf16>
      %56 = vector.shape_cast %53 : vector<8x128xbf16> to vector<1x8x128xbf16>
      tpu.vector_store %arg6[%c0_30, %c0_31, %c0_32], %56 {strides = array<i32>} : memref<1x8x128xbf16, #tpu.memory_space<vmem>>, vector<1x8x128xbf16>,
    } else {
    }
    return
  }
  func.func @transform_0(%arg0: i32, %arg1: i32, %arg2: i32) -> (i32, i32, i32) {
    %c0_i32 = arith.constant 0 : i32
    %c0_i32_0 = arith.constant 0 : i32
    return %arg0, %arg1, %c0_i32 : i32, i32, i32
  }
  func.func @transform_1(%arg0: i32, %arg1: i32, %arg2: i32) -> (i32, i32, i32) {
    %c1_i32 = arith.constant 1 : i32
    %c0_i32 = arith.constant 0 : i32
    return %arg0, %arg2, %c1_i32 : i32, i32, i32
  }
  func.func @transform_2(%arg0: i32, %arg1: i32, %arg2: i32) -> (i32, i32, i32) {
    %c2_i32 = arith.constant 2 : i32
    %c0_i32 = arith.constant 0 : i32
    return %arg0, %arg2, %c2_i32 : i32, i32, i32
  }
  func.func @transform_3(%arg0: i32, %arg1: i32, %arg2: i32) -> (i32, i32, i32) {
    %c0_i32 = arith.constant 0 : i32
    %c0_i32_0 = arith.constant 0 : i32
    return %arg0, %arg1, %c0_i32 : i32, i32, i32
  }
}

module attributes {stable_mosaic.version = 11 : i64} {
  func.func @_linear_kernel(%arg0: i32, %arg1: i32, %arg2: i32, %arg3: memref<16x128xf32, #tpu.memory_space<vmem>>, %arg4: memref<1x128xf32, #tpu.memory_space<vmem>>, %arg5: memref<1x128xf32, #tpu.memory_space<vmem>>, %arg6: memref<128x384xbf16, #tpu.memory_space<vmem>>, %arg7: memref<1x384xf32, #tpu.memory_space<vmem>>, %arg8: memref<16x384xbf16, #tpu.memory_space<vmem>>) attributes {dimension_semantics = [#tpu.dimension_semantics<parallel>, #tpu.dimension_semantics<parallel>, #tpu.dimension_semantics<arbitrary>], iteration_bounds = array<i64: 1, 1, 1>, scalar_prefetch = 0 : i64, scratch_operands = 0 : i64, tpu.core_type = #tpu.core_type<tc>, window_params = [{transform_indices = @transform_0, window_bounds = array<i64: 16, 128>}, {pipeline_mode = #tpu.pipeline_mode<synchronous>, transform_indices = @transform_1, window_bounds = array<i64: 1, 128>}, {pipeline_mode = #tpu.pipeline_mode<synchronous>, transform_indices = @transform_2, window_bounds = array<i64: 1, 128>}, {transform_indices = @transform_3, window_bounds = array<i64: 128, 384>}, {transform_indices = @transform_4, window_bounds = array<i64: 1, 384>}, {transform_indices = @transform_5, window_bounds = array<i64: 16, 384>}]} {
    %c0 = arith.constant 0 : index
    %c0_0 = arith.constant 0 : index
    %0 = vector.load %arg3[%c0, %c0_0] : memref<16x128xf32, #tpu.memory_space<vmem>>, vector<16x128xf32>
    %cst = arith.constant dense<0.000000e+00> : vector<16xf32>
    %1 = vector.multi_reduction <add>, %0, %cst [1] : vector<16x128xf32> to vector<16xf32>
    %2 = vector.shape_cast %1 : vector<16xf32> to vector<16x1xf32>
    %cst_1 = arith.constant 1.280000e+02 : f32
    %3 = vector.broadcast %cst_1 : f32 to vector<16x1xf32>
    %4 = arith.divf %2, %3 : vector<16x1xf32>
    %5 = vector.broadcast %4 : vector<16x1xf32> to vector<16x128xf32>
    %6 = arith.subf %0, %5 : vector<16x128xf32>
    %7 = arith.mulf %6, %6 : vector<16x128xf32>
    %cst_2 = arith.constant dense<0.000000e+00> : vector<16xf32>
    %8 = vector.multi_reduction <add>, %7, %cst_2 [1] : vector<16x128xf32> to vector<16xf32>
    %9 = vector.shape_cast %8 : vector<16xf32> to vector<16x1xf32>
    %cst_3 = arith.constant 1.280000e+02 : f32
    %10 = vector.broadcast %cst_3 : f32 to vector<16x1xf32>
    %11 = arith.divf %9, %10 : vector<16x1xf32>
    %12 = vector.broadcast %4 : vector<16x1xf32> to vector<16x128xf32>
    %13 = arith.subf %0, %12 : vector<16x128xf32>
    %cst_4 = arith.constant 9.99999974E-6 : f32
    %14 = vector.broadcast %cst_4 : f32 to vector<16x1xf32>
    %15 = arith.addf %11, %14 : vector<16x1xf32>
    %16 = math.rsqrt %15 : vector<16x1xf32>
    %17 = vector.broadcast %16 : vector<16x1xf32> to vector<16x128xf32>
    %18 = arith.mulf %13, %17 : vector<16x128xf32>
    %c0_5 = arith.constant 0 : index
    %c0_6 = arith.constant 0 : index
    %19 = vector.load %arg4[%c0_5, %c0_6] : memref<1x128xf32, #tpu.memory_space<vmem>>, vector<1x128xf32>
    %20 = vector.broadcast %19 : vector<1x128xf32> to vector<16x128xf32>
    %21 = arith.mulf %18, %20 : vector<16x128xf32>
    %c0_7 = arith.constant 0 : index
    %c0_8 = arith.constant 0 : index
    %22 = vector.load %arg5[%c0_7, %c0_8] : memref<1x128xf32, #tpu.memory_space<vmem>>, vector<1x128xf32>
    %23 = vector.broadcast %22 : vector<1x128xf32> to vector<16x128xf32>
    %24 = arith.addf %21, %23 : vector<16x128xf32>
    %25 = arith.truncf %24 : vector<16x128xf32> to vector<16x128xbf16>
    %c0_9 = arith.constant 0 : index
    %c0_10 = arith.constant 0 : index
    %26 = vector.load %arg6[%c0_9, %c0_10] : memref<128x384xbf16, #tpu.memory_space<vmem>>, vector<128x384xbf16>
    %cst_11 = arith.constant dense<0.000000e+00> : vector<16x384xf32>
    %27 = tpu.matmul %25, %26, %cst_11 {dimension_numbers = #tpu.dot_dimension_numbers<[1], [0], [0], [1], [0, 0, 1, 1], [], []>} : vector<16x128xbf16>, vector<128x384xbf16>, vector<16x384xf32> -> vector<16x384xf32>
    %c0_12 = arith.constant 0 : index
    %c0_13 = arith.constant 0 : index
    %28 = vector.load %arg7[%c0_12, %c0_13] : memref<1x384xf32, #tpu.memory_space<vmem>>, vector<1x384xf32>
    %29 = vector.broadcast %28 : vector<1x384xf32> to vector<16x384xf32>
    %30 = arith.addf %27, %29 : vector<16x384xf32>
    %31 = arith.truncf %30 : vector<16x384xf32> to vector<16x384xbf16>
    %c0_14 = arith.constant 0 : index
    %c0_15 = arith.constant 0 : index
    %32 = vector.load %arg8[%c0_14, %c0_15] : memref<16x384xbf16, #tpu.memory_space<vmem>>, vector<16x384xbf16>
    tpu.vector_store %arg8[%c0_14, %c0_15], %31 {strides = array<i32>} : memref<16x384xbf16, #tpu.memory_space<vmem>>, vector<16x384xbf16>,
    return
  }
  func.func @transform_0(%arg0: i32, %arg1: i32, %arg2: i32) -> (i32, i32) {
    %c0_i32 = arith.constant 0 : i32
    return %arg0, %arg2 : i32, i32
  }
  func.func @transform_1(%arg0: i32, %arg1: i32, %arg2: i32) -> (i32, i32) {
    %c0_i32 = arith.constant 0 : i32
    %c0_i32_0 = arith.constant 0 : i32
    %c0_i32_1 = arith.constant 0 : i32
    return %c0_i32, %c0_i32_0 : i32, i32
  }
  func.func @transform_2(%arg0: i32, %arg1: i32, %arg2: i32) -> (i32, i32) {
    %c0_i32 = arith.constant 0 : i32
    %c0_i32_0 = arith.constant 0 : i32
    %c0_i32_1 = arith.constant 0 : i32
    return %c0_i32, %c0_i32_0 : i32, i32
  }
  func.func @transform_3(%arg0: i32, %arg1: i32, %arg2: i32) -> (i32, i32) {
    %c0_i32 = arith.constant 0 : i32
    return %arg2, %arg1 : i32, i32
  }
  func.func @transform_4(%arg0: i32, %arg1: i32, %arg2: i32) -> (i32, i32) {
    %c0_i32 = arith.constant 0 : i32
    %c0_i32_0 = arith.constant 0 : i32
    return %c0_i32, %arg1 : i32, i32
  }
  func.func @transform_5(%arg0: i32, %arg1: i32, %arg2: i32) -> (i32, i32) {
    %c0_i32 = arith.constant 0 : i32
    return %arg0, %arg1 : i32, i32
  }
}

module attributes {stable_mosaic.version = 11 : i64} {
  func.func @_linear_kernel(%arg0: i32, %arg1: i32, %arg2: i32, %arg3: memref<16x128xf32, #tpu.memory_space<vmem>>, %arg4: memref<1x128xf32, #tpu.memory_space<vmem>>, %arg5: memref<1x128xf32, #tpu.memory_space<vmem>>, %arg6: memref<128x512xbf16, #tpu.memory_space<vmem>>, %arg7: memref<1x512xf32, #tpu.memory_space<vmem>>, %arg8: memref<16x512xbf16, #tpu.memory_space<vmem>>) attributes {dimension_semantics = [#tpu.dimension_semantics<parallel>, #tpu.dimension_semantics<parallel>, #tpu.dimension_semantics<arbitrary>], iteration_bounds = array<i64: 1, 1, 1>, scalar_prefetch = 0 : i64, scratch_operands = 0 : i64, tpu.core_type = #tpu.core_type<tc>, window_params = [{transform_indices = @transform_0, window_bounds = array<i64: 16, 128>}, {pipeline_mode = #tpu.pipeline_mode<synchronous>, transform_indices = @transform_1, window_bounds = array<i64: 1, 128>}, {pipeline_mode = #tpu.pipeline_mode<synchronous>, transform_indices = @transform_2, window_bounds = array<i64: 1, 128>}, {transform_indices = @transform_3, window_bounds = array<i64: 128, 512>}, {transform_indices = @transform_4, window_bounds = array<i64: 1, 512>}, {transform_indices = @transform_5, window_bounds = array<i64: 16, 512>}]} {
    %c0 = arith.constant 0 : index
    %c0_0 = arith.constant 0 : index
    %0 = vector.load %arg3[%c0, %c0_0] : memref<16x128xf32, #tpu.memory_space<vmem>>, vector<16x128xf32>
    %cst = arith.constant dense<0.000000e+00> : vector<16xf32>
    %1 = vector.multi_reduction <add>, %0, %cst [1] : vector<16x128xf32> to vector<16xf32>
    %2 = vector.shape_cast %1 : vector<16xf32> to vector<16x1xf32>
    %cst_1 = arith.constant 1.280000e+02 : f32
    %3 = vector.broadcast %cst_1 : f32 to vector<16x1xf32>
    %4 = arith.divf %2, %3 : vector<16x1xf32>
    %5 = vector.broadcast %4 : vector<16x1xf32> to vector<16x128xf32>
    %6 = arith.subf %0, %5 : vector<16x128xf32>
    %7 = arith.mulf %6, %6 : vector<16x128xf32>
    %cst_2 = arith.constant dense<0.000000e+00> : vector<16xf32>
    %8 = vector.multi_reduction <add>, %7, %cst_2 [1] : vector<16x128xf32> to vector<16xf32>
    %9 = vector.shape_cast %8 : vector<16xf32> to vector<16x1xf32>
    %cst_3 = arith.constant 1.280000e+02 : f32
    %10 = vector.broadcast %cst_3 : f32 to vector<16x1xf32>
    %11 = arith.divf %9, %10 : vector<16x1xf32>
    %12 = vector.broadcast %4 : vector<16x1xf32> to vector<16x128xf32>
    %13 = arith.subf %0, %12 : vector<16x128xf32>
    %cst_4 = arith.constant 9.99999974E-6 : f32
    %14 = vector.broadcast %cst_4 : f32 to vector<16x1xf32>
    %15 = arith.addf %11, %14 : vector<16x1xf32>
    %16 = math.rsqrt %15 : vector<16x1xf32>
    %17 = vector.broadcast %16 : vector<16x1xf32> to vector<16x128xf32>
    %18 = arith.mulf %13, %17 : vector<16x128xf32>
    %c0_5 = arith.constant 0 : index
    %c0_6 = arith.constant 0 : index
    %19 = vector.load %arg4[%c0_5, %c0_6] : memref<1x128xf32, #tpu.memory_space<vmem>>, vector<1x128xf32>
    %20 = vector.broadcast %19 : vector<1x128xf32> to vector<16x128xf32>
    %21 = arith.mulf %18, %20 : vector<16x128xf32>
    %c0_7 = arith.constant 0 : index
    %c0_8 = arith.constant 0 : index
    %22 = vector.load %arg5[%c0_7, %c0_8] : memref<1x128xf32, #tpu.memory_space<vmem>>, vector<1x128xf32>
    %23 = vector.broadcast %22 : vector<1x128xf32> to vector<16x128xf32>
    %24 = arith.addf %21, %23 : vector<16x128xf32>
    %25 = arith.truncf %24 : vector<16x128xf32> to vector<16x128xbf16>
    %c0_9 = arith.constant 0 : index
    %c0_10 = arith.constant 0 : index
    %26 = vector.load %arg6[%c0_9, %c0_10] : memref<128x512xbf16, #tpu.memory_space<vmem>>, vector<128x512xbf16>
    %cst_11 = arith.constant dense<0.000000e+00> : vector<16x512xf32>
    %27 = tpu.matmul %25, %26, %cst_11 {dimension_numbers = #tpu.dot_dimension_numbers<[1], [0], [0], [1], [0, 0, 1, 1], [], []>} : vector<16x128xbf16>, vector<128x512xbf16>, vector<16x512xf32> -> vector<16x512xf32>
    %c0_12 = arith.constant 0 : index
    %c0_13 = arith.constant 0 : index
    %28 = vector.load %arg7[%c0_12, %c0_13] : memref<1x512xf32, #tpu.memory_space<vmem>>, vector<1x512xf32>
    %29 = vector.broadcast %28 : vector<1x512xf32> to vector<16x512xf32>
    %30 = arith.addf %27, %29 : vector<16x512xf32>
    %cst_14 = arith.constant 5.000000e-01 : f32
    %31 = vector.broadcast %cst_14 : f32 to vector<16x512xf32>
    %32 = arith.mulf %31, %30 : vector<16x512xf32>
    %cst_15 = arith.constant 4.471500e-02 : f32
    %33 = vector.broadcast %cst_15 : f32 to vector<16x512xf32>
    %34 = arith.mulf %33, %30 : vector<16x512xf32>
    %35 = arith.mulf %34, %30 : vector<16x512xf32>
    %36 = arith.mulf %35, %30 : vector<16x512xf32>
    %37 = arith.addf %30, %36 : vector<16x512xf32>
    %cst_16 = arith.constant 0.797884583 : f32
    %38 = vector.broadcast %cst_16 : f32 to vector<16x512xf32>
    %39 = arith.mulf %38, %37 : vector<16x512xf32>
    %40 = math.tanh %39 : vector<16x512xf32>
    %cst_17 = arith.constant 1.000000e+00 : f32
    %41 = vector.broadcast %cst_17 : f32 to vector<16x512xf32>
    %42 = arith.addf %41, %40 : vector<16x512xf32>
    %43 = arith.mulf %32, %42 : vector<16x512xf32>
    %44 = arith.truncf %43 : vector<16x512xf32> to vector<16x512xbf16>
    %c0_18 = arith.constant 0 : index
    %c0_19 = arith.constant 0 : index
    %45 = vector.load %arg8[%c0_18, %c0_19] : memref<16x512xbf16, #tpu.memory_space<vmem>>, vector<16x512xbf16>
    tpu.vector_store %arg8[%c0_18, %c0_19], %44 {strides = array<i32>} : memref<16x512xbf16, #tpu.memory_space<vmem>>, vector<16x512xbf16>,
    return
  }
  func.func @transform_0(%arg0: i32, %arg1: i32, %arg2: i32) -> (i32, i32) {
    %c0_i32 = arith.constant 0 : i32
    return %arg0, %arg2 : i32, i32
  }
  func.func @transform_1(%arg0: i32, %arg1: i32, %arg2: i32) -> (i32, i32) {
    %c0_i32 = arith.constant 0 : i32
    %c0_i32_0 = arith.constant 0 : i32
    %c0_i32_1 = arith.constant 0 : i32
    return %c0_i32, %c0_i32_0 : i32, i32
  }
  func.func @transform_2(%arg0: i32, %arg1: i32, %arg2: i32) -> (i32, i32) {
    %c0_i32 = arith.constant 0 : i32
    %c0_i32_0 = arith.constant 0 : i32
    %c0_i32_1 = arith.constant 0 : i32
    return %c0_i32, %c0_i32_0 : i32, i32
  }
  func.func @transform_3(%arg0: i32, %arg1: i32, %arg2: i32) -> (i32, i32) {
    %c0_i32 = arith.constant 0 : i32
    return %arg2, %arg1 : i32, i32
  }
  func.func @transform_4(%arg0: i32, %arg1: i32, %arg2: i32) -> (i32, i32) {
    %c0_i32 = arith.constant 0 : i32
    %c0_i32_0 = arith.constant 0 : i32
    return %c0_i32, %arg1 : i32, i32
  }
  func.func @transform_5(%arg0: i32, %arg1: i32, %arg2: i32) -> (i32, i32) {
    %c0_i32 = arith.constant 0 : i32
    return %arg0, %arg1 : i32, i32
  }
}

module attributes {stable_mosaic.version = 11 : i64} {
  func.func @_linear_kernel(%arg0: i32, %arg1: i32, %arg2: i32, %arg3: memref<16x128xbf16, #tpu.memory_space<vmem>>, %arg4: memref<128x128xbf16, #tpu.memory_space<vmem>>, %arg5: memref<1x128xf32, #tpu.memory_space<vmem>>, %arg6: memref<16x128xf32, #tpu.memory_space<vmem>>) attributes {dimension_semantics = [#tpu.dimension_semantics<parallel>, #tpu.dimension_semantics<parallel>, #tpu.dimension_semantics<arbitrary>], iteration_bounds = array<i64: 1, 1, 1>, scalar_prefetch = 0 : i64, scratch_operands = 0 : i64, tpu.core_type = #tpu.core_type<tc>, window_params = [{transform_indices = @transform_0, window_bounds = array<i64: 16, 128>}, {transform_indices = @transform_1, window_bounds = array<i64: 128, 128>}, {transform_indices = @transform_2, window_bounds = array<i64: 1, 128>}, {transform_indices = @transform_3, window_bounds = array<i64: 16, 128>}]} {
    %c0 = arith.constant 0 : index
    %c0_0 = arith.constant 0 : index
    %0 = vector.load %arg3[%c0, %c0_0] : memref<16x128xbf16, #tpu.memory_space<vmem>>, vector<16x128xbf16>
    %c0_1 = arith.constant 0 : index
    %c0_2 = arith.constant 0 : index
    %1 = vector.load %arg4[%c0_1, %c0_2] : memref<128x128xbf16, #tpu.memory_space<vmem>>, vector<128x128xbf16>
    %cst = arith.constant dense<0.000000e+00> : vector<16x128xf32>
    %2 = tpu.matmul %0, %1, %cst {dimension_numbers = #tpu.dot_dimension_numbers<[1], [0], [0], [1], [0, 0, 1, 1], [], []>} : vector<16x128xbf16>, vector<128x128xbf16>, vector<16x128xf32> -> vector<16x128xf32>
    %c0_3 = arith.constant 0 : index
    %c0_4 = arith.constant 0 : index
    %3 = vector.load %arg5[%c0_3, %c0_4] : memref<1x128xf32, #tpu.memory_space<vmem>>, vector<1x128xf32>
    %4 = vector.broadcast %3 : vector<1x128xf32> to vector<16x128xf32>
    %5 = arith.addf %2, %4 : vector<16x128xf32>
    %c0_5 = arith.constant 0 : index
    %c0_6 = arith.constant 0 : index
    %6 = vector.load %arg6[%c0_5, %c0_6] : memref<16x128xf32, #tpu.memory_space<vmem>>, vector<16x128xf32>
    tpu.vector_store %arg6[%c0_5, %c0_6], %5 {strides = array<i32>} : memref<16x128xf32, #tpu.memory_space<vmem>>, vector<16x128xf32>,
    return
  }
  func.func @transform_0(%arg0: i32, %arg1: i32, %arg2: i32) -> (i32, i32) {
    %c0_i32 = arith.constant 0 : i32
    return %arg0, %arg2 : i32, i32
  }
  func.func @transform_1(%arg0: i32, %arg1: i32, %arg2: i32) -> (i32, i32) {
    %c0_i32 = arith.constant 0 : i32
    return %arg2, %arg1 : i32, i32
  }
  func.func @transform_2(%arg0: i32, %arg1: i32, %arg2: i32) -> (i32, i32) {
    %c0_i32 = arith.constant 0 : i32
    %c0_i32_0 = arith.constant 0 : i32
    return %c0_i32, %arg1 : i32, i32
  }
  func.func @transform_3(%arg0: i32, %arg1: i32, %arg2: i32) -> (i32, i32) {
    %c0_i32 = arith.constant 0 : i32
    return %arg0, %arg1 : i32, i32
  }
}

module attributes {stable_mosaic.version = 11 : i64} {
  func.func @_linear_kernel(%arg0: i32, %arg1: i32, %arg2: i32, %arg3: memref<16x512xbf16, #tpu.memory_space<vmem>>, %arg4: memref<512x128xbf16, #tpu.memory_space<vmem>>, %arg5: memref<1x128xf32, #tpu.memory_space<vmem>>, %arg6: memref<16x128xf32, #tpu.memory_space<vmem>>) attributes {dimension_semantics = [#tpu.dimension_semantics<parallel>, #tpu.dimension_semantics<parallel>, #tpu.dimension_semantics<arbitrary>], iteration_bounds = array<i64: 1, 1, 1>, scalar_prefetch = 0 : i64, scratch_operands = 0 : i64, tpu.core_type = #tpu.core_type<tc>, window_params = [{transform_indices = @transform_0, window_bounds = array<i64: 16, 512>}, {transform_indices = @transform_1, window_bounds = array<i64: 512, 128>}, {transform_indices = @transform_2, window_bounds = array<i64: 1, 128>}, {transform_indices = @transform_3, window_bounds = array<i64: 16, 128>}]} {
    %c0 = arith.constant 0 : index
    %c0_0 = arith.constant 0 : index
    %0 = vector.load %arg3[%c0, %c0_0] : memref<16x512xbf16, #tpu.memory_space<vmem>>, vector<16x512xbf16>
    %c0_1 = arith.constant 0 : index
    %c0_2 = arith.constant 0 : index
    %1 = vector.load %arg4[%c0_1, %c0_2] : memref<512x128xbf16, #tpu.memory_space<vmem>>, vector<512x128xbf16>
    %cst = arith.constant dense<0.000000e+00> : vector<16x128xf32>
    %2 = tpu.matmul %0, %1, %cst {dimension_numbers = #tpu.dot_dimension_numbers<[1], [0], [0], [1], [0, 0, 1, 1], [], []>} : vector<16x512xbf16>, vector<512x128xbf16>, vector<16x128xf32> -> vector<16x128xf32>
    %c0_3 = arith.constant 0 : index
    %c0_4 = arith.constant 0 : index
    %3 = vector.load %arg5[%c0_3, %c0_4] : memref<1x128xf32, #tpu.memory_space<vmem>>, vector<1x128xf32>
    %4 = vector.broadcast %3 : vector<1x128xf32> to vector<16x128xf32>
    %5 = arith.addf %2, %4 : vector<16x128xf32>
    %c0_5 = arith.constant 0 : index
    %c0_6 = arith.constant 0 : index
    %6 = vector.load %arg6[%c0_5, %c0_6] : memref<16x128xf32, #tpu.memory_space<vmem>>, vector<16x128xf32>
    tpu.vector_store %arg6[%c0_5, %c0_6], %5 {strides = array<i32>} : memref<16x128xf32, #tpu.memory_space<vmem>>, vector<16x128xf32>,
    return
  }
  func.func @transform_0(%arg0: i32, %arg1: i32, %arg2: i32) -> (i32, i32) {
    %c0_i32 = arith.constant 0 : i32
    return %arg0, %arg2 : i32, i32
  }
  func.func @transform_1(%arg0: i32, %arg1: i32, %arg2: i32) -> (i32, i32) {
    %c0_i32 = arith.constant 0 : i32
    return %arg2, %arg1 : i32, i32
  }
  func.func @transform_2(%arg0: i32, %arg1: i32, %arg2: i32) -> (i32, i32) {
    %c0_i32 = arith.constant 0 : i32
    %c0_i32_0 = arith.constant 0 : i32
    return %c0_i32, %arg1 : i32, i32
  }
  func.func @transform_3(%arg0: i32, %arg1: i32, %arg2: i32) -> (i32, i32) {
    %c0_i32 = arith.constant 0 : i32
    return %arg0, %arg1 : i32, i32
  }
}

module attributes {stable_mosaic.version = 11 : i64} {
  func.func @_ln_kernel(%arg0: i32, %arg1: memref<16x128xf32, #tpu.memory_space<vmem>>, %arg2: memref<1x128xf32, #tpu.memory_space<vmem>>, %arg3: memref<1x128xf32, #tpu.memory_space<vmem>>, %arg4: memref<16x128xbf16, #tpu.memory_space<vmem>>) attributes {dimension_semantics = [#tpu.dimension_semantics<parallel>], iteration_bounds = array<i64: 1>, scalar_prefetch = 0 : i64, scratch_operands = 0 : i64, tpu.core_type = #tpu.core_type<tc>, window_params = [{transform_indices = @transform_0, window_bounds = array<i64: 16, 128>}, {pipeline_mode = #tpu.pipeline_mode<synchronous>, transform_indices = @transform_1, window_bounds = array<i64: 1, 128>}, {pipeline_mode = #tpu.pipeline_mode<synchronous>, transform_indices = @transform_2, window_bounds = array<i64: 1, 128>}, {transform_indices = @transform_3, window_bounds = array<i64: 16, 128>}]} {
    %c0 = arith.constant 0 : index
    %c0_0 = arith.constant 0 : index
    %0 = vector.load %arg1[%c0, %c0_0] : memref<16x128xf32, #tpu.memory_space<vmem>>, vector<16x128xf32>
    %cst = arith.constant dense<0.000000e+00> : vector<16xf32>
    %1 = vector.multi_reduction <add>, %0, %cst [1] : vector<16x128xf32> to vector<16xf32>
    %2 = vector.shape_cast %1 : vector<16xf32> to vector<16x1xf32>
    %cst_1 = arith.constant 1.280000e+02 : f32
    %3 = vector.broadcast %cst_1 : f32 to vector<16x1xf32>
    %4 = arith.divf %2, %3 : vector<16x1xf32>
    %5 = vector.broadcast %4 : vector<16x1xf32> to vector<16x128xf32>
    %6 = arith.subf %0, %5 : vector<16x128xf32>
    %7 = arith.mulf %6, %6 : vector<16x128xf32>
    %cst_2 = arith.constant dense<0.000000e+00> : vector<16xf32>
    %8 = vector.multi_reduction <add>, %7, %cst_2 [1] : vector<16x128xf32> to vector<16xf32>
    %9 = vector.shape_cast %8 : vector<16xf32> to vector<16x1xf32>
    %cst_3 = arith.constant 1.280000e+02 : f32
    %10 = vector.broadcast %cst_3 : f32 to vector<16x1xf32>
    %11 = arith.divf %9, %10 : vector<16x1xf32>
    %12 = vector.broadcast %4 : vector<16x1xf32> to vector<16x128xf32>
    %13 = arith.subf %0, %12 : vector<16x128xf32>
    %cst_4 = arith.constant 9.99999974E-6 : f32
    %14 = vector.broadcast %cst_4 : f32 to vector<16x1xf32>
    %15 = arith.addf %11, %14 : vector<16x1xf32>
    %16 = math.rsqrt %15 : vector<16x1xf32>
    %17 = vector.broadcast %16 : vector<16x1xf32> to vector<16x128xf32>
    %18 = arith.mulf %13, %17 : vector<16x128xf32>
    %c0_5 = arith.constant 0 : index
    %c0_6 = arith.constant 0 : index
    %19 = vector.load %arg2[%c0_5, %c0_6] : memref<1x128xf32, #tpu.memory_space<vmem>>, vector<1x128xf32>
    %20 = vector.broadcast %19 : vector<1x128xf32> to vector<16x128xf32>
    %21 = arith.mulf %18, %20 : vector<16x128xf32>
    %c0_7 = arith.constant 0 : index
    %c0_8 = arith.constant 0 : index
    %22 = vector.load %arg3[%c0_7, %c0_8] : memref<1x128xf32, #tpu.memory_space<vmem>>, vector<1x128xf32>
    %23 = vector.broadcast %22 : vector<1x128xf32> to vector<16x128xf32>
    %24 = arith.addf %21, %23 : vector<16x128xf32>
    %25 = arith.truncf %24 : vector<16x128xf32> to vector<16x128xbf16>
    %c0_9 = arith.constant 0 : index
    %c0_10 = arith.constant 0 : index
    %26 = vector.load %arg4[%c0_9, %c0_10] : memref<16x128xbf16, #tpu.memory_space<vmem>>, vector<16x128xbf16>
    tpu.vector_store %arg4[%c0_9, %c0_10], %25 {strides = array<i32>} : memref<16x128xbf16, #tpu.memory_space<vmem>>, vector<16x128xbf16>,
    return
  }
  func.func @transform_0(%arg0: i32) -> (i32, i32) {
    %c0_i32 = arith.constant 0 : i32
    %c0_i32_0 = arith.constant 0 : i32
    return %arg0, %c0_i32 : i32, i32
  }
  func.func @transform_1(%arg0: i32) -> (i32, i32) {
    %c0_i32 = arith.constant 0 : i32
    %c0_i32_0 = arith.constant 0 : i32
    %c0_i32_1 = arith.constant 0 : i32
    return %c0_i32, %c0_i32_0 : i32, i32
  }
  func.func @transform_2(%arg0: i32) -> (i32, i32) {
    %c0_i32 = arith.constant 0 : i32
    %c0_i32_0 = arith.constant 0 : i32
    %c0_i32_1 = arith.constant 0 : i32
    return %c0_i32, %c0_i32_0 : i32, i32
  }
  func.func @transform_3(%arg0: i32) -> (i32, i32) {
    %c0_i32 = arith.constant 0 : i32
    %c0_i32_0 = arith.constant 0 : i32
    return %arg0, %c0_i32 : i32, i32
  }
}

module attributes {stable_mosaic.version = 11 : i64} {
  func.func @_linear_kernel(%arg0: i32, %arg1: i32, %arg2: i32, %arg3: memref<16x128xbf16, #tpu.memory_space<vmem>>, %arg4: memref<128x256xbf16, #tpu.memory_space<vmem>>, %arg5: memref<1x256xf32, #tpu.memory_space<vmem>>, %arg6: memref<16x256xf32, #tpu.memory_space<vmem>>) attributes {dimension_semantics = [#tpu.dimension_semantics<parallel>, #tpu.dimension_semantics<parallel>, #tpu.dimension_semantics<arbitrary>], iteration_bounds = array<i64: 1, 1, 1>, scalar_prefetch = 0 : i64, scratch_operands = 0 : i64, tpu.core_type = #tpu.core_type<tc>, window_params = [{transform_indices = @transform_0, window_bounds = array<i64: 16, 128>}, {transform_indices = @transform_1, window_bounds = array<i64: 128, 256>}, {transform_indices = @transform_2, window_bounds = array<i64: 1, 256>}, {transform_indices = @transform_3, window_bounds = array<i64: 16, 256>}]} {
    %c0 = arith.constant 0 : index
    %c0_0 = arith.constant 0 : index
    %0 = vector.load %arg3[%c0, %c0_0] : memref<16x128xbf16, #tpu.memory_space<vmem>>, vector<16x128xbf16>
    %c0_1 = arith.constant 0 : index
    %c0_2 = arith.constant 0 : index
    %1 = vector.load %arg4[%c0_1, %c0_2] : memref<128x256xbf16, #tpu.memory_space<vmem>>, vector<128x256xbf16>
    %cst = arith.constant dense<0.000000e+00> : vector<16x256xf32>
    %2 = tpu.matmul %0, %1, %cst {dimension_numbers = #tpu.dot_dimension_numbers<[1], [0], [0], [1], [0, 0, 1, 1], [], []>} : vector<16x128xbf16>, vector<128x256xbf16>, vector<16x256xf32> -> vector<16x256xf32>
    %c0_3 = arith.constant 0 : index
    %c0_4 = arith.constant 0 : index
    %3 = vector.load %arg5[%c0_3, %c0_4] : memref<1x256xf32, #tpu.memory_space<vmem>>, vector<1x256xf32>
    %4 = vector.broadcast %3 : vector<1x256xf32> to vector<16x256xf32>
    %5 = arith.addf %2, %4 : vector<16x256xf32>
    %c0_5 = arith.constant 0 : index
    %c0_6 = arith.constant 0 : index
    %6 = vector.load %arg6[%c0_5, %c0_6] : memref<16x256xf32, #tpu.memory_space<vmem>>, vector<16x256xf32>
    tpu.vector_store %arg6[%c0_5, %c0_6], %5 {strides = array<i32>} : memref<16x256xf32, #tpu.memory_space<vmem>>, vector<16x256xf32>,
    return
  }
  func.func @transform_0(%arg0: i32, %arg1: i32, %arg2: i32) -> (i32, i32) {
    %c0_i32 = arith.constant 0 : i32
    return %arg0, %arg2 : i32, i32
  }
  func.func @transform_1(%arg0: i32, %arg1: i32, %arg2: i32) -> (i32, i32) {
    %c0_i32 = arith.constant 0 : i32
    return %arg2, %arg1 : i32, i32
  }
  func.func @transform_2(%arg0: i32, %arg1: i32, %arg2: i32) -> (i32, i32) {
    %c0_i32 = arith.constant 0 : i32
    %c0_i32_0 = arith.constant 0 : i32
    return %c0_i32, %arg1 : i32, i32
  }
  func.func @transform_3(%arg0: i32, %arg1: i32, %arg2: i32) -> (i32, i32) {
    %c0_i32 = arith.constant 0 : i32
    return %arg0, %arg1 : i32, i32
  }
}

</mosaic_0001>

<bundles_post_ra>
// kernel: gpt2_lm_forward.14
= control target key start
LH: loop header
LB: loop body
LE: loop exit
PB: predicated region body
PF: predicated region fallthrough
CT: control target
= control target key end

     0   :  { %s212_s1 = inlined_call_operand.vmem [shape: bf16[128,128], index: 1, kind: input, shape index: {}]   ;;  %s213_s2 = inlined_call_operand.vmem [shape: f32[1,128], index: 2, kind: input, shape index: {}]   ;;  %s214_s0 = inlined_call_operand.vmem [shape: bf16[16,128], index: 0, kind: input, shape index: {}]   ;;  %s215_s3 = inlined_call_operand.vmem [shape: f32[16,128], index: 3, kind: output, shape index: {}]  }
   0x1   :  { %v154_v0 = vld [vmem:[%s212_s1 + $0x38] sm:$0xff]  ;;  %v153_v1 = vld [vmem:[%s212_s1 + $0x30] sm:$0xff]  ;;  %v152_v2 = vld [vmem:[%s212_s1 + $0x28] sm:$0xff] }
   0x2   :  { %90 = vmatpush.bf16.msra.mxu0 %v154_v0  ;;  %v151_v3 = vld [vmem:[%s212_s1 + $0x20] sm:$0xff]  ;;  %v150_v4 = vld [vmem:[%s212_s1 + $0x18] sm:$0xff]  ;;  %v149_v5 = vld [vmem:[%s212_s1 + $0x10] sm:$0xff] }
   0x3   :  { %v148_v6 = vld [vmem:[%s212_s1 + $0x8] sm:$0xff]  ;;  %v147_v7 = vld [vmem:[%s212_s1] sm:$0xff] }
   0x4   :  { %v146_v8 = vld [vmem:[%s214_s0] sm:$0xff] }
   0x5   :  { %v155_v9 = vld [vmem:[%s213_s2] ss:$0 sm:$0xff] }
   0x6   :  { %91 = vmatpush.bf16.msra.mxu0 %v153_v1 }
   0xa   :  { %92 = vmatpush.bf16.msra.mxu0 %v152_v2 }
   0xe   :  { %93 = vmatpush.bf16.msra.mxu0 %v151_v3 }
  0x12   :  { %94 = vmatpush.bf16.msra.mxu0 %v150_v4 }
  0x16   :  { %95 = vmatpush.bf16.msra.mxu0 %v149_v5 }
  0x1a   :  { %96 = vmatpush.bf16.msra.mxu0 %v148_v6 }
  0x1e   :  { %97 = vmatpush.bf16.msra.mxu0 %v147_v7 }
  0x21   :  { %98 = vmatmul.bf16.vlgmr.msra.gmra.mxu0 %v146_v8 }
  0x9e   :  { %v99_v10 = vpop.f32.mrf.mxu0 }
  0x9f   :  { %v100_v11 = vadd.f32 %v155_v9, %v99_v10 }
  0xa1   :  { %104 = vst [vmem:[%s215_s3] sm:$0xff] %v100_v11 }
  0xa6   :  { %v101_v12 = vpop.f32.mrf.mxu0 }
  0xa7   :  { %v102_v13 = vadd.f32 %v155_v9, %v101_v12 }
  0xa9   :  { %105 = vst [vmem:[%s215_s3 + $0x8] sm:$0xff] %v102_v13 }

// kernel: gpt2_lm_forward.15
= control target key start
LH: loop header
LB: loop body
LE: loop exit
PB: predicated region body
PF: predicated region fallthrough
CT: control target
= control target key end

     0   :  { %v609_v2 = vmov 128.0   ;;  %s896_s0 = inlined_call_operand.vmem [shape: f32[16,128], index: 0, kind: input, shape index: {}]   ;;  %s897_s1 = inlined_call_operand.vmem [shape: f32[1,128], index: 1, kind: input, shape index: {}]   ;;  %s898_s2 = inlined_call_operand.vmem [shape: f32[1,128], index: 2, kind: input, shape index: {}]   ;;  %s899_s3 = inlined_call_operand.vmem [shape: bf16[128,512], index: 3, kind: input, shape index: {}]   ;;  %s900_s4 = inlined_call_operand.vmem [shape: f32[1,512], index: 4, kind: input, shape index: {}]   ;;  %s901_s5 = inlined_call_operand.vmem [shape: bf16[16,512], index: 5, kind: output, shape index: {}]  }
   0x1   :  { %v20_v0 = vld [vmem:[%s896_s0] sm:$0xff]  ;;  %v21_v1 = vld [vmem:[%s896_s0 + $0x8] sm:$0xff]  ;;  %587 = vrcp.f32 %v609_v2  ;;  %v582_v18 = vld [vmem:[%s899_s3 + $0xec] sm:$0xf0] }
   0x2   :  { %22 = vadd.xlane.f32.xlu0 %v20_v0  ;;  %v538_v17 = vld [vmem:[%s899_s3 + $0xe0] sm:$0xf]  ;;  %v580_v19 = vld [vmem:[%s899_s3 + $0xe4] sm:$0xf]  ;;  %v540_v21 = vld [vmem:[%s899_s3 + $0xf0] sm:$0xf0] }
   0x3   :  { %v539_v20 = vor.u32 %v582_v18, %v538_v17  ;;  %v546_v22 = vld [vmem:[%s899_s3 + $0xe8] sm:$0xf]  ;;  %v583_v23 = vld [vmem:[%s899_s3 + $0xf4] sm:$0xf0]  ;;  %v543_v24 = vor.u32 %v580_v19, %v540_v21  ;;  %v581_v26 = vld [vmem:[%s899_s3 + $0xec] sm:$0xf] }
   0x4   :  { %v547_v25 = vor.u32 %v583_v23, %v546_v22  ;;  %v548_v27 = vld [vmem:[%s899_s3 + $0xf8] sm:$0xf0]  ;;  %v522_v29 = vld [vmem:[%s899_s3 + $0xc0] sm:$0xf]  ;;  %v578_v30 = vld [vmem:[%s899_s3 + $0xcc] sm:$0xf0] }
   0x5   :  { %284 = vmatpush.bf16.msra.mxu0 %v539_v20  ;;  %v551_v28 = vor.u32 %v581_v26, %v548_v27  ;;  %298 = vmatpush.bf16.msra.mxu1 %v543_v24  ;;  %v576_v31 = vld [vmem:[%s899_s3 + $0xc4] sm:$0xf]  ;;  %v523_v32 = vor.u32 %v578_v30, %v522_v29  ;;  %v524_v33 = vld [vmem:[%s899_s3 + $0xd0] sm:$0xf0]  ;;  %v530_v34 = vld [vmem:[%s899_s3 + $0xc8] sm:$0xf] }
   0x6   :  { %312 = vmatpush.bf16.msra.mxu2 %v547_v25  ;;  %v579_v35 = vld [vmem:[%s899_s3 + $0xd4] sm:$0xf0]  ;;  %v527_v36 = vor.u32 %v576_v31, %v524_v33  ;;  %v577_v38 = vld [vmem:[%s899_s3 + $0xcc] sm:$0xf]  ;;  %v532_v39 = vld [vmem:[%s899_s3 + $0xd8] sm:$0xf0] }
   0x7   :  { %v588_v3 = vpop.eup %587  ;;  %326 = vmatpush.bf16.msra.mxu3 %v551_v28  ;;  %v531_v37 = vor.u32 %v579_v35, %v530_v34  ;;  %v535_v40 = vor.u32 %v577_v38, %v532_v39  ;;  %v506_v41 = vld [vmem:[%s899_s3 + $0xa0] sm:$0xf]  ;;  %v574_v42 = vld [vmem:[%s899_s3 + $0xac] sm:$0xf0]  ;;  %v572_v43 = vld [vmem:[%s899_s3 + $0xa4] sm:$0xf] }
   0x8   :  { %v27_v4 = vmul.f32 128.0, %v588_v3  ;;  %vm31_vm0 = vweird.f32 %v588_v3  ;;  %v507_v44 = vor.u32 %v574_v42, %v506_v41  ;;  %v508_v45 = vld [vmem:[%s899_s3 + $0xb0] sm:$0xf0]  ;;  %v514_v46 = vld [vmem:[%s899_s3 + $0xa8] sm:$0xf] }
   0x9   :  { %285 = vmatpush.bf16.msra.mxu0 %v523_v32  ;;  %299 = vmatpush.bf16.msra.mxu1 %v527_v36  ;;  %v575_v47 = vld [vmem:[%s899_s3 + $0xb4] sm:$0xf0]  ;;  %v511_v48 = vor.u32 %v572_v43, %v508_v45  ;;  %v573_v50 = vld [vmem:[%s899_s3 + $0xac] sm:$0xf]  ;;  %v516_v51 = vld [vmem:[%s899_s3 + $0xb8] sm:$0xf0] }
   0xa   :  { %24 = vadd.xlane.f32.xlu0 %v21_v1  ;;  %v28_v5 = vsub.f32 1.0, %v27_v4  ;;  %313 = vmatpush.bf16.msra.mxu2 %v531_v37  ;;  %v515_v49 = vor.u32 %v575_v47, %v514_v46  ;;  %v519_v52 = vor.u32 %v573_v50, %v516_v51  ;;  %v490_v53 = vld [vmem:[%s899_s3 + $0x80] sm:$0xf]  ;;  %v570_v54 = vld [vmem:[%s899_s3 + $0x8c] sm:$0xf0] }
   0xb   :  { %327 = vmatpush.bf16.msra.mxu3 %v535_v40  ;;  %v568_v55 = vld [vmem:[%s899_s3 + $0x84] sm:$0xf]  ;;  %v491_v56 = vor.u32 %v570_v54, %v490_v53  ;;  %v492_v57 = vld [vmem:[%s899_s3 + $0x90] sm:$0xf0]  ;;  %v498_v58 = vld [vmem:[%s899_s3 + $0x88] sm:$0xf] }
   0xc   :  { %v29_v6 = vmul.f32 %v588_v3, %v28_v5  ;;  %v571_v59 = vld [vmem:[%s899_s3 + $0x94] sm:$0xf0]  ;;  %v495_v60 = vor.u32 %v568_v55, %v492_v57  ;;  %v569_v62 = vld [vmem:[%s899_s3 + $0x8c] sm:$0xf]  ;;  %v500_v63 = vld [vmem:[%s899_s3 + $0x98] sm:$0xf0] }
   0xd   :  { %286 = vmatpush.bf16.msra.mxu0 %v507_v44  ;;  %300 = vmatpush.bf16.msra.mxu1 %v511_v48  ;;  %v499_v61 = vor.u32 %v571_v59, %v498_v58  ;;  %v566_v2 = vld [vmem:[%s899_s3 + $0x6c] sm:$0xf0]  ;;  %v476_v5 = vld [vmem:[%s899_s3 + $0x70] sm:$0xf0]  ;;  %v560_v18 = vld [vmem:[%s899_s3 + $0x44] sm:$0xf] }
   0xe   :  { %v30_v7 = vadd.f32 %v588_v3, %v29_v6  ;;  %314 = vmatpush.bf16.msra.mxu2 %v515_v49  ;;  %v482_v6 = vld [vmem:[%s899_s3 + $0x68] sm:$0xf]  ;;  %v562_v17 = vld [vmem:[%s899_s3 + $0x4c] sm:$0xf0]  ;;  %v460_v20 = vld [vmem:[%s899_s3 + $0x50] sm:$0xf0] }
   0xf   :  { %328 = vmatpush.bf16.msra.mxu3 %v519_v52  ;;  %v466_v21 = vld [vmem:[%s899_s3 + $0x48] sm:$0xf]  ;;  %v563_v22 = vld [vmem:[%s899_s3 + $0x54] sm:$0xf0]  ;;  %v463_v23 = vor.u32 %v560_v18, %v460_v20  ;;  %v561_v25 = vld [vmem:[%s899_s3 + $0x4c] sm:$0xf] }
  0x10   :  { %v646_v8 = vsel %vm31_vm0, %v588_v3, %v30_v7  ;;  %v564_v3 = vld [vmem:[%s899_s3 + $0x64] sm:$0xf]  ;;  %v567_v7 = vld [vmem:[%s899_s3 + $0x74] sm:$0xf0]  ;;  %v467_v24 = vor.u32 %v563_v22, %v466_v21  ;;  %v468_v26 = vld [vmem:[%s899_s3 + $0x58] sm:$0xf0] }
  0x11   :  { %287 = vmatpush.bf16.msra.mxu0 %v491_v56  ;;  %301 = vmatpush.bf16.msra.mxu1 %v495_v60  ;;  %v471_v27 = vor.u32 %v561_v25, %v468_v26  ;;  %v442_v28 = vld [vmem:[%s899_s3 + $0x20] sm:$0xf]  ;;  %v558_v29 = vld [vmem:[%s899_s3 + $0x2c] sm:$0xf0]  ;;  %v556_v30 = vld [vmem:[%s899_s3 + $0x24] sm:$0xf] }
  0x12   :  { %315 = vmatpush.bf16.msra.mxu2 %v499_v61  ;;  %v443_v31 = vor.u32 %v558_v29, %v442_v28  ;;  %v444_v32 = vld [vmem:[%s899_s3 + $0x30] sm:$0xf0]  ;;  %v450_v33 = vld [vmem:[%s899_s3 + $0x28] sm:$0xf]  ;;  %v559_v34 = vld [vmem:[%s899_s3 + $0x34] sm:$0xf0] }
  0x13   :  { %v447_v35 = vor.u32 %v556_v30, %v444_v32  ;;  %v451_v36 = vor.u32 %v559_v34, %v450_v33  ;;  %v557_v37 = vld [vmem:[%s899_s3 + $0x2c] sm:$0xf]  ;;  %v452_v38 = vld [vmem:[%s899_s3 + $0x38] sm:$0xf0]  ;;  %v426_v39 = vld [vmem:[%s899_s3] sm:$0xf] }
  0x14   :  { %v455_v41 = vor.u32 %v557_v37, %v452_v38  ;;  %v554_v42 = vld [vmem:[%s899_s3 + $0xc] sm:$0xf0]  ;;  %v552_v43 = vld [vmem:[%s899_s3 + $0x4] sm:$0xf]  ;;  %v428_v44 = vld [vmem:[%s899_s3 + $0x10] sm:$0xf0] }
  0x15   :  { %v427_v46 = vor.u32 %v554_v42, %v426_v39  ;;  %v431_v47 = vor.u32 %v552_v43, %v428_v44  ;;  %v434_v48 = vld [vmem:[%s899_s3 + $0x8] sm:$0xf]  ;;  %v555_v49 = vld [vmem:[%s899_s3 + $0x14] sm:$0xf0]  ;;  %v553_v50 = vld [vmem:[%s899_s3 + $0xc] sm:$0xf] }
  0x16   :  { %v435_v51 = vor.u32 %v555_v49, %v434_v48  ;;  %v436_v52 = vld [vmem:[%s899_s3 + $0x18] sm:$0xf0] }
  0x17   :  { %v439_v54 = vor.u32 %v553_v50, %v436_v52 }
  0x75   :  { %v23_v9 = vpop.xlane.xlu0 %22 }
  0x76   :  { %v33_v10 = vmul.f32 %v646_v8, %v23_v9  ;;  %v479_v9 = vor.u32 %v564_v3, %v476_v5 }
  0x78   :  { %v649_v11 = vsub.f32 %v20_v0, %v33_v10  ;;  %v503_v0 = vor.u32 %v569_v62, %v500_v63  ;;  %v483_v10 = vor.u32 %v567_v7, %v482_v6  ;;  %302 = vmatpush.bf16.msra.mxu1 %v479_v9  ;;  %v585_v6 = vld [vmem:[%s897_s1] ss:$0 sm:$0xff] }
  0x7a   :  { %v37_v12 = vmul.f32 %v649_v11, %v649_v11  ;;  %329 = vmatpush.bf16.msra.mxu3 %v503_v0  ;;  %316 = vmatpush.bf16.msra.mxu2 %v483_v10 }
  0x7c   :  { %39 = vadd.xlane.f32.xlu1 %v37_v12  ;;  %v565_v12 = vld [vmem:[%s899_s3 + $0x6c] sm:$0xf]  ;;  %303 = vmatpush.bf16.msra.mxu1 %v463_v23 }
  0x7d   :  { %v25_v13 = vpop.xlane.xlu0 %24 }
  0x7e   :  { %v34_v14 = vmul.f32 %v646_v8, %v25_v13  ;;  %v484_v13 = vld [vmem:[%s899_s3 + $0x78] sm:$0xf0]  ;;  %317 = vmatpush.bf16.msra.mxu2 %v467_v24 }
  0x80   :  { %v654_v15 = vsub.f32 %v21_v1, %v34_v14  ;;  %v474_v1 = vld [vmem:[%s899_s3 + $0x60] sm:$0xf]  ;;  %v487_v14 = vor.u32 %v565_v12, %v484_v13  ;;  %304 = vmatpush.bf16.msra.mxu1 %v447_v35 }
  0x81   :  { %v475_v4 = vor.u32 %v566_v2, %v474_v1  ;;  %v586_v13 = vld [vmem:[%s898_s2] ss:$0 sm:$0xff] }
  0x82   :  { %v38_v16 = vmul.f32 %v654_v15, %v654_v15  ;;  %330 = vmatpush.bf16.msra.mxu3 %v487_v14  ;;  %318 = vmatpush.bf16.msra.mxu2 %v451_v36 }
  0x83   :  { %288 = vmatpush.bf16.msra.mxu0 %v475_v4 }
  0x84   :  { %41 = vadd.xlane.f32.xlu1 %v38_v16  ;;  %v458_v16 = vld [vmem:[%s899_s3 + $0x40] sm:$0xf]  ;;  %305 = vmatpush.bf16.msra.mxu1 %v431_v47 }
  0x85   :  { %v459_v19 = vor.u32 %v562_v17, %v458_v16 }
  0x86   :  { %331 = vmatpush.bf16.msra.mxu3 %v471_v27  ;;  %319 = vmatpush.bf16.msra.mxu2 %v435_v51 }
  0x87   :  { %289 = vmatpush.bf16.msra.mxu0 %v459_v19 }
  0x8a   :  { %332 = vmatpush.bf16.msra.mxu3 %v455_v41 }
  0x8b   :  { %290 = vmatpush.bf16.msra.mxu0 %v443_v31 }
  0x8e   :  { %333 = vmatpush.bf16.msra.mxu3 %v439_v54 }
  0x8f   :  { %291 = vmatpush.bf16.msra.mxu0 %v427_v46 }
  0xef   :  { %v40_v40 = vpop.xlane.xlu1 %39 }
  0xf0   :  { %v43_v45 = vmul.f32 %v40_v40, %v646_v8 }
  0xf2   :  { %v45_v53 = vadd.f32 1e-05, %v43_v45 }
  0xf4   :  { %589 = vrsqrt.f32 %v45_v53  ;;  %vm53_vm2 = vweird.f32 %v45_v53 }
  0xf7   :  { %v42_v55 = vpop.xlane.xlu1 %41 }
  0xf8   :  { %v44_v56 = vmul.f32 %v42_v55, %v646_v8 }
  0xfa   :  { %v590_v57 = vpop.eup %589  ;;  %v46_v58 = vadd.f32 1e-05, %v44_v56 }
  0xfb   :  { %v48_v59 = vmul.f32 %v590_v57, %v45_v53  ;;  %vm54_vm1 = vweird.f32 %v590_v57 }
  0xfc   :  { %591 = vrsqrt.f32 %v46_v58  ;;  %vm55_vm3 = vmor %vm53_vm2, %vm54_vm1  ;;  %vm63_vm5 = vweird.f32 %v46_v58 }
  0xfd   :  { %v49_v60 = vmul.f32 %v590_v57, %v48_v59 }
  0xff   :  { %v50_v61 = vmul.f32 0.5, %v49_v60 }
 0x101   :  { %v51_v62 = vsub.f32 1.5, %v50_v61 }
 0x102   :  { %v592_v63 = vpop.eup %591 }
 0x103   :  { %v52_v0 = vmul.f32 %v590_v57, %v51_v62  ;;  %v58_v1 = vmul.f32 %v592_v63, %v46_v58  ;;  %vm64_vm4 = vweird.f32 %v592_v63 }
 0x104   :  { %vm65_vm6 = vmor %vm63_vm5, %vm64_vm4 }
 0x105   :  { %v59_v2 = vmul.f32 %v592_v63, %v58_v1  ;;  %v56_v3 = vsel %vm55_vm3, %v590_v57, %v52_v0 }
 0x106   :  { %v67_v8 = vmul.f32 %v56_v3, %v649_v11  ;;  %v114_v11 = vld [vmem:[%s900_s4] sm:$0xf] }
 0x107   :  { %v60_v4 = vmul.f32 0.5, %v59_v2  ;;  %v116_v19 = vperm.slane %v114_v11, 0  ;;  %v117_v20 = vperm.slane %v114_v11, 1  ;;  %v118_v26 = vperm.slane %v114_v11, 2 }
 0x108   :  { %v73_v12 = vmul.f32 %v585_v6, %v67_v8  ;;  %v119_v27 = vperm.slane %v114_v11, 3 }
 0x109   :  { %v61_v5 = vsub.f32 1.5, %v60_v4 }
 0x10a   :  { %v79_v16 = vadd.f32 %v586_v13, %v73_v12 }
 0x10b   :  { %v62_v7 = vmul.f32 %v592_v63, %v61_v5 }
 0x10d   :  { %v66_v9 = vsel %vm65_vm6, %v592_v63, %v62_v7 }
 0x10e   :  { %v68_v10 = vmul.f32 %v66_v9, %v654_v15 }
 0x110   :  { %v74_v14 = vmul.f32 %v585_v6, %v68_v10 }
 0x112   :  { %v80_v17 = vadd.f32 %v586_v13, %v74_v14 }
 0x114   :  { %v81_v18 = vpack.c.bf16 %v80_v17, %v79_v16 }
 0x116   :  { %292 = vmatmul.bf16.vlgmr.msra.gmra.mxu0 %v81_v18  ;;  %306 = vmatmul.bf16.vlgmr.msra.gmra.mxu1 %v81_v18 }
 0x117   :  { %320 = vmatmul.bf16.vlgmr.msra.gmra.mxu2 %v81_v18  ;;  %334 = vmatmul.bf16.vlgmr.msra.gmra.mxu3 %v81_v18 }
 0x193   :  { %v293_v15 = vpop.f32.mrf.mxu0  ;;  %v307_v21 = vpop.f32.mrf.mxu1 }
 0x194   :  { %v294_v22 = vadd.f32 %v293_v15, %v116_v19  ;;  %v308_v23 = vadd.f32 %v307_v21, %v117_v20 }
 0x196   :  { %v348_v24 = vmul.f32 0.044715, %v294_v22  ;;  %v349_v25 = vmul.f32 0.044715, %v308_v23  ;;  %v340_v2 = vmul.f32 0.5, %v294_v22  ;;  %v341_v7 = vmul.f32 0.5, %v308_v23 }
 0x198   :  { %v356_v28 = vmul.f32 %v348_v24, %v294_v22  ;;  %v357_v29 = vmul.f32 %v349_v25, %v308_v23 }
 0x19a   :  { %v364_v30 = vmul.f32 %v356_v28, %v294_v22  ;;  %v365_v31 = vmul.f32 %v357_v29, %v308_v23  ;;  %v321_v32 = vpop.f32.mrf.mxu2  ;;  %v335_v33 = vpop.f32.mrf.mxu3 }
 0x19b   :  { %v322_v34 = vadd.f32 %v321_v32, %v118_v26  ;;  %v863_v35 = vadd.f32 %v335_v33, %v119_v27  ;;  %v295_v36 = vpop.f32.mrf.mxu0  ;;  %v309_v37 = vpop.f32.mrf.mxu1 }
 0x19c   :  { %v372_v38 = vadd.f32 %v364_v30, %v294_v22  ;;  %v373_v39 = vadd.f32 %v365_v31, %v308_v23  ;;  %v865_v40 = vadd.f32 %v295_v36, %v116_v19  ;;  %v867_v41 = vadd.f32 %v309_v37, %v117_v20 }
 0x19d   :  { %v350_v42 = vmul.f32 0.044715, %v322_v34  ;;  %v351_v43 = vmul.f32 0.044715, %v863_v35  ;;  %v342_v23 = vmul.f32 0.5, %v322_v34 }
 0x19e   :  { %v380_v44 = vmul.f32 0.7978846, %v372_v38  ;;  %v381_v45 = vmul.f32 0.7978846, %v373_v39  ;;  %v352_v48 = vmul.f32 0.044715, %v865_v40 }
 0x19f   :  { %v358_v46 = vmul.f32 %v350_v42, %v322_v34  ;;  %v359_v47 = vmul.f32 %v351_v43, %v863_v35  ;;  %v353_v49 = vmul.f32 0.044715, %v867_v41  ;;  %v344_v32 = vmul.f32 0.5, %v865_v40 }
 0x1a0   :  { %593 = vtanh.f32 %v380_v44  ;;  %v360_v52 = vmul.f32 %v352_v48, %v865_v40  ;;  %v345_v37 = vmul.f32 0.5, %v867_v41 }
 0x1a1   :  { %595 = vtanh.f32 %v381_v45  ;;  %v366_v50 = vmul.f32 %v358_v46, %v322_v34  ;;  %v367_v51 = vmul.f32 %v359_v47, %v863_v35  ;;  %v361_v53 = vmul.f32 %v353_v49, %v867_v41 }
 0x1a2   :  { %v323_v54 = vpop.f32.mrf.mxu2  ;;  %v337_v55 = vpop.f32.mrf.mxu3  ;;  %v368_v58 = vmul.f32 %v360_v52, %v865_v40 }
 0x1a3   :  { %v374_v56 = vadd.f32 %v366_v50, %v322_v34  ;;  %v375_v57 = vadd.f32 %v367_v51, %v863_v35  ;;  %v324_v59 = vadd.f32 %v323_v54, %v118_v26  ;;  %v369_v60 = vmul.f32 %v361_v53, %v867_v41 }
 0x1a4   :  { %v338_v61 = vadd.f32 %v337_v55, %v119_v27  ;;  %v376_v0 = vadd.f32 %v368_v58, %v865_v40  ;;  %v343_v27 = vmul.f32 0.5, %v863_v35 }
 0x1a5   :  { %v382_v62 = vmul.f32 0.7978846, %v374_v56  ;;  %v383_v63 = vmul.f32 0.7978846, %v375_v57  ;;  %v377_v3 = vadd.f32 %v369_v60, %v867_v41  ;;  %v354_v4 = vmul.f32 0.044715, %v324_v59 }
 0x1a6   :  { %v594_v1 = vpop.eup %593  ;;  %v355_v5 = vmul.f32 0.044715, %v338_v61  ;;  %v384_v9 = vmul.f32 0.7978846, %v376_v0  ;;  %v346_v40 = vmul.f32 0.5, %v324_v59  ;;  %v347_v46 = vmul.f32 0.5, %v338_v61 }
 0x1a7   :  { %v596_v8 = vpop.eup %595  ;;  %v396_v6 = vadd.f32 1.0, %v594_v1  ;;  %597 = vtanh.f32 %v382_v62  ;;  %v385_v12 = vmul.f32 0.7978846, %v377_v3  ;;  %v362_v13 = vmul.f32 %v354_v4, %v324_v59 }
 0x1a8   :  { %v397_v10 = vadd.f32 1.0, %v596_v8  ;;  %599 = vtanh.f32 %v383_v63  ;;  %v363_v16 = vmul.f32 %v355_v5, %v338_v61 }
 0x1a9   :  { %v404_v14 = vmul.f32 %v396_v6, %v340_v2  ;;  %601 = vtanh.f32 %v384_v9  ;;  %v370_v18 = vmul.f32 %v362_v13, %v324_v59 }
 0x1aa   :  { %v405_v17 = vmul.f32 %v397_v10, %v341_v7  ;;  %603 = vtanh.f32 %v385_v12  ;;  %v371_v11 = vmul.f32 %v363_v16, %v338_v61 }
 0x1ab   :  { %v378_v20 = vadd.f32 %v370_v18, %v324_v59 }
 0x1ac   :  { %v412_v19 = vpack.c.bf16 %v405_v17, %v404_v14  ;;  %v379_v21 = vadd.f32 %v371_v11, %v338_v61 }
 0x1ad   :  { %v598_v15 = vpop.eup %597  ;;  %v386_v25 = vmul.f32 0.7978846, %v378_v20 }
 0x1ae   :  { %v600_v22 = vpop.eup %599  ;;  %416 = vst [vmem:[%s901_s5] sm:$0xff] %v412_v19  ;;  %v398_v24 = vadd.f32 1.0, %v598_v15  ;;  %v387_v29 = vmul.f32 0.7978846, %v379_v21 }
 0x1af   :  { %v602_v26 = vpop.eup %601  ;;  %v399_v28 = vadd.f32 1.0, %v600_v22  ;;  %605 = vtanh.f32 %v386_v25 }
 0x1b0   :  { %v604_v30 = vpop.eup %603  ;;  %v406_v31 = vmul.f32 %v398_v24, %v342_v23  ;;  %v400_v33 = vadd.f32 1.0, %v602_v26  ;;  %607 = vtanh.f32 %v387_v29 }
 0x1b1   :  { %v407_v36 = vmul.f32 %v399_v28, %v343_v27  ;;  %v401_v38 = vadd.f32 1.0, %v604_v30 }
 0x1b2   :  { %v408_v39 = vmul.f32 %v400_v33, %v344_v32 }
 0x1b3   :  { %v413_v34 = vpack.c.bf16 %v407_v36, %v406_v31  ;;  %v409_v42 = vmul.f32 %v401_v38, %v345_v37 }
 0x1b5   :  { %417 = vst [vmem:[%s901_s5 + $0x8] sm:$0xff] %v413_v34  ;;  %v414_v35 = vpack.c.bf16 %v409_v42, %v408_v39  ;;  %v606_v43 = vpop.eup %605 }
 0x1b6   :  { %v608_v44 = vpop.eup %607  ;;  %v402_v45 = vadd.f32 1.0, %v606_v43 }
 0x1b7   :  { %418 = vst [vmem:[%s901_s5 + $0x10] sm:$0xff] %v414_v35  ;;  %v403_v41 = vadd.f32 1.0, %v608_v44 }
 0x1b8   :  { %v410_v47 = vmul.f32 %v402_v45, %v346_v40 }
 0x1b9   :  { %v411_v48 = vmul.f32 %v403_v41, %v347_v46 }
 0x1bb   :  { %v415_v49 = vpack.c.bf16 %v411_v48, %v410_v47 }
 0x1bd   :  { %419 = vst [vmem:[%s901_s5 + $0x18] sm:$0xff] %v415_v49 }

// kernel: gpt2_lm_forward.12
= control target key start
LH: loop header
LB: loop body
LE: loop exit
PB: predicated region body
PF: predicated region fallthrough
CT: control target
= control target key end

     0   :  { %v433_v2 = vmov 128.0   ;;  %s651_s0 = inlined_call_operand.vmem [shape: f32[16,128], index: 0, kind: input, shape index: {}]   ;;  %s652_s1 = inlined_call_operand.vmem [shape: f32[1,128], index: 1, kind: input, shape index: {}]   ;;  %s653_s2 = inlined_call_operand.vmem [shape: f32[1,128], index: 2, kind: input, shape index: {}]   ;;  %s654_s3 = inlined_call_operand.vmem [shape: bf16[128,384], index: 3, kind: input, shape index: {}]   ;;  %s655_s4 = inlined_call_operand.vmem [shape: f32[1,384], index: 4, kind: input, shape index: {}]   ;;  %s656_s5 = inlined_call_operand.vmem [shape: bf16[16,384], index: 5, kind: output, shape index: {}]  }
   0x1   :  { %v20_v0 = vld [vmem:[%s651_s0] sm:$0xff]  ;;  %v21_v1 = vld [vmem:[%s651_s0 + $0x8] sm:$0xff]  ;;  %427 = vrcp.f32 %v433_v2  ;;  %v422_v18 = vld [vmem:[%s654_s3 + $0xb0] sm:$0xf0] }
   0x2   :  { %22 = vadd.xlane.f32.xlu0 %v20_v0  ;;  %v390_v17 = vld [vmem:[%s654_s3 + $0xa8] sm:$0xf]  ;;  %v421_v19 = vld [vmem:[%s654_s3 + $0xac] sm:$0xf]  ;;  %v392_v21 = vld [vmem:[%s654_s3 + $0xb4] sm:$0xf0] }
   0x3   :  { %v391_v20 = vor.u32 %v422_v18, %v390_v17  ;;  %v398_v22 = vld [vmem:[%s654_s3 + $0xb0] sm:$0xf]  ;;  %v423_v23 = vld [vmem:[%s654_s3 + $0xb8] sm:$0xf0]  ;;  %v395_v24 = vor.u32 %v421_v19, %v392_v21  ;;  %v418_v28 = vld [vmem:[%s654_s3 + $0x94] sm:$0xf] }
   0x4   :  { %v399_v25 = vor.u32 %v423_v23, %v398_v22  ;;  %v378_v26 = vld [vmem:[%s654_s3 + $0x90] sm:$0xf]  ;;  %v419_v27 = vld [vmem:[%s654_s3 + $0x98] sm:$0xf0]  ;;  %v380_v30 = vld [vmem:[%s654_s3 + $0x9c] sm:$0xf0] }
   0x5   :  { %250 = vmatpush.bf16.msra.mxu0 %v391_v20  ;;  %264 = vmatpush.bf16.msra.mxu1 %v395_v24  ;;  %v379_v29 = vor.u32 %v419_v27, %v378_v26  ;;  %v386_v31 = vld [vmem:[%s654_s3 + $0x98] sm:$0xf]  ;;  %v420_v32 = vld [vmem:[%s654_s3 + $0xa0] sm:$0xf0]  ;;  %v383_v33 = vor.u32 %v418_v28, %v380_v30  ;;  %v415_v37 = vld [vmem:[%s654_s3 + $0x7c] sm:$0xf] }
   0x6   :  { %278 = vmatpush.bf16.msra.mxu2 %v399_v25  ;;  %v387_v34 = vor.u32 %v420_v32, %v386_v31  ;;  %v366_v35 = vld [vmem:[%s654_s3 + $0x78] sm:$0xf]  ;;  %v416_v36 = vld [vmem:[%s654_s3 + $0x80] sm:$0xf0]  ;;  %v368_v39 = vld [vmem:[%s654_s3 + $0x84] sm:$0xf0] }
   0x7   :  { %v428_v3 = vpop.eup %427  ;;  %v367_v38 = vor.u32 %v416_v36, %v366_v35  ;;  %v374_v40 = vld [vmem:[%s654_s3 + $0x80] sm:$0xf]  ;;  %v417_v41 = vld [vmem:[%s654_s3 + $0x88] sm:$0xf0]  ;;  %v371_v42 = vor.u32 %v415_v37, %v368_v39  ;;  %v412_v46 = vld [vmem:[%s654_s3 + $0x64] sm:$0xf] }
   0x8   :  { %v27_v4 = vmul.f32 128.0, %v428_v3  ;;  %vm31_vm0 = vweird.f32 %v428_v3  ;;  %v375_v43 = vor.u32 %v417_v41, %v374_v40  ;;  %v354_v44 = vld [vmem:[%s654_s3 + $0x60] sm:$0xf]  ;;  %v413_v45 = vld [vmem:[%s654_s3 + $0x68] sm:$0xf0] }
   0x9   :  { %251 = vmatpush.bf16.msra.mxu0 %v379_v29  ;;  %265 = vmatpush.bf16.msra.mxu1 %v383_v33  ;;  %v355_v47 = vor.u32 %v413_v45, %v354_v44  ;;  %v356_v48 = vld [vmem:[%s654_s3 + $0x6c] sm:$0xf0]  ;;  %v362_v49 = vld [vmem:[%s654_s3 + $0x68] sm:$0xf]  ;;  %v414_v50 = vld [vmem:[%s654_s3 + $0x70] sm:$0xf0] }
   0xa   :  { %24 = vadd.xlane.f32.xlu0 %v21_v1  ;;  %v28_v5 = vsub.f32 1.0, %v27_v4  ;;  %279 = vmatpush.bf16.msra.mxu2 %v387_v34  ;;  %v359_v51 = vor.u32 %v412_v46, %v356_v48  ;;  %v363_v52 = vor.u32 %v414_v50, %v362_v49  ;;  %v342_v53 = vld [vmem:[%s654_s3 + $0x48] sm:$0xf]  ;;  %v410_v54 = vld [vmem:[%s654_s3 + $0x50] sm:$0xf0] }
   0xb   :  { %v409_v55 = vld [vmem:[%s654_s3 + $0x4c] sm:$0xf]  ;;  %v343_v56 = vor.u32 %v410_v54, %v342_v53  ;;  %v344_v57 = vld [vmem:[%s654_s3 + $0x54] sm:$0xf0]  ;;  %v350_v58 = vld [vmem:[%s654_s3 + $0x50] sm:$0xf] }
   0xc   :  { %v29_v6 = vmul.f32 %v428_v3, %v28_v5  ;;  %v411_v59 = vld [vmem:[%s654_s3 + $0x58] sm:$0xf0]  ;;  %v347_v60 = vor.u32 %v409_v55, %v344_v57  ;;  %v330_v62 = vld [vmem:[%s654_s3 + $0x30] sm:$0xf]  ;;  %v332_v2 = vld [vmem:[%s654_s3 + $0x3c] sm:$0xf0] }
   0xd   :  { %252 = vmatpush.bf16.msra.mxu0 %v367_v38  ;;  %266 = vmatpush.bf16.msra.mxu1 %v371_v42  ;;  %v351_v61 = vor.u32 %v411_v59, %v350_v58  ;;  %v407_v63 = vld [vmem:[%s654_s3 + $0x38] sm:$0xf0]  ;;  %v408_v4 = vld [vmem:[%s654_s3 + $0x40] sm:$0xf0]  ;;  %v306_v19 = vld [vmem:[%s654_s3] sm:$0xf] }
   0xe   :  { %v30_v7 = vadd.f32 %v428_v3, %v29_v6  ;;  %280 = vmatpush.bf16.msra.mxu2 %v375_v43  ;;  %v401_v20 = vld [vmem:[%s654_s3 + $0x8] sm:$0xf0]  ;;  %v400_v21 = vld [vmem:[%s654_s3 + $0x4] sm:$0xf]  ;;  %v308_v24 = vld [vmem:[%s654_s3 + $0xc] sm:$0xf0] }
   0xf   :  { %v307_v23 = vor.u32 %v401_v20, %v306_v19  ;;  %v314_v25 = vld [vmem:[%s654_s3 + $0x8] sm:$0xf]  ;;  %v402_v26 = vld [vmem:[%s654_s3 + $0x10] sm:$0xf0]  ;;  %v311_v28 = vor.u32 %v400_v21, %v308_v24  ;;  %v425_v46 = vld [vmem:[%s652_s1] ss:$0 sm:$0xff] }
  0x10   :  { %v470_v8 = vsel %vm31_vm0, %v428_v3, %v30_v7  ;;  %v338_v3 = vld [vmem:[%s654_s3 + $0x38] sm:$0xf]  ;;  %v315_v29 = vor.u32 %v402_v26, %v314_v25 }
  0x11   :  { %253 = vmatpush.bf16.msra.mxu0 %v355_v47  ;;  %267 = vmatpush.bf16.msra.mxu1 %v359_v51  ;;  %v339_v6 = vor.u32 %v408_v4, %v338_v3  ;;  %v318_v7 = vld [vmem:[%s654_s3 + $0x18] sm:$0xf]  ;;  %v426_v51 = vld [vmem:[%s653_s2] ss:$0 sm:$0xff] }
  0x12   :  { %281 = vmatpush.bf16.msra.mxu2 %v363_v52 }
  0x15   :  { %254 = vmatpush.bf16.msra.mxu0 %v343_v56  ;;  %268 = vmatpush.bf16.msra.mxu1 %v347_v60 }
  0x16   :  { %282 = vmatpush.bf16.msra.mxu2 %v351_v61 }
  0x1a   :  { %283 = vmatpush.bf16.msra.mxu2 %v339_v6 }
  0x75   :  { %v23_v9 = vpop.xlane.xlu0 %22 }
  0x76   :  { %v33_v10 = vmul.f32 %v470_v8, %v23_v9  ;;  %v404_v9 = vld [vmem:[%s654_s3 + $0x20] sm:$0xf0] }
  0x78   :  { %v473_v11 = vsub.f32 %v20_v0, %v33_v10  ;;  %v406_v0 = vld [vmem:[%s654_s3 + $0x34] sm:$0xf]  ;;  %v403_v10 = vld [vmem:[%s654_s3 + $0x1c] sm:$0xf] }
  0x79   :  { %v335_v5 = vor.u32 %v406_v0, %v332_v2 }
  0x7a   :  { %v37_v12 = vmul.f32 %v473_v11, %v473_v11 }
  0x7b   :  { %269 = vmatpush.bf16.msra.mxu1 %v335_v5 }
  0x7c   :  { %39 = vadd.xlane.f32.xlu1 %v37_v12  ;;  %v319_v12 = vor.u32 %v404_v9, %v318_v7 }
  0x7d   :  { %v25_v13 = vpop.xlane.xlu0 %24 }
  0x7e   :  { %v34_v14 = vmul.f32 %v470_v8, %v25_v13  ;;  %v320_v13 = vld [vmem:[%s654_s3 + $0x24] sm:$0xf0] }
  0x7f   :  { %v323_v17 = vor.u32 %v403_v10, %v320_v13 }
  0x80   :  { %v478_v15 = vsub.f32 %v21_v1, %v34_v14  ;;  %v331_v1 = vor.u32 %v407_v63, %v330_v62  ;;  %v326_v14 = vld [vmem:[%s654_s3 + $0x20] sm:$0xf] }
  0x81   :  { %270 = vmatpush.bf16.msra.mxu1 %v323_v17 }
  0x82   :  { %v38_v16 = vmul.f32 %v478_v15, %v478_v15  ;;  %255 = vmatpush.bf16.msra.mxu0 %v331_v1 }
  0x84   :  { %41 = vadd.xlane.f32.xlu1 %v38_v16  ;;  %v405_v16 = vld [vmem:[%s654_s3 + $0x28] sm:$0xf0] }
  0x85   :  { %v327_v18 = vor.u32 %v405_v16, %v326_v14  ;;  %271 = vmatpush.bf16.msra.mxu1 %v311_v28 }
  0x86   :  { %256 = vmatpush.bf16.msra.mxu0 %v319_v12 }
  0x87   :  { %284 = vmatpush.bf16.msra.mxu2 %v327_v18 }
  0x8a   :  { %257 = vmatpush.bf16.msra.mxu0 %v307_v23 }
  0x8b   :  { %285 = vmatpush.bf16.msra.mxu2 %v315_v29 }
  0xef   :  { %v40_v22 = vpop.xlane.xlu1 %39 }
  0xf0   :  { %v43_v27 = vmul.f32 %v40_v22, %v470_v8 }
  0xf2   :  { %v45_v30 = vadd.f32 1e-05, %v43_v27 }
  0xf4   :  { %429 = vrsqrt.f32 %v45_v30  ;;  %vm53_vm2 = vweird.f32 %v45_v30 }
  0xf7   :  { %v42_v31 = vpop.xlane.xlu1 %41 }
  0xf8   :  { %v44_v32 = vmul.f32 %v42_v31, %v470_v8 }
  0xfa   :  { %v430_v33 = vpop.eup %429  ;;  %v46_v34 = vadd.f32 1e-05, %v44_v32 }
  0xfb   :  { %v48_v35 = vmul.f32 %v430_v33, %v45_v30  ;;  %vm54_vm1 = vweird.f32 %v430_v33 }
  0xfc   :  { %431 = vrsqrt.f32 %v46_v34  ;;  %vm55_vm3 = vmor %vm53_vm2, %vm54_vm1  ;;  %vm63_vm5 = vweird.f32 %v46_v34 }
  0xfd   :  { %v49_v36 = vmul.f32 %v430_v33, %v48_v35 }
  0xff   :  { %v50_v37 = vmul.f32 0.5, %v49_v36 }
 0x101   :  { %v51_v38 = vsub.f32 1.5, %v50_v37 }
 0x102   :  { %v432_v39 = vpop.eup %431 }
 0x103   :  { %v52_v40 = vmul.f32 %v430_v33, %v51_v38  ;;  %v58_v41 = vmul.f32 %v432_v39, %v46_v34  ;;  %vm64_vm4 = vweird.f32 %v432_v39 }
 0x104   :  { %vm65_vm6 = vmor %vm63_vm5, %vm64_vm4 }
 0x105   :  { %v59_v42 = vmul.f32 %v432_v39, %v58_v41  ;;  %v56_v43 = vsel %vm55_vm3, %v430_v33, %v52_v40 }
 0x106   :  { %v67_v8 = vmul.f32 %v56_v43, %v473_v11  ;;  %v114_v11 = vld [vmem:[%s655_s4] sm:$0x7] }
 0x107   :  { %v60_v44 = vmul.f32 0.5, %v59_v42  ;;  %v116_v56 = vperm.slane %v114_v11, 0  ;;  %v117_v57 = vperm.slane %v114_v11, 1  ;;  %v118_v62 = vperm.slane %v114_v11, 2 }
 0x108   :  { %v73_v50 = vmul.f32 %v425_v46, %v67_v8 }
 0x109   :  { %v61_v45 = vsub.f32 1.5, %v60_v44 }
 0x10a   :  { %v79_v53 = vadd.f32 %v426_v51, %v73_v50 }
 0x10b   :  { %v62_v47 = vmul.f32 %v432_v39, %v61_v45 }
 0x10d   :  { %v66_v48 = vsel %vm65_vm6, %v432_v39, %v62_v47 }
 0x10e   :  { %v68_v49 = vmul.f32 %v66_v48, %v478_v15 }
 0x110   :  { %v74_v52 = vmul.f32 %v425_v46, %v68_v49 }
 0x112   :  { %v80_v54 = vadd.f32 %v426_v51, %v74_v52 }
 0x114   :  { %v81_v55 = vpack.c.bf16 %v80_v54, %v79_v53 }
 0x116   :  { %258 = vmatmul.bf16.vlgmr.msra.gmra.mxu0 %v81_v55  ;;  %272 = vmatmul.bf16.vlgmr.msra.gmra.mxu1 %v81_v55 }
 0x117   :  { %286 = vmatmul.bf16.vlgmr.msra.gmra.mxu2 %v81_v55 }
 0x193   :  { %v259_v58 = vpop.f32.mrf.mxu0  ;;  %v273_v15 = vpop.f32.mrf.mxu1 }
 0x194   :  { %v260_v59 = vadd.f32 %v259_v58, %v116_v56  ;;  %v274_v60 = vadd.f32 %v273_v15, %v117_v57 }
 0x196   :  { %v292_v61 = vpack.c.bf16 %v274_v60, %v260_v59 }
 0x198   :  { %296 = vst [vmem:[%s656_s5] sm:$0xff] %v292_v61 }
 0x19a   :  { %v287_v63 = vpop.f32.mrf.mxu2 }
 0x19b   :  { %v288_v0 = vadd.f32 %v287_v63, %v118_v62  ;;  %v261_v1 = vpop.f32.mrf.mxu0  ;;  %v275_v2 = vpop.f32.mrf.mxu1 }
 0x19c   :  { %v262_v3 = vadd.f32 %v261_v1, %v116_v56  ;;  %v276_v4 = vadd.f32 %v275_v2, %v117_v57 }
 0x19d   :  { %v293_v5 = vpack.c.bf16 %v288_v0, %v288_v0 }
 0x19e   :  { %v294_v6 = vpack.c.bf16 %v276_v4, %v262_v3 }
 0x19f   :  { %297 = vst [vmem:[%s656_s5 + $0x8] sm:$0xf] %v293_v5 }
 0x1a0   :  { %298 = vst [vmem:[%s656_s5 + $0xc] sm:$0xff] %v294_v6 }
 0x1a2   :  { %v289_v7 = vpop.f32.mrf.mxu2 }
 0x1a3   :  { %v290_v9 = vadd.f32 %v289_v7, %v118_v62 }
 0x1a5   :  { %v295_v10 = vpack.c.bf16 %v290_v9, %v290_v9 }
 0x1a7   :  { %299 = vst [vmem:[%s656_s5 + $0x14] sm:$0xf] %v295_v10 }

// kernel: gpt2_lm_forward.13
= control target key start
LH: loop header
LB: loop body
LE: loop exit
PB: predicated region body
PF: predicated region fallthrough
CT: control target
= control target key end

     0   :  { %s1512_s12 = smov 0   ;;  %s1514_s13 = smov 0   ;;  %s1962_s0 = inlined_call_operand.vmem [shape: bf16[2,8,384], index: 0, kind: input, shape index: {}, may-alias: {0,1,2}]   ;;  %s1963_s1 = inlined_call_operand.vmem [shape: bf16[2,8,384], index: 1, kind: input, shape index: {}, may-alias: {0,1,2}]   ;;  %s1964_s2 = inlined_call_operand.vmem [shape: bf16[2,8,384], index: 2, kind: input, shape index: {}, may-alias: {0,1,2}]   ;;  %s1965_s3 = inlined_call_operand.vmem [shape: bf16[2,8,128], index: 3, kind: output, shape index: {}]  }
   0x1   :  { %s1516_s14 = smov 0  }
   0x2 LB: > { %s32_s15 = sadd.s32 1, %s1476_s13  ;;  %p1347_p0 = scmp.ge.s32.totalorder %s1480_s14, 1  ;;  %s1480_s14 = sphi %s1516_s14, %s13_s14   ;;  %s1476_s13 = sphi %s1514_s13, %s1981_s13   ;;  %s1472_s12 = sphi %s1512_s12, %s1980_s12  }
   0x3   : > { %p34_p1 = scmp.ge.s32.totalorder %s32_s15, 2  ;;  %p198_p2 = scmp.lt.s32.totalorder %s1480_s14, 3 }
   0x5   : > { %s1983_s15 = smov (%p34_p1, %s32_s15), 0  ;;  %p199_p3 = pnand %p1347_p0, %p198_p2 }
   0x6   : > { %p248_p4 = scmp.lt.s32.totalorder (!%p199_p3), %s1472_s12, 1  ;;  %s1482_s23 = smov (!%p199_p3), 112  }
   0x7   : > { %202 = sbr.rel (%p199_p3) target bundleno = 1738 (0x6ca), region = 32  ;;  %s1483_s24 = smov (!%p199_p3), 16  }
   0x8   : > { %s1485_s25 = smov (!%p199_p3), 96   ;;  %s1486_s26 = smov (!%p199_p3), 80  }
   0x9   : > { %s1487_s27 = smov (!%p199_p3), 64   ;;  %s1488_s28 = smov (!%p199_p3), 48  }
   0xa   : > { %s1491_s29 = smov (!%p199_p3), 32  }
   0xc   : > { %s1985_s12 = smov (!%p248_p4, %s1472_s12), 1  ;;  %vm329_vm0 = vcmask 130048   ;;  %vm289_vm1 = vcmask 7168   ;;  %v1484_v10 = vmov -1e+30   ;;  %v320_v13 = vlaneseq }
   0xd   : > { %s1533_s16 = smul.u32 12, %s1985_s12  ;;  %290 = vst.msk [vmem:[#allocation2] sm:$0xff] %vm289_vm1, %v1484_v10  ;;  %vm351_vm3 = vcmask 64512   ;;  %v1489_v22 = vmov 0   ;;  %v1490_v23 = vmov 0.0   ;;  %vm387_vm4 = vcmask 1043456  }
   0xe   : > { %291 = vst.msk [vmem:[#allocation2 + $0x8] sm:$0xff] %vm289_vm1, %v1484_v10  ;;  %v321_v15 = vshrl.u32 %v320_v13, 7  ;;  %v325_v16 = vand.u32 127, %v320_v13  ;;  %1407 = vset.pattern.permute.xlu0 %v1489_v22  ;;  %1408 = vset.pattern.permute.xlu2 %v1489_v22  ;;  %vm499_vm5 = vcmask 261248   ;;  %vm585_vm6 = vcmask 392448   ;;  %s1351_s6 = sshll.u32 %s1985_s12, 2 }
   0xf   : > { %s1283_s19 = scalar_lea.vmem %s1963_s1, %s1533_s16  ;;  %s256_s22 = scalar_lea.vmem %s1962_s0, %s1533_s16  ;;  %292 = vst.msk [vmem:[#allocation2 + $0x10] sm:$0xff] %vm289_vm1, %v1484_v10  ;;  %1409 = vset.pattern.permute.xlu1 %v1489_v22  ;;  %vm671_vm7 = vcmask 523648   ;;  %vm757_vm8 = vcmask 654848   ;;  %vm843_vm9 = vcmask 786048   ;;  %vm929_vm10 = vcmask 917248  }
  0x10   : > { %v1352_v0 = vld [vmem:[%s1283_s19 + $0x4] sm:$0xf]  ;;  %v314_v1 = vld [vmem:[%s256_s22] sm:$0xf]  ;;  %293 = vst.msk [vmem:[#allocation2 + $0x18] sm:$0xff] %vm289_vm1, %v1484_v10  ;;  %vm1567_vm2 = vcmp.le.s32.totalorder %v325_v16, %v321_v15  ;;  %s1289_s5 = scalar_lea.vmem %s1964_s2, %s1533_s16  ;;  %s283_s9 = scalar_lea.vmem %s1965_s3, %s1351_s6 }
  0x11   : > { %v334_v2 = vsel %vm329_vm0, %v1352_v0, 0  ;;  %v412_v3 = vunpack.c.l.b16 %v1352_v0  ;;  %v315_v4 = vunpack.c.l.bf16 %v314_v1  ;;  %294 = vst.msk [vmem:[#allocation2 + $0x20] sm:$0xff] %vm289_vm1, %v1484_v10  ;;  %v1353_v35 = vld [vmem:[%s1289_s5 + $0x8] sm:$0xf] }
  0x12   : > { %343 = vmatpush.bf16.xpose.msra.mxu0 %v334_v2  ;;  %295 = vst.msk [vmem:[#allocation2 + $0x28] sm:$0xff] %vm289_vm1, %v1484_v10  ;;  %v389_v36 = vsel %vm387_vm4, %v1353_v35, 0  ;;  %v471_v38 = vunpack.c.l.b16 %v1353_v35 }
  0x13   : > { %v1544_v5 = vpack.c.b16 %v412_v3, %v412_v3  ;;  %v316_v6 = vmul.f32 0.25, %v315_v4  ;;  %296 = vst.msk [vmem:[#allocation2 + $0x30] sm:$0xff] %vm289_vm1, %v1484_v10  ;;  %398 = vmatpush.bf16.msra.mxu1 %v389_v36 }
  0x14   : > { %297 = vst.msk [vmem:[#allocation2 + $0x38] sm:$0xff] %vm289_vm1, %v1484_v10  ;;  %v350_v24 = vld [vmem:[#allocation2] sm:$0xff]  ;;  %v1621_v39 = vpack.c.b16 %v471_v38, %v471_v38 }
  0x15   : > { %414 = vrot.lane.b32.xlu1 %v1544_v5, %s1482_s23  ;;  %v317_v7 = vpack.c.bf16 %v316_v6, %v316_v6  ;;  %306 = vst [vmem:[#allocation4] sm:$0xff] %v1490_v23  ;;  %v437_v45 = vld [vmem:[#allocation2 + $0x8] sm:$0xff] }
  0x16   : > { %298 = vst.msk [vmem:[#allocation3] sm:$0xff] %vm289_vm1, %v1490_v23  ;;  %v526_v36 = vld [vmem:[#allocation2 + $0x10] sm:$0xff] }
  0x17   : > { %v407_v8 = vunpack.c.l.b16 %v317_v7  ;;  %299 = vst.msk [vmem:[#allocation3 + $0x8] sm:$0xff] %vm289_vm1, %v1490_v23 }
  0x18   : > { %300 = vst.msk [vmem:[#allocation3 + $0x10] sm:$0xff] %vm289_vm1, %v1490_v23 }
  0x19   : > { %1354 = vmatmul.msk.bf16.vlgmr.msra.gmra.mxu0 %vm329_vm0, %v317_v7  ;;  %v1549_v9 = vpack.c.b16 %v407_v8, %v407_v8  ;;  %301 = vst.msk [vmem:[#allocation3 + $0x18] sm:$0xff] %vm289_vm1, %v1490_v23 }
  0x1a   : > { %302 = vst.msk [vmem:[#allocation3 + $0x20] sm:$0xff] %vm289_vm1, %v1490_v23 }
  0x1b   : > { %409 = vrot.lane.b32.xlu2 %v1549_v9, %s1482_s23  ;;  %303 = vst.msk [vmem:[#allocation3 + $0x28] sm:$0xff] %vm289_vm1, %v1490_v23 }
  0x1c   : > { %304 = vst.msk [vmem:[#allocation3 + $0x30] sm:$0xff] %vm289_vm1, %v1490_v23 }
  0x1d   : > { %503 = vrot.lane.b32.xlu1 %v1544_v5, %s1485_s25  ;;  %305 = vst.msk [vmem:[#allocation3 + $0x38] sm:$0xff] %vm289_vm1, %v1490_v23 }
  0x23   : > { %933 = vrot.lane.b32.xlu2 %v1544_v5, %s1483_s24 }
  0x25   : > { %501 = vrot.lane.b32.xlu1 %v1549_v9, %s1485_s25 }
  0x2d   : > { %587 = vrot.lane.b32.xlu1 %v1549_v9, %s1486_s26 }
  0x35   : > { %673 = vrot.lane.b32.xlu1 %v1549_v9, %s1487_s27 }
  0x3d   : > { %759 = vrot.lane.b32.xlu1 %v1549_v9, %s1488_s28 }
  0x45   : > { %847 = vrot.lane.b32.xlu1 %v1544_v5, %s1491_s29 }
  0x4d   : > { %845 = vrot.lane.b32.xlu1 %v1549_v9, %s1491_s29 }
  0x55   : > { %931 = vrot.lane.b32.xlu1 %v1549_v9, %s1483_s24 }
  0x5d   : > { %473 = vrot.lane.b32.xlu1 %v1621_v39, %s1482_s23 }
  0x75   : > { %v410_v14 = vpop.permute.xlu2 %409 }
  0x7d   : > { %v934_v40 = vpop.permute.xlu2 %933 }
  0x7e   : > { %v939_v56 = vsel %vm329_vm0, %v934_v40, 0 }
  0x87   : > { %v415_v11 = vpop.permute.xlu1 %414 }
  0x88   : > { %v420_v12 = vsel %vm329_vm0, %v415_v11, 0 }
  0x89   : > { %429 = vmatpush.bf16.xpose.msra.mxu2 %v420_v12 }
  0x8f   : > { %v504_v34 = vpop.permute.xlu1 %503 }
  0x90   : > { %1356 = vmatmul.msk.bf16.vlgmr.msra.gmra.mxu2 %vm329_vm0, %v410_v14  ;;  %v509_v37 = vsel %vm329_vm0, %v504_v34, 0 }
  0x91   : > { %518 = vmatpush.bf16.xpose.msrb.mxu1 %v509_v37  ;;  %v1674_v37 = vld [vmem:[#allocation2 + $0x28] sm:$0xff] }
  0x96   : > { %v345_v18 = vpop.f32.mrf.mxu0 }
  0x97   : > { %v1573_v19 = vsel %vm1567_vm2, %v345_v18, -1e+30  ;;  %v502_v42 = vpop.permute.xlu1 %501 }
  0x98   : > { %v352_v20 = vsel %vm351_vm3, %v1573_v19, -inf }
  0x99   : > { %353 = vmax.xlane.f32.xlu0 %v352_v20 }
  0x9e   : > { %v347_v21 = vpop.f32.mrf.mxu0 }
  0x9f   : > { %v588_v50 = vpop.permute.xlu1 %587 }
  0xa7   : > { %v674_v55 = vpop.permute.xlu1 %673 }
  0xaf   : > { %v760_v59 = vpop.permute.xlu1 %759 }
  0xb7   : > { %v848_v12 = vpop.permute.xlu1 %847 }
  0xb8   : > { %v853_v13 = vsel %vm329_vm0, %v848_v12, 0 }
  0xbf   : > { %v846_v16 = vpop.permute.xlu1 %845 }
  0xc7   : > { %v932_v20 = vpop.permute.xlu1 %931 }
  0xcf   : > { %v474_v23 = vpop.permute.xlu1 %473 }
 0x10c   : > { %v354_v25 = vpop.xlane.xlu0 %353 }
 0x10d   : > { %v355_v26 = vmax.f32 %v350_v24, %v354_v25 }
 0x10f   : > { %375 = vst.msk [vmem:[#allocation2] sm:$0xff] %vm289_vm1, %v355_v26  ;;  %361 = vperm.xlu0 %1407, %v355_v26   ;;  %v356_v31 = vsub.f32 %v350_v24, %v355_v26  ;;  %v479_v24 = vsel %vm387_vm4, %v474_v23, 0  ;;  %v1662_v26 = vld [vmem:[#allocation2 + $0x18] sm:$0xff] }
 0x110   : > { %488 = vmatpush.bf16.msra.mxu3 %v479_v24 }
 0x111   : > { %v357_v32 = vmul.f32 1.442695, %v356_v31  ;;  %v367_v31 = vld [vmem:[#allocation3] sm:$0xff] }
 0x113   : > { %v431_v27 = vpop.f32.mrf.mxu2  ;;  %1410 = vpow2.f32 %v357_v32 }
 0x114   : > { %v1596_v28 = vsel %vm1567_vm2, %v431_v27, -1e+30 }
 0x115   : > { %v438_v29 = vsel %vm351_vm3, %v1596_v28, -inf }
 0x116   : > { %439 = vmax.xlane.f32.xlu2 %v438_v29 }
 0x117   : > { %589 = vrot.lane.b32.xlu0 %v1544_v5, %s1486_s26 }
 0x119   : > { %v1606_v33 = vpop.eup %1410 }
 0x11a   : > { %v368_v32 = vmul.f32 %v1606_v33, %v367_v31 }
 0x11b   : > { %v433_v30 = vpop.f32.mrf.mxu2 }
 0x11f   : > { %675 = vrot.lane.b32.xlu0 %v1544_v5, %s1487_s27 }
 0x127   : > { %761 = vrot.lane.b32.xlu0 %v1544_v5, %s1488_s28 }
 0x12e   : > { %379 = vperm.xlu2 %1408, %v1606_v33  }
 0x12f   : > { %559 = vrot.lane.b32.xlu0 %v1621_v39, %s1485_s25 }
 0x181   : > { %v362_v41 = vpop.permute.xlu0 %361 }
 0x182   : > { %v364_v43 = vsub.f32 %v1573_v19, %v362_v41 }
 0x184   : > { %v365_v44 = vmul.f32 1.442695, %v364_v43 }
 0x186   : > { %1412 = vpow2.f32 %v365_v44 }
 0x189   : > { %v440_v46 = vpop.xlane.xlu2 %439  ;;  %v590_v47 = vpop.permute.xlu0 %589 }
 0x18a   : > { %v441_v48 = vmax.f32 %v437_v45, %v440_v46  ;;  %v595_v49 = vsel %vm329_vm0, %v590_v47, 0 }
 0x18b   : > { %604 = vmatpush.bf16.xpose.msrb.mxu0 %v595_v49 }
 0x18c   : > { %v1413_v51 = vpop.eup %1412  ;;  %461 = vst.msk [vmem:[#allocation2 + $0x8] sm:$0xff] %vm289_vm1, %v441_v48  ;;  %v442_v19 = vsub.f32 %v437_v45, %v441_v48 }
 0x18d   : > { %v383_v52 = vpack.c.bf16 %v1413_v51, %v1413_v51  ;;  %v369_v5 = vsel %vm351_vm3, %v1413_v51, 0.0 }
 0x18e   : > { %v443_v22 = vmul.f32 1.442695, %v442_v19 }
 0x18f   : > { %1355 = vmatmul.msk.bf16.vlgmr.msra.gmra.mxu1 %vm351_vm3, %v383_v52 }
 0x190   : > { %1414 = vpow2.f32 %v443_v22 }
 0x191   : > { %v676_v53 = vpop.permute.xlu0 %675  ;;  %v380_v60 = vpop.permute.xlu2 %379 }
 0x192   : > { %v681_v54 = vsel %vm329_vm0, %v676_v53, 0  ;;  %1360 = vmatmul.msk.bf16.vlgmr.msrb.gmra.mxu0 %vm329_vm0, %v588_v50  ;;  %v382_v61 = vmul.f32 0.0, %v380_v60 }
 0x193   : > { %690 = vmatpush.bf16.xpose.msra.mxu1 %v681_v54 }
 0x196   : > { %v1415_v25 = vpop.eup %1414 }
 0x199   : > { %v762_v57 = vpop.permute.xlu0 %761 }
 0x19a   : > { %v767_v58 = vsel %vm329_vm0, %v762_v57, 0 }
 0x19b   : > { %776 = vmatpush.bf16.xpose.msra.mxu0 %v767_v58 }
 0x19f   : > { %1358 = vmatmul.msk.bf16.vlgmr.msrb.gmra.mxu1 %vm329_vm0, %v502_v42 }
 0x1a0   : > { %862 = vmatpush.bf16.xpose.msrb.mxu1 %v853_v13 }
 0x1a2   : > { %1364 = vmatmul.msk.bf16.vlgmr.msra.gmra.mxu0 %vm329_vm0, %v760_v59 }
 0x1a3   : > { %948 = vmatpush.bf16.xpose.msrb.mxu0 %v939_v56  ;;  %v560_v56 = vpop.permute.xlu0 %559 }
 0x1a4   : > { %v565_v57 = vsel %vm387_vm4, %v560_v56, 0 }
 0x1a5   : > { %574 = vmatpush.bf16.msrb.mxu3 %v565_v57 }
 0x1af   : > { %1362 = vmatmul.msk.bf16.vlgmr.msra.gmra.mxu1 %vm329_vm0, %v674_v55 }
 0x1b2   : > { %1368 = vmatmul.msk.bf16.vlgmr.msrb.gmra.mxu0 %vm329_vm0, %v932_v20 }
 0x1bf   : > { %1366 = vmatmul.msk.bf16.vlgmr.msrb.gmra.mxu1 %vm329_vm0, %v846_v16  ;;  %v629_v16 = vld [vmem:[#allocation3 + $0x18] sm:$0xff] }
 0x20c   : > { %v400_v62 = vpop.f32.mrf.mxu1 }
 0x20d   : > { %v404_v63 = vadd.f32 %v400_v62, %v382_v61 }
 0x20f   : > { %405 = vst.msk [vmem:[#allocation4] sm:$0xff] %vm329_vm0, %v404_v63  ;;  %v606_v0 = vpop.f32.mrf.mxu0  ;;  %v454_v63 = vld [vmem:[#allocation3 + $0x8] sm:$0xff] }
 0x210   : > { %v1641_v1 = vsel %vm1567_vm2, %v606_v0, -1e+30  ;;  %v455_v0 = vmul.f32 %v1415_v25, %v454_v63 }
 0x211   : > { %v613_v2 = vsel %vm351_vm3, %v1641_v1, -inf }
 0x212   : > { %614 = vmax.xlane.f32.xlu1 %v613_v2 }
 0x214   : > { %v402_v3 = vpop.f32.mrf.mxu1 }
 0x217   : > { %v608_v4 = vpop.f32.mrf.mxu0 }
 0x218   : > { %v1703_v4 = vld [vmem:[#allocation2 + $0x20] sm:$0xff] }
 0x21a   : > { %370 = vadd.xlane.f32.xlu1 %v369_v5 }
 0x21c   : > { %v520_v6 = vpop.f32.mrf.mxu1 }
 0x21d   : > { %v1648_v7 = vsel %vm1567_vm2, %v520_v6, -1e+30 }
 0x21e   : > { %v527_v10 = vsel %vm351_vm3, %v1648_v7, -inf }
 0x21f   : > { %v778_v8 = vpop.f32.mrf.mxu0 }
 0x220   : > { %v1652_v9 = vsel %vm1567_vm2, %v778_v8, -1e+30 }
 0x221   : > { %v785_v11 = vsel %vm351_vm3, %v1652_v9, -inf }
 0x222   : > { %528 = vmax.xlane.f32.xlu1 %v527_v10  ;;  %786 = vmax.xlane.f32.xlu2 %v785_v11 }
 0x224   : > { %v522_v14 = vpop.f32.mrf.mxu1 }
 0x227   : > { %v780_v15 = vpop.f32.mrf.mxu0 }
 0x22c   : > { %v692_v18 = vpop.f32.mrf.mxu1 }
 0x22d   : > { %v1689_v50 = vsel %vm1567_vm2, %v692_v18, -1e+30 }
 0x234   : > { %v694_v21 = vpop.f32.mrf.mxu1 }
 0x235   : > { %v462_v21 = vld [vmem:[#allocation4] sm:$0xff] }
 0x23a   : > { %447 = vperm.xlu2 %1408, %v441_v48   ;;  %v1684_v48 = vpop.f32.mrf.mxu0 }
 0x23c   : > { %v864_v47 = vpop.f32.mrf.mxu1 }
 0x23d   : > { %v1716_v11 = vsel %vm1567_vm2, %v864_v47, -1e+30 }
 0x23e   : > { %v871_v12 = vsel %vm351_vm3, %v1716_v11, -inf }
 0x242   : > { %465 = vperm.xlu2 %1408, %v1415_v25   ;;  %v952_v52 = vpop.f32.mrf.mxu0 }
 0x244   : > { %v866_v51 = vpop.f32.mrf.mxu1 }
 0x285   : > { %v615_v27 = vpop.xlane.xlu1 %614 }
 0x286   : > { %v1665_v29 = vmax.f32 %v1662_v26, %v615_v27 }
 0x288   : > { %v617_v30 = vsub.f32 %v1662_v26, %v1665_v29  ;;  %636 = vst.msk [vmem:[#allocation2 + $0x18] sm:$0xff] %vm289_vm1, %v1665_v29  ;;  %622 = vperm.xlu0 %1407, %v1665_v29  }
 0x28a   : > { %v618_v13 = vmul.f32 1.442695, %v617_v30 }
 0x28d   : > { %v371_v34 = vpop.xlane.xlu1 %370 }
 0x28e   : > { %v372_v35 = vadd.f32 %v371_v34, %v368_v32  ;;  %v870_v32 = vld [vmem:[#allocation2 + $0x30] sm:$0xff] }
 0x290   : > { %374 = vst.msk [vmem:[#allocation3] sm:$0xff] %vm289_vm1, %v372_v35 }
 0x295   : > { %v529_v38 = vpop.xlane.xlu1 %528  ;;  %v787_v40 = vpop.xlane.xlu2 %786 }
 0x296   : > { %v530_v41 = vmax.f32 %v526_v36, %v529_v38  ;;  %v1677_v42 = vmax.f32 %v1674_v37, %v787_v40 }
 0x298   : > { %550 = vst.msk [vmem:[#allocation2 + $0x10] sm:$0xff] %vm289_vm1, %v530_v41  ;;  %v531_v53 = vsub.f32 %v526_v36, %v530_v41 }
 0x299   : > { %808 = vst.msk [vmem:[#allocation2 + $0x28] sm:$0xff] %vm289_vm1, %v1677_v42 }
 0x29a   : > { %v532_v54 = vmul.f32 1.442695, %v531_v53 }
 0x29d   : > { %v448_v43 = vpop.permute.xlu2 %447 }
 0x29e   : > { %v450_v33 = vsub.f32 %v1596_v28, %v448_v43  ;;  %v699_v28 = vsel %vm351_vm3, %v1689_v50, -inf }
 0x2a0   : > { %v451_v44 = vmul.f32 1.442695, %v450_v33 }
 0x2a2   : > { %1416 = vpow2.f32 %v451_v44 }
 0x2a3   : > { %1418 = vpow2.f32 %v532_v54 }
 0x2a5   : > { %v466_v14 = vpop.permute.xlu2 %465 }
 0x2a6   : > { %v468_v22 = vmul.f32 %v466_v14, %v462_v21 }
 0x2a8   : > { %v1417_v45 = vpop.eup %1416 }
 0x2a9   : > { %v469_v46 = vpack.c.bf16 %v1417_v45, %v1417_v45  ;;  %v456_v49 = vsel %vm351_vm3, %v1417_v45, 0.0  ;;  %v1693_v55 = vpop.eup %1418 }
 0x2ab   : > { %1357 = vmatmul.msk.bf16.vlgmr.msra.gmra.mxu3 %vm351_vm3, %v469_v46 }
 0x2b2   : > { %457 = vadd.xlane.f32.xlu0 %v456_v49 }
 0x2ba   : > { %700 = vmax.xlane.f32.xlu0 %v699_v28 }
 0x2ce   : > { %554 = vperm.xlu0 %1407, %v1693_v55  }
 0x2fa   : > { %v623_v58 = vpop.permute.xlu0 %622 }
 0x2fb   : > { %v625_v59 = vsub.f32 %v1641_v1, %v623_v58 }
 0x2fd   : > { %v626_v60 = vmul.f32 1.442695, %v625_v59 }
 0x2ff   : > { %1420 = vpow2.f32 %v626_v60 }
 0x300   : > { %1422 = vpow2.f32 %v618_v13 }
 0x305   : > { %v1698_v61 = vpop.eup %1420 }
 0x306   : > { %v631_v62 = vsel %vm351_vm3, %v1698_v61, 0.0  ;;  %v1723_v15 = vpop.eup %1422  ;;  %v644_v44 = vpack.c.bf16 %v1698_v61, %v1698_v61 }
 0x307   : > { %632 = vadd.xlane.f32.xlu2 %v631_v62  ;;  %v630_v18 = vmul.f32 %v1723_v15, %v629_v16 }
 0x325   : > { %v458_v2 = vpop.xlane.xlu0 %457 }
 0x326   : > { %v459_v3 = vadd.f32 %v458_v2, %v455_v0 }
 0x328   : > { %460 = vst.msk [vmem:[#allocation3 + $0x8] sm:$0xff] %vm289_vm1, %v459_v3 }
 0x32d   : > { %v701_v5 = vpop.xlane.xlu0 %700 }
 0x32e   : > { %v1706_v6 = vmax.f32 %v1703_v4, %v701_v5  ;;  %v490_v1 = vpop.f32.mrf.mxu3 }
 0x32f   : > { %495 = vrot.lane.b32.xlu2 %v490_v1, %s1483_s24 }
 0x330   : > { %v703_v8 = vsub.f32 %v1703_v4, %v1706_v6  ;;  %722 = vst.msk [vmem:[#allocation2 + $0x20] sm:$0xff] %vm289_vm1, %v1706_v6  ;;  %708 = vperm.xlu0 %1407, %v1706_v6   ;;  %v954_v4 = vsel %vm1567_vm2, %v1684_v48, -1e+30 }
 0x331   : > { %v957_v6 = vsel %vm351_vm3, %v954_v4, -inf }
 0x332   : > { %v704_v16 = vmul.f32 1.442695, %v703_v8 }
 0x336   : > { %v492_v10 = vpop.f32.mrf.mxu3 }
 0x337   : > { %536 = vperm.xlu2 %1408, %v530_v41  }
 0x340   : > { %v1738_v31 = vpop.permute.xlu0 %554 }
 0x360   : > { %872 = vmax.xlane.f32.xlu2 %v871_v12 }
 0x378   : > { %645 = vrot.lane.b32.xlu2 %v1621_v39, %s1486_s26 }
 0x37a   : > { %v633_v19 = vpop.xlane.xlu2 %632 }
 0x37b   : > { %v634_v20 = vadd.f32 %v633_v19, %v630_v18 }
 0x37d   : > { %635 = vst.msk [vmem:[#allocation3 + $0x18] sm:$0xff] %vm289_vm1, %v634_v20 }
 0x380   : > { %731 = vrot.lane.b32.xlu2 %v1621_v39, %s1487_s27 }
 0x388   : > { %794 = vperm.xlu2 %1408, %v1677_v42  }
 0x389   : > { %v496_v23 = vpop.permute.xlu2 %495 }
 0x38a   : > { %v498_v24 = vadd.f32 %v496_v23, %v468_v22  ;;  %v715_v23 = vld [vmem:[#allocation3 + $0x20] sm:$0xff] }
 0x38c   : > { %500 = vst.msk [vmem:[#allocation4] sm:$0xff] %vm499_vm5, %v498_v24 }
 0x390   : > { %817 = vrot.lane.b32.xlu2 %v1621_v39, %s1488_s28 }
 0x391   : > { %v537_v25 = vpop.permute.xlu2 %536 }
 0x392   : > { %v539_v26 = vsub.f32 %v1648_v7, %v537_v25 }
 0x394   : > { %v540_v27 = vmul.f32 1.442695, %v539_v26 }
 0x396   : > { %1424 = vpow2.f32 %v540_v27 }
 0x398   : > { %903 = vrot.lane.b32.xlu2 %v1621_v39, %s1491_s29 }
 0x39c   : > { %v1425_v29 = vpop.eup %1424 }
 0x39d   : > { %v558_v30 = vpack.c.bf16 %v1425_v29, %v1425_v29  ;;  %v545_v58 = vsel %vm351_vm3, %v1425_v29, 0.0 }
 0x39f   : > { %1359 = vmatmul.msk.bf16.vlgmr.msrb.gmra.mxu3 %vm351_vm3, %v558_v30 }
 0x3a2   : > { %v709_v34 = vpop.permute.xlu0 %708 }
 0x3a3   : > { %v711_v38 = vsub.f32 %v1689_v50, %v709_v34 }
 0x3a5   : > { %v712_v41 = vmul.f32 1.442695, %v711_v38 }
 0x3d3   : > { %v873_v35 = vpop.xlane.xlu2 %872 }
 0x3d4   : > { %v874_v36 = vmax.f32 %v870_v32, %v873_v35 }
 0x3d6   : > { %v875_v40 = vsub.f32 %v870_v32, %v874_v36  ;;  %894 = vst.msk [vmem:[#allocation2 + $0x30] sm:$0xff] %vm289_vm1, %v874_v36  ;;  %880 = vperm.xlu0 %1407, %v874_v36   ;;  %v956_v32 = vld [vmem:[#allocation2 + $0x38] sm:$0xff] }
 0x3d8   : > { %v876_v7 = vmul.f32 1.442695, %v875_v40 }
 0x3da   : > { %1426 = vpow2.f32 %v876_v7 }
 0x3db   : > { %v646_v43 = vpop.permute.xlu2 %645  ;;  %1428 = vpow2.f32 %v712_v41  ;;  %v1087_v41 = vld [vmem:[#allocation3 + $0x18] sm:$0xff] }
 0x3dc   : > { %v651_v33 = vsel %vm387_vm4, %v646_v43, 0 }
 0x3dd   : > { %660 = vmatpush.bf16.msrb.mxu2 %v651_v33 }
 0x3e0   : > { %v1745_v45 = vpop.eup %1426  ;;  %1361 = vmatmul.msk.bf16.vlgmr.msrb.gmra.mxu2 %vm351_vm3, %v644_v44 }
 0x3e1   : > { %898 = vperm.xlu2 %1408, %v1745_v45   ;;  %v1429_v46 = vpop.eup %1428 }
 0x3e2   : > { %v730_v50 = vpack.c.bf16 %v1429_v46, %v1429_v46 }
 0x3e3   : > { %v732_v47 = vpop.permute.xlu2 %731 }
 0x3e4   : > { %v737_v49 = vsel %vm387_vm4, %v732_v47, 0 }
 0x3e5   : > { %746 = vmatpush.bf16.msra.mxu3 %v737_v49 }
 0x3e8   : > { %1363 = vmatmul.msk.bf16.vlgmr.msra.gmra.mxu3 %vm351_vm3, %v730_v50 }
 0x3eb   : > { %v795_v51 = vpop.permute.xlu2 %794 }
 0x3ec   : > { %v797_v52 = vsub.f32 %v1652_v9, %v795_v51  ;;  %v717_v9 = vsel %vm351_vm3, %v1429_v46, 0.0 }
 0x3ee   : > { %v798_v28 = vmul.f32 1.442695, %v797_v52 }
 0x3f0   : > { %1430 = vpow2.f32 %v798_v28  ;;  %v801_v28 = vld [vmem:[#allocation3 + $0x28] sm:$0xff] }
 0x3f3   : > { %v818_v53 = vpop.permute.xlu2 %817 }
 0x3f4   : > { %v823_v54 = vsel %vm387_vm4, %v818_v53, 0 }
 0x3f5   : > { %832 = vmatpush.bf16.msra.mxu2 %v823_v54 }
 0x3f6   : > { %v1753_v56 = vpop.eup %1430 }
 0x3f7   : > { %v816_v57 = vpack.c.bf16 %v1753_v56, %v1753_v56  ;;  %v803_v40 = vsel %vm351_vm3, %v1753_v56, 0.0 }
 0x3f9   : > { %1365 = vmatmul.msk.bf16.vlgmr.msra.gmra.mxu2 %vm351_vm3, %v816_v57 }
 0x3fb   : > { %v904_v59 = vpop.permute.xlu2 %903 }
 0x3fc   : > { %v909_v60 = vsel %vm387_vm4, %v904_v59, 0 }
 0x3fd   : > { %918 = vmatpush.bf16.msrb.mxu3 %v909_v60 }
 0x40a   : > { %546 = vadd.xlane.f32.xlu2 %v545_v58  ;;  %v887_v58 = vld [vmem:[#allocation3 + $0x30] sm:$0xff] }
 0x40b   : > { %v888_v59 = vmul.f32 %v1745_v45, %v887_v58  ;;  %v973_v45 = vld [vmem:[#allocation3 + $0x38] sm:$0xff] }
 0x412   : > { %718 = vadd.xlane.f32.xlu2 %v717_v9 }
 0x422   : > { %v576_v61 = vpop.f32.mrf.mxu3 }
 0x42a   : > { %v578_v62 = vpop.f32.mrf.mxu3 }
 0x43b   : > { %v1766_v14 = vpop.permute.xlu2 %898 }
 0x448   : > { %v881_v63 = vpop.permute.xlu0 %880 }
 0x449   : > { %v883_v0 = vsub.f32 %v1716_v11, %v881_v63  ;;  %v543_v11 = vld [vmem:[#allocation3 + $0x10] sm:$0xff]  ;;  %v551_v63 = vld [vmem:[#allocation4] sm:$0xff] }
 0x44a   : > { %v544_v19 = vmul.f32 %v1693_v55, %v543_v11  ;;  %v789_v55 = vsub.f32 %v1674_v37, %v1677_v42 }
 0x44b   : > { %v884_v2 = vmul.f32 1.442695, %v883_v0  ;;  %v557_v0 = vmul.f32 %v1738_v31, %v551_v63  ;;  %v1021_v31 = vld [vmem:[#allocation3] sm:$0xff] }
 0x44c   : > { %v790_v8 = vmul.f32 1.442695, %v789_v55 }
 0x44d   : > { %1432 = vpow2.f32 %v884_v2 }
 0x44e   : > { %1434 = vpow2.f32 %v704_v16 }
 0x44f   : > { %1436 = vpow2.f32 %v790_v8 }
 0x453   : > { %v1433_v3 = vpop.eup %1432 }
 0x454   : > { %v902_v5 = vpack.c.bf16 %v1433_v3, %v1433_v3  ;;  %v1435_v22 = vpop.eup %1434  ;;  %v889_v7 = vsel %vm351_vm3, %v1433_v3, 0.0 }
 0x455   : > { %v716_v25 = vmul.f32 %v1435_v22, %v715_v23  ;;  %v1437_v29 = vpop.eup %1436 }
 0x456   : > { %1367 = vmatmul.msk.bf16.vlgmr.msrb.gmra.mxu3 %vm351_vm3, %v902_v5  ;;  %v802_v53 = vmul.f32 %v1437_v29, %v801_v28 }
 0x463   : > { %v662_v1 = vpop.f32.mrf.mxu2 }
 0x464   : > { %667 = vrot.lane.b32.xlu1 %v662_v1, %s1488_s28 }
 0x46b   : > { %v664_v10 = vpop.f32.mrf.mxu2  ;;  %v1764_v12 = vpop.f32.mrf.mxu3 }
 0x473   : > { %v750_v13 = vpop.f32.mrf.mxu3 }
 0x47c   : > { %v834_v18 = vpop.f32.mrf.mxu2 }
 0x47d   : > { %v547_v20 = vpop.xlane.xlu2 %546 }
 0x47e   : > { %v548_v21 = vadd.f32 %v547_v20, %v544_v19  ;;  %v1043_v20 = vld [vmem:[#allocation3 + $0x8] sm:$0xff] }
 0x480   : > { %549 = vst.msk [vmem:[#allocation3 + $0x10] sm:$0xff] %vm289_vm1, %v548_v21 }
 0x484   : > { %v836_v24 = vpop.f32.mrf.mxu2 }
 0x485   : > { %v719_v26 = vpop.xlane.xlu2 %718 }
 0x486   : > { %v720_v27 = vadd.f32 %v719_v26, %v716_v25 }
 0x487   : > { %v1065_v21 = vld [vmem:[#allocation3 + $0x10] sm:$0xff] }
 0x488   : > { %721 = vst.msk [vmem:[#allocation3 + $0x20] sm:$0xff] %vm289_vm1, %v720_v27 }
 0x48e   : > { %958 = vmax.xlane.f32.xlu1 %v957_v6 }
 0x48f   : > { %v1109_v51 = vld [vmem:[#allocation3 + $0x20] sm:$0xff] }
 0x4a7   : > { %640 = vperm.xlu1 %1409, %v1723_v15  }
 0x4af   : > { %989 = vrot.lane.b32.xlu1 %v1621_v39, %s1483_s24 }
 0x4b7   : > { %812 = vperm.xlu1 %1409, %v1437_v29  }
 0x4bf   : > { %839 = vrot.lane.b32.xlu1 %v834_v18, %s1486_s26 }
 0x4d6   : > { %v668_v48 = vpop.permute.xlu1 %667 }
 0x4d9   : > { %v1784_v30 = vpop.f32.mrf.mxu3 }
 0x4e1   : > { %v922_v17 = vpop.f32.mrf.mxu3 }
 0x501   : > { %v959_v34 = vpop.xlane.xlu1 %958 }
 0x502   : > { %v960_v35 = vmax.f32 %v956_v32, %v959_v34 }
 0x504   : > { %v961_v15 = vsub.f32 %v956_v32, %v960_v35  ;;  %980 = vst.msk [vmem:[#allocation2 + $0x38] sm:$0xff] %vm289_vm1, %v960_v35  ;;  %966 = vperm.xlu0 %1407, %v960_v35  }
 0x506   : > { %v962_v37 = vmul.f32 1.442695, %v961_v15 }
 0x508   : > { %1438 = vpow2.f32 %v962_v37 }
 0x50e   : > { %v1439_v42 = vpop.eup %1438 }
 0x50f   : > { %984 = vperm.xlu1 %1409, %v1439_v42   ;;  %v974_v13 = vmul.f32 %v1439_v42, %v973_v45 }
 0x519   : > { %v641_v39 = vpop.permute.xlu1 %640 }
 0x521   : > { %v990_v36 = vpop.permute.xlu1 %989 }
 0x522   : > { %v995_v38 = vsel %vm387_vm4, %v990_v36, 0  ;;  %vm1015_vm4 = vcmask 1048448  }
 0x523   : > { %1004 = vmatpush.bf16.msrb.mxu2 %v995_v38 }
 0x529   : > { %v1794_v50 = vpop.permute.xlu1 %812 }
 0x52e   : > { %804 = vadd.xlane.f32.xlu0 %v803_v40 }
 0x531   : > { %v840_v52 = vpop.permute.xlu1 %839 }
 0x539   : > { %890 = vadd.xlane.f32.xlu1 %v889_v7 }
 0x542   : > { %726 = vperm.xlu0 %1407, %v1435_v22  }
 0x54a   : > { %581 = vrot.lane.b32.xlu0 %v576_v61, %s1491_s29 }
 0x552   : > { %1090 = vperm.xlu1 %1409, %v1087_v41  }
 0x576   : > { %v967_v43 = vpop.permute.xlu0 %966 }
 0x577   : > { %v969_v33 = vsub.f32 %v954_v4, %v967_v43 }
 0x579   : > { %v970_v44 = vmul.f32 1.442695, %v969_v33 }
 0x57b   : > { %1440 = vpow2.f32 %v970_v44 }
 0x581   : > { %v1441_v46 = vpop.eup %1440  ;;  %v1796_v57 = vpop.permute.xlu1 %984 }
 0x582   : > { %v988_v47 = vpack.c.bf16 %v1441_v46, %v1441_v46  ;;  %v975_v49 = vsel %vm351_vm3, %v1441_v46, 0.0 }
 0x583   : > { %976 = vadd.xlane.f32.xlu2 %v975_v49 }
 0x584   : > { %1369 = vmatmul.msk.bf16.vlgmr.msrb.gmra.mxu2 %vm351_vm3, %v988_v47 }
 0x59b   : > { %1112 = vperm.xlu2 %1408, %v1109_v51  }
 0x5a1   : > { %v805_v54 = vpop.xlane.xlu0 %804 }
 0x5a2   : > { %v806_v56 = vadd.f32 %v805_v54, %v802_v53 }
 0x5a4   : > { %807 = vst.msk [vmem:[#allocation3 + $0x28] sm:$0xff] %vm289_vm1, %v806_v56 }
 0x5ab   : > { %v1131_v22 = vld [vmem:[#allocation3 + $0x28] sm:$0xff] }
 0x5ac   : > { %v891_v60 = vpop.xlane.xlu1 %890 }
 0x5ad   : > { %v892_v9 = vadd.f32 %v891_v60, %v888_v59 }
 0x5af   : > { %893 = vst.msk [vmem:[#allocation3 + $0x30] sm:$0xff] %vm289_vm1, %v892_v9 }
 0x5b4   : > { %v727_v61 = vpop.permute.xlu0 %726 }
 0x5b6   : > { %v1153_v62 = vld [vmem:[#allocation3 + $0x30] sm:$0xff] }
 0x5b7   : > { %1156 = vperm.xlu1 %1409, %v1153_v62  }
 0x5bc   : > { %v582_v2 = vpop.permute.xlu0 %581 }
 0x5bd   : > { %v584_v3 = vadd.f32 %v582_v2, %v557_v0 }
 0x5bf   : > { %586 = vst.msk [vmem:[#allocation4] sm:$0xff] %vm585_vm6, %v584_v3 }
 0x5c4   : > { %v1091_v6 = vpop.permute.xlu1 %1090 }
 0x5c5   : > { %1442 = vrcp.f32 %v1091_v6  ;;  %v1102_v28 = vand.u32 2147483647, %v1091_v6  ;;  %v1104_v53 = vand.u32 2147483648, %v1091_v6  ;;  %vm1098_vm13 = vweird.f32 %v1091_v6 }
 0x5c6   : > { %v637_v5 = vld [vmem:[#allocation4] sm:$0xff] }
 0x5c7   : > { %v643_v1 = vmul.f32 %v641_v39, %v637_v5  ;;  %vm1103_vm2 = vcmp.eq.f32.partialorder %v1102_v28, 8.507059e+37  ;;  %v1105_v3 = vor.u32 1.1754944e-38, %v1104_v53 }
 0x5c9   : > { %v670_v10 = vadd.f32 %v668_v48, %v643_v1 }
 0x5cb   : > { %672 = vst.msk [vmem:[#allocation4] sm:$0xff] %vm671_vm7, %v670_v10  ;;  %v1443_v48 = vpop.eup %1442 }
 0x5cc   : > { %v1094_v15 = vmul.f32 %v1443_v48, %v1091_v6  ;;  %vm1099_vm11 = vweird.f32 %v1443_v48 }
 0x5cd   : > { %vm1845_vm14 = vmor %vm1098_vm13, %vm1099_vm11 }
 0x5ce   : > { %v1095_v42 = vsub.f32 1.0, %v1094_v15 }
 0x5d0   : > { %v1096_v44 = vmul.f32 %v1443_v48, %v1095_v42 }
 0x5d2   : > { %v723_v26 = vld [vmem:[#allocation4] sm:$0xff] }
 0x5d3   : > { %v729_v27 = vmul.f32 %v727_v61, %v723_v26 }
 0x5f6   : > { %v977_v16 = vpop.xlane.xlu2 %976 }
 0x5f7   : > { %v978_v11 = vadd.f32 %v977_v16, %v974_v13 }
 0x5f9   : > { %979 = vst.msk [vmem:[#allocation3 + $0x38] sm:$0xff] %vm289_vm1, %v978_v11 }
 0x5fe   : > { %v1812_v55 = vpop.permute.xlu2 %1112 }
 0x5ff   : > { %1444 = vrcp.f32 %v1812_v55  ;;  %v1126_v58 = vand.u32 2147483648, %v1812_v55  ;;  %vm1120_vm15 = vweird.f32 %v1812_v55  ;;  %v1124_v61 = vand.u32 2147483647, %v1812_v55 }
 0x600   : > { %v1175_v23 = vld [vmem:[#allocation3 + $0x38] sm:$0xff] }
 0x601   : > { %v1127_v45 = vor.u32 1.1754944e-38, %v1126_v58  ;;  %vm1125_vm3 = vcmp.eq.f32.partialorder %v1124_v61, 8.507059e+37 }
 0x605   : > { %v1445_v32 = vpop.eup %1444 }
 0x606   : > { %v1116_v37 = vmul.f32 %v1445_v32, %v1812_v55  ;;  %vm1121_vm12 = vweird.f32 %v1445_v32 }
 0x607   : > { %v1006_v18 = vpop.f32.mrf.mxu2  ;;  %vm1855_vm1 = vmor %vm1120_vm15, %vm1121_vm12 }
 0x608   : > { %1011 = vrot.lane.b32.xlu0 %v1006_v18, %s1482_s23  ;;  %v1117_v36 = vsub.f32 1.0, %v1116_v37 }
 0x60a   : > { %v1118_v47 = vmul.f32 %v1445_v32, %v1117_v36 }
 0x60c   : > { %v1119_v54 = vadd.f32 %v1445_v32, %v1118_v47 }
 0x60e   : > { %v1123_v5 = vsel %vm1855_vm1, %v1445_v32, %v1119_v54 }
 0x60f   : > { %v1008_v19 = vpop.f32.mrf.mxu2 }
 0x610   : > { %1024 = vperm.xlu0 %1407, %v1021_v31   ;;  %v1869_v31 = vsel %vm1125_vm3, %v1127_v45, %v1123_v5 }
 0x618   : > { %753 = vrot.lane.b32.xlu0 %v1764_v12, %s1487_s27 }
 0x620   : > { %1046 = vperm.xlu0 %1407, %v1043_v20  }
 0x628   : > { %1068 = vperm.xlu0 %1407, %v1065_v21  }
 0x629   : > { %v1818_v34 = vpop.permute.xlu1 %1156 }
 0x62a   : > { %vm1164_vm12 = vweird.f32 %v1818_v34  ;;  %v1170_v53 = vand.u32 2147483648, %v1818_v34 }
 0x630   : > { %925 = vrot.lane.b32.xlu0 %v1784_v30, %s1485_s25 }
 0x638   : > { %1134 = vperm.xlu0 %1407, %v1131_v22  }
 0x640   : > { %1178 = vperm.xlu0 %1407, %v1175_v23  }
 0x67a   : > { %v1808_v24 = vpop.permute.xlu0 %1011 }
 0x682   : > { %v1810_v25 = vpop.permute.xlu0 %1024 }
 0x683   : > { %1446 = vrcp.f32 %v1810_v25  ;;  %vm1032_vm5 = vweird.f32 %v1810_v25  ;;  %v1036_v22 = vand.u32 2147483647, %v1810_v25 }
 0x685   : > { %vm1037_vm15 = vcmp.eq.f32.partialorder %v1036_v22, 8.507059e+37 }
 0x689   : > { %v1827_v39 = vpop.eup %1446 }
 0x68a   : > { %v754_v4 = vpop.permute.xlu0 %753  ;;  %v1028_v49 = vmul.f32 %v1827_v39, %v1810_v25  ;;  %vm1033_vm6 = vweird.f32 %v1827_v39 }
 0x68b   : > { %v756_v12 = vadd.f32 %v754_v4, %v729_v27 }
 0x68c   : > { %v1029_v56 = vsub.f32 1.0, %v1028_v49 }
 0x68d   : > { %758 = vst.msk [vmem:[#allocation4] sm:$0xff] %vm757_vm8, %v756_v12 }
 0x68e   : > { %v1030_v1 = vmul.f32 %v1827_v39, %v1029_v56 }
 0x690   : > { %v1031_v21 = vadd.f32 %v1827_v39, %v1030_v1  ;;  %v1171_v1 = vor.u32 1.1754944e-38, %v1170_v53 }
 0x692   : > { %v1814_v8 = vpop.permute.xlu0 %1046 }
 0x693   : > { %1448 = vrcp.f32 %v1814_v8  ;;  %v1060_v27 = vand.u32 2147483648, %v1814_v8  ;;  %vm1054_vm11 = vweird.f32 %v1814_v8 }
 0x694   : > { %v809_v29 = vld [vmem:[#allocation4] sm:$0xff] }
 0x695   : > { %v815_v30 = vmul.f32 %v1794_v50, %v809_v29 }
 0x697   : > { %v842_v17 = vadd.f32 %v840_v52, %v815_v30  ;;  %v1097_v52 = vadd.f32 %v1443_v48, %v1096_v44 }
 0x699   : > { %844 = vst.msk [vmem:[#allocation4] sm:$0xff] %vm843_vm9, %v842_v17  ;;  %v1829_v40 = vpop.eup %1448  ;;  %v1101_v0 = vsel %vm1845_vm14, %v1443_v48, %v1097_v52 }
 0x69a   : > { %v1821_v35 = vpop.permute.xlu0 %1068  ;;  %v1050_v50 = vmul.f32 %v1829_v40, %v1814_v8  ;;  %v1866_v18 = vsel %vm1103_vm2, %v1105_v3, %v1101_v0  ;;  %vm1055_vm7 = vweird.f32 %v1829_v40 }
 0x69b   : > { %1450 = vrcp.f32 %v1821_v35  ;;  %v1082_v6 = vand.u32 2147483648, %v1821_v35  ;;  %vm1900_vm13 = vmor %vm1054_vm11, %vm1055_vm7  ;;  %vm1076_vm14 = vweird.f32 %v1821_v35  ;;  %v1080_v17 = vand.u32 2147483647, %v1821_v35 }
 0x69c   : > { %1452 = vrcp.f32 %v1818_v34  ;;  %v1051_v59 = vsub.f32 1.0, %v1050_v50 }
 0x69d   : > { %v1083_v36 = vor.u32 1.1754944e-38, %v1082_v6 }
 0x69e   : > { %v1052_v13 = vmul.f32 %v1829_v40, %v1051_v59 }
 0x6a0   : > { %v895_v38 = vld [vmem:[#allocation4] sm:$0xff]  ;;  %v1053_v26 = vadd.f32 %v1829_v40, %v1052_v13 }
 0x6a1   : > { %v901_v7 = vmul.f32 %v1766_v14, %v895_v38  ;;  %v1832_v41 = vpop.eup %1450 }
 0x6a2   : > { %v926_v43 = vpop.permute.xlu0 %925  ;;  %v1834_v33 = vpop.eup %1452  ;;  %v1072_v51 = vmul.f32 %v1832_v41, %v1821_v35  ;;  %vm1077_vm9 = vweird.f32 %v1832_v41  ;;  %v1061_v35 = vor.u32 1.1754944e-38, %v1060_v27 }
 0x6a3   : > { %v928_v46 = vadd.f32 %v926_v43, %v901_v7  ;;  %v1160_v14 = vmul.f32 %v1834_v33, %v1818_v34  ;;  %vm1165_vm8 = vweird.f32 %v1834_v33  ;;  %vm1913_vm1 = vmor %vm1076_vm14, %vm1077_vm9  ;;  %vm1200_vm9 = vcmask 392192  }
 0x6a4   : > { %v1073_v60 = vsub.f32 1.0, %v1072_v51  ;;  %vm1935_vm11 = vmor %vm1164_vm12, %vm1165_vm8  ;;  %vm1204_vm8 = vcmask 654336  }
 0x6a5   : > { %930 = vst.msk [vmem:[#allocation4] sm:$0xff] %vm929_vm10, %v928_v46  ;;  %v1161_v62 = vsub.f32 1.0, %v1160_v14  ;;  %vm1888_vm10 = vmor %vm1032_vm5, %vm1033_vm6  ;;  %vm1198_vm5 = vcmask 261120  }
 0x6a6   : > { %v1074_v16 = vmul.f32 %v1832_v41, %v1073_v60  ;;  %v1035_v48 = vsel %vm1888_vm10, %v1827_v39, %v1031_v21  ;;  %v1168_v60 = vand.u32 2147483647, %v1818_v34 }
 0x6a7   : > { %v1162_v19 = vmul.f32 %v1834_v33, %v1161_v62 }
 0x6a8   : > { %v1075_v4 = vadd.f32 %v1832_v41, %v1074_v16  ;;  %vm1169_vm12 = vcmp.eq.f32.partialorder %v1168_v60, 8.507059e+37 }
 0x6aa   : > { %v1851_v63 = vpop.permute.xlu0 %1134  ;;  %v1079_v42 = vsel %vm1913_vm1, %v1832_v41, %v1075_v4  ;;  %vm1206_vm1 = vcmask 785408  }
 0x6ab   : > { %1454 = vrcp.f32 %v1851_v63  ;;  %v1148_v39 = vand.u32 2147483648, %v1851_v63  ;;  %v1146_v7 = vand.u32 2147483647, %v1851_v63  ;;  %vm1142_vm6 = vweird.f32 %v1851_v63 }
 0x6ac   : > { %v981_v10 = vld [vmem:[#allocation4] sm:$0xff] }
 0x6ad   : > { %v987_v11 = vmul.f32 %v1796_v57, %v981_v10  ;;  %v1038_v57 = vand.u32 2147483648, %v1810_v25  ;;  %v1058_v25 = vand.u32 2147483647, %v1814_v8  ;;  %v1057_v8 = vsel %vm1900_vm13, %v1829_v40, %v1053_v26 }
 0x6ae   : > { %v1149_v14 = vor.u32 1.1754944e-38, %v1148_v39  ;;  %vm1147_vm10 = vcmp.eq.f32.partialorder %v1146_v7, 8.507059e+37  ;;  %vm1202_vm13 = vcmask 523264  }
 0x6af   : > { %v1014_v20 = vadd.f32 %v1808_v24, %v987_v11  ;;  %v1884_v24 = vadd.f32 %v1834_v33, %v1162_v19  ;;  %v1039_v32 = vor.u32 1.1754944e-38, %v1038_v57  ;;  %vm1059_vm3 = vcmp.eq.f32.partialorder %v1058_v25, 8.507059e+37 }
 0x6b0   : > { %v1062_v44 = vsel %vm1059_vm3, %v1061_v35, %v1057_v8  ;;  %vm1208_vm3 = vcmask 916480  }
 0x6b1   : > { %v1455_v23 = vpop.eup %1454  ;;  %1016 = vst.msk [vmem:[#allocation4] sm:$0xff] %vm1015_vm4, %v1014_v20  ;;  %v1040_v43 = vsel %vm1037_vm15, %v1039_v32, %v1035_v48  ;;  %vm1081_vm4 = vcmp.eq.f32.partialorder %v1080_v17, 8.507059e+37  ;;  %v1167_v62 = vsel %vm1935_vm11, %v1834_v33, %v1884_v24 }
 0x6b2   : > { %v1138_v55 = vmul.f32 %v1455_v23, %v1851_v63  ;;  %v1895_v29 = vpop.permute.xlu0 %1178  ;;  %vm1143_vm2 = vweird.f32 %v1455_v23  ;;  %v1084_v46 = vsel %vm1081_vm4, %v1083_v36, %v1079_v42  ;;  %v1172_v13 = vsel %vm1169_vm12, %v1171_v1, %v1167_v62 }
 0x6b3   : > { %1456 = vrcp.f32 %v1895_v29  ;;  %vm1144_vm7 = vmor %vm1142_vm6, %vm1143_vm2  ;;  %v1192_v2 = vand.u32 2147483648, %v1895_v29  ;;  %v1190_v34 = vand.u32 2147483647, %v1895_v29  ;;  %vm1186_vm14 = vweird.f32 %v1895_v29 }
 0x6b4   : > { %v1139_v37 = vsub.f32 1.0, %v1138_v55 }
 0x6b5   : > { %v1193_v33 = vor.u32 1.1754944e-38, %v1192_v2  ;;  %vm1191_vm2 = vcmp.eq.f32.partialorder %v1190_v34, 8.507059e+37 }
 0x6b6   : > { %v1140_v38 = vmul.f32 %v1455_v23, %v1139_v37 }
 0x6b8   : > { %v1020_v47 = vld [vmem:[#allocation4] sm:$0xff]  ;;  %v1141_v40 = vadd.f32 %v1455_v23, %v1140_v38 }
 0x6b9   : > { %v1457_v49 = vpop.eup %1456  ;;  %v1041_v50 = vmul.f32 %v1040_v43, %v1020_v47  ;;  %v1063_v41 = vmul.f32 %v1062_v44, %v1020_v47  ;;  %v1085_v51 = vmul.f32 %v1084_v46, %v1020_v47  ;;  %v1107_v54 = vmul.f32 %v1866_v18, %v1020_v47 }
 0x6ba   : > { %v1145_v52 = vsel %vm1144_vm7, %v1455_v23, %v1141_v40  ;;  %v1182_v28 = vmul.f32 %v1457_v49, %v1895_v29  ;;  %v1129_v63 = vmul.f32 %v1869_v31, %v1020_v47  ;;  %v1173_v18 = vmul.f32 %v1172_v13, %v1020_v47 }
 0x6bb   : > { %v1150_v56 = vsel %vm1147_vm10, %v1149_v14, %v1145_v52  ;;  %v1197_v58 = vsel %vm329_vm0, %v1041_v50, %v1063_v41  ;;  %vm1187_vm0 = vweird.f32 %v1457_v49 }
 0x6bc   : > { %v1199_v9 = vsel %vm1198_vm5, %v1197_v58, %v1085_v51  ;;  %v1183_v61 = vsub.f32 1.0, %v1182_v28  ;;  %v1151_v3 = vmul.f32 %v1150_v56, %v1020_v47  ;;  %vm1188_vm15 = vmor %vm1186_vm14, %vm1187_vm0 }
 0x6bd   : > { %v1201_v0 = vsel %vm1200_vm9, %v1199_v9, %v1107_v54 }
 0x6be   : > { %v1184_v5 = vmul.f32 %v1457_v49, %v1183_v61  ;;  %v1203_v10 = vsel %vm1202_vm13, %v1201_v0, %v1129_v63 }
 0x6bf   : > { %v1205_v16 = vsel %vm1204_vm8, %v1203_v10, %v1151_v3 }
 0x6c0   : > { %v1185_v45 = vadd.f32 %v1457_v49, %v1184_v5  ;;  %v1207_v20 = vsel %vm1206_vm1, %v1205_v16, %v1173_v18 }
 0x6c2   : > { %v1189_v11 = vsel %vm1188_vm15, %v1457_v49, %v1185_v45 }
 0x6c3   : > { %v1194_v19 = vsel %vm1191_vm2, %v1193_v33, %v1189_v11 }
 0x6c4   : > { %v1195_v31 = vmul.f32 %v1194_v19, %v1020_v47 }
 0x6c6   : > { %v1209_v21 = vsel %vm1208_vm3, %v1207_v20, %v1195_v31 }
 0x6c7   : > { %v1210_v22 = vpack.c.bf16 %v1209_v21, %v1209_v21 }
 0x6c9   : > { %1211 = vst [vmem:[%s283_s9] sm:$0xf] %v1210_v22 }
 0x6ca PF: > { %s13_s14 = sadd.s32 1, %s1480_s14   ;;  %s1980_s12 = smov %s1476_s13 }
 0x6cb   : > { %p10_p5 = scmp.ge.s32.totalorder %s13_s14, 4   ;;  %s1981_s13 = smov %s1983_s15 }
 0x6cd   :  { %12 = sbr.rel (!%p10_p5) target bundleno = 2 (0x2), region = 101 }

// kernel: gpt2_lm_forward.22
= control target key start
LH: loop header
LB: loop body
LE: loop exit
PB: predicated region body
PF: predicated region fallthrough
CT: control target
= control target key end

     0   :  { %v97_v2 = vmov 128.0   ;;  %s133_s0 = inlined_call_operand.vmem [shape: f32[16,128], index: 0, kind: input, shape index: {}]   ;;  %s134_s1 = inlined_call_operand.vmem [shape: f32[1,128], index: 1, kind: input, shape index: {}]   ;;  %s135_s2 = inlined_call_operand.vmem [shape: f32[1,128], index: 2, kind: input, shape index: {}]   ;;  %s136_s3 = inlined_call_operand.vmem [shape: bf16[16,128], index: 3, kind: output, shape index: {}]  }
   0x1   :  { %v14_v0 = vld [vmem:[%s133_s0] sm:$0xff]  ;;  %v15_v1 = vld [vmem:[%s133_s0 + $0x8] sm:$0xff]  ;;  %91 = vrcp.f32 %v97_v2 }
   0x2   :  { %16 = vadd.xlane.f32.xlu0 %v14_v0  ;;  %v89_v35 = vld [vmem:[%s134_s1] ss:$0 sm:$0xff] }
   0x3   :  { %v90_v39 = vld [vmem:[%s135_s2] ss:$0 sm:$0xff] }
   0x7   :  { %v92_v3 = vpop.eup %91 }
   0x8   :  { %v21_v4 = vmul.f32 128.0, %v92_v3  ;;  %vm25_vm0 = vweird.f32 %v92_v3 }
   0xa   :  { %18 = vadd.xlane.f32.xlu0 %v15_v1  ;;  %v22_v5 = vsub.f32 1.0, %v21_v4 }
   0xc   :  { %v23_v6 = vmul.f32 %v92_v3, %v22_v5 }
   0xe   :  { %v24_v7 = vadd.f32 %v92_v3, %v23_v6 }
  0x10   :  { %v26_v8 = vsel %vm25_vm0, %v92_v3, %v24_v7 }
  0x75   :  { %v17_v9 = vpop.xlane.xlu0 %16 }
  0x76   :  { %v27_v10 = vmul.f32 %v26_v8, %v17_v9 }
  0x78   :  { %v29_v11 = vsub.f32 %v14_v0, %v27_v10 }
  0x7a   :  { %v31_v12 = vmul.f32 %v29_v11, %v29_v11 }
  0x7c   :  { %33 = vadd.xlane.f32.xlu1 %v31_v12 }
  0x7d   :  { %v19_v13 = vpop.xlane.xlu0 %18 }
  0x7e   :  { %v28_v14 = vmul.f32 %v26_v8, %v19_v13 }
  0x80   :  { %v30_v15 = vsub.f32 %v15_v1, %v28_v14 }
  0x82   :  { %v32_v16 = vmul.f32 %v30_v15, %v30_v15 }
  0x84   :  { %35 = vadd.xlane.f32.xlu1 %v32_v16 }
  0xef   :  { %v34_v17 = vpop.xlane.xlu1 %33 }
  0xf0   :  { %v37_v18 = vmul.f32 %v34_v17, %v26_v8 }
  0xf2   :  { %v39_v19 = vadd.f32 1e-05, %v37_v18 }
  0xf4   :  { %93 = vrsqrt.f32 %v39_v19  ;;  %vm47_vm2 = vweird.f32 %v39_v19 }
  0xf7   :  { %v36_v20 = vpop.xlane.xlu1 %35 }
  0xf8   :  { %v38_v21 = vmul.f32 %v36_v20, %v26_v8 }
  0xfa   :  { %v94_v22 = vpop.eup %93  ;;  %v40_v23 = vadd.f32 1e-05, %v38_v21 }
  0xfb   :  { %v42_v24 = vmul.f32 %v94_v22, %v39_v19  ;;  %vm48_vm1 = vweird.f32 %v94_v22 }
  0xfc   :  { %95 = vrsqrt.f32 %v40_v23  ;;  %vm49_vm3 = vmor %vm47_vm2, %vm48_vm1  ;;  %vm57_vm5 = vweird.f32 %v40_v23 }
  0xfd   :  { %v43_v25 = vmul.f32 %v94_v22, %v42_v24 }
  0xff   :  { %v44_v26 = vmul.f32 0.5, %v43_v25 }
 0x101   :  { %v45_v27 = vsub.f32 1.5, %v44_v26 }
 0x102   :  { %v96_v28 = vpop.eup %95 }
 0x103   :  { %v46_v29 = vmul.f32 %v94_v22, %v45_v27  ;;  %v52_v30 = vmul.f32 %v96_v28, %v40_v23  ;;  %vm58_vm4 = vweird.f32 %v96_v28 }
 0x104   :  { %vm59_vm6 = vmor %vm57_vm5, %vm58_vm4 }
 0x105   :  { %v53_v31 = vmul.f32 %v96_v28, %v52_v30  ;;  %v50_v32 = vsel %vm49_vm3, %v94_v22, %v46_v29 }
 0x106   :  { %v61_v36 = vmul.f32 %v50_v32, %v29_v11 }
 0x107   :  { %v54_v33 = vmul.f32 0.5, %v53_v31 }
 0x108   :  { %v67_v40 = vmul.f32 %v89_v35, %v61_v36 }
 0x109   :  { %v55_v34 = vsub.f32 1.5, %v54_v33 }
 0x10a   :  { %v73_v43 = vadd.f32 %v90_v39, %v67_v40 }
 0x10b   :  { %v56_v37 = vmul.f32 %v96_v28, %v55_v34 }
 0x10d   :  { %v60_v38 = vsel %vm59_vm6, %v96_v28, %v56_v37 }
 0x10e   :  { %v62_v41 = vmul.f32 %v60_v38, %v30_v15 }
 0x110   :  { %v68_v42 = vmul.f32 %v89_v35, %v62_v41 }
 0x112   :  { %v74_v44 = vadd.f32 %v90_v39, %v68_v42 }
 0x114   :  { %v86_v45 = vpack.c.bf16 %v74_v44, %v73_v43 }
 0x116   :  { %87 = vst [vmem:[%s136_s3] sm:$0xff] %v86_v45  }

// kernel: gpt2_lm_forward.16
= control target key start
LH: loop header
LB: loop body
LE: loop exit
PB: predicated region body
PF: predicated region fallthrough
CT: control target
= control target key end

     0   :  { %s690_s1 = inlined_call_operand.vmem [shape: bf16[512,128], index: 1, kind: input, shape index: {}]   ;;  %s691_s2 = inlined_call_operand.vmem [shape: f32[1,128], index: 2, kind: input, shape index: {}]   ;;  %s692_s0 = inlined_call_operand.vmem [shape: bf16[16,512], index: 0, kind: input, shape index: {}]   ;;  %s693_s3 = inlined_call_operand.vmem [shape: f32[16,128], index: 3, kind: output, shape index: {}]  }
   0x1   :  { %v515_v0 = vld [vmem:[%s690_s1 + $0x38] sm:$0xff]  ;;  %v514_v4 = vld [vmem:[%s690_s1 + $0x30] sm:$0xff]  ;;  %v513_v8 = vld [vmem:[%s690_s1 + $0x28] sm:$0xff] }
   0x2   :  { %v523_v1 = vld [vmem:[%s690_s1 + $0x78] sm:$0xff]  ;;  %298 = vmatpush.bf16.msra.mxu0 %v515_v0  ;;  %v522_v5 = vld [vmem:[%s690_s1 + $0x70] sm:$0xff]  ;;  %v521_v9 = vld [vmem:[%s690_s1 + $0x68] sm:$0xff] }
   0x3   :  { %v531_v2 = vld [vmem:[%s690_s1 + $0xb8] sm:$0xff]  ;;  %312 = vmatpush.bf16.msra.mxu1 %v523_v1  ;;  %v530_v6 = vld [vmem:[%s690_s1 + $0xb0] sm:$0xff]  ;;  %v529_v10 = vld [vmem:[%s690_s1 + $0xa8] sm:$0xff] }
   0x4   :  { %v539_v3 = vld [vmem:[%s690_s1 + $0xf8] sm:$0xff]  ;;  %326 = vmatpush.bf16.msra.mxu2 %v531_v2  ;;  %v538_v7 = vld [vmem:[%s690_s1 + $0xf0] sm:$0xff]  ;;  %v537_v11 = vld [vmem:[%s690_s1 + $0xe8] sm:$0xff] }
   0x5   :  { %340 = vmatpush.bf16.msra.mxu3 %v539_v3  ;;  %v512_v12 = vld [vmem:[%s690_s1 + $0x20] sm:$0xff]  ;;  %v511_v16 = vld [vmem:[%s690_s1 + $0x18] sm:$0xff]  ;;  %v510_v20 = vld [vmem:[%s690_s1 + $0x10] sm:$0xff] }
   0x6   :  { %299 = vmatpush.bf16.msra.mxu0 %v514_v4  ;;  %v520_v13 = vld [vmem:[%s690_s1 + $0x60] sm:$0xff]  ;;  %v519_v17 = vld [vmem:[%s690_s1 + $0x58] sm:$0xff]  ;;  %v518_v21 = vld [vmem:[%s690_s1 + $0x50] sm:$0xff] }
   0x7   :  { %313 = vmatpush.bf16.msra.mxu1 %v522_v5  ;;  %v528_v14 = vld [vmem:[%s690_s1 + $0xa0] sm:$0xff]  ;;  %v527_v18 = vld [vmem:[%s690_s1 + $0x98] sm:$0xff]  ;;  %v526_v22 = vld [vmem:[%s690_s1 + $0x90] sm:$0xff] }
   0x8   :  { %327 = vmatpush.bf16.msra.mxu2 %v530_v6  ;;  %v536_v15 = vld [vmem:[%s690_s1 + $0xe0] sm:$0xff]  ;;  %v535_v19 = vld [vmem:[%s690_s1 + $0xd8] sm:$0xff]  ;;  %v534_v23 = vld [vmem:[%s690_s1 + $0xd0] sm:$0xff] }
   0x9   :  { %341 = vmatpush.bf16.msra.mxu3 %v538_v7  ;;  %v509_v24 = vld [vmem:[%s690_s1 + $0x8] sm:$0xff]  ;;  %v508_v28 = vld [vmem:[%s690_s1] sm:$0xff]  ;;  %v506_v33 = vld [vmem:[%s692_s0 + $0xc] sm:$0xf0] }
   0xa   :  { %300 = vmatpush.bf16.msra.mxu0 %v513_v8  ;;  %v517_v25 = vld [vmem:[%s690_s1 + $0x48] sm:$0xff]  ;;  %v516_v29 = vld [vmem:[%s690_s1 + $0x40] sm:$0xff]  ;;  %v364_v35 = vld [vmem:[%s692_s0 + $0x10] sm:$0xf0] }
   0xb   :  { %314 = vmatpush.bf16.msra.mxu1 %v521_v9  ;;  %v525_v26 = vld [vmem:[%s690_s1 + $0x88] sm:$0xff]  ;;  %v524_v30 = vld [vmem:[%s690_s1 + $0x80] sm:$0xff]  ;;  %v507_v37 = vld [vmem:[%s692_s0 + $0x14] sm:$0xf0] }
   0xc   :  { %328 = vmatpush.bf16.msra.mxu2 %v529_v10  ;;  %v533_v27 = vld [vmem:[%s690_s1 + $0xc8] sm:$0xff]  ;;  %v532_v31 = vld [vmem:[%s690_s1 + $0xc0] sm:$0xff]  ;;  %v372_v39 = vld [vmem:[%s692_s0 + $0x18] sm:$0xf0] }
   0xd   :  { %342 = vmatpush.bf16.msra.mxu3 %v537_v11  ;;  %v362_v32 = vld [vmem:[%s692_s0] sm:$0xf]  ;;  %v504_v34 = vld [vmem:[%s692_s0 + $0x4] sm:$0xf]  ;;  %v370_v36 = vld [vmem:[%s692_s0 + $0x8] sm:$0xf] }
   0xe   :  { %301 = vmatpush.bf16.msra.mxu0 %v512_v12  ;;  %v505_v38 = vld [vmem:[%s692_s0 + $0xc] sm:$0xf]  ;;  %v363_v40 = vor.u32 %v506_v33, %v362_v32  ;;  %v367_v41 = vor.u32 %v504_v34, %v364_v35  ;;  %v371_v42 = vor.u32 %v507_v37, %v370_v36  ;;  %v540_v44 = vld [vmem:[%s691_s2] ss:$0 sm:$0xff] }
   0xf   :  { %315 = vmatpush.bf16.msra.mxu1 %v520_v13  ;;  %v375_v43 = vor.u32 %v505_v38, %v372_v39 }
  0x10   :  { %329 = vmatpush.bf16.msra.mxu2 %v528_v14 }
  0x11   :  { %343 = vmatpush.bf16.msra.mxu3 %v536_v15 }
  0x12   :  { %302 = vmatpush.bf16.msra.mxu0 %v511_v16 }
  0x13   :  { %316 = vmatpush.bf16.msra.mxu1 %v519_v17 }
  0x14   :  { %330 = vmatpush.bf16.msra.mxu2 %v527_v18 }
  0x15   :  { %344 = vmatpush.bf16.msra.mxu3 %v535_v19 }
  0x16   :  { %303 = vmatpush.bf16.msra.mxu0 %v510_v20 }
  0x17   :  { %317 = vmatpush.bf16.msra.mxu1 %v518_v21 }
  0x18   :  { %331 = vmatpush.bf16.msra.mxu2 %v526_v22 }
  0x19   :  { %345 = vmatpush.bf16.msra.mxu3 %v534_v23 }
  0x1a   :  { %304 = vmatpush.bf16.msra.mxu0 %v509_v24 }
  0x1b   :  { %318 = vmatpush.bf16.msra.mxu1 %v517_v25 }
  0x1c   :  { %332 = vmatpush.bf16.msra.mxu2 %v525_v26 }
  0x1d   :  { %346 = vmatpush.bf16.msra.mxu3 %v533_v27 }
  0x1e   :  { %305 = vmatpush.bf16.msra.mxu0 %v508_v28 }
  0x1f   :  { %319 = vmatpush.bf16.msra.mxu1 %v516_v29 }
  0x20   :  { %333 = vmatpush.bf16.msra.mxu2 %v524_v30 }
  0x21   :  { %347 = vmatpush.bf16.msra.mxu3 %v532_v31  ;;  %306 = vmatmul.bf16.vlgmr.msra.gmra.mxu0 %v363_v40 }
  0x22   :  { %320 = vmatmul.bf16.vlgmr.msra.gmra.mxu1 %v367_v41 }
  0x23   :  { %334 = vmatmul.bf16.vlgmr.msra.gmra.mxu2 %v371_v42 }
  0x24   :  { %348 = vmatmul.bf16.vlgmr.msra.gmra.mxu3 %v375_v43 }
  0x9e   :  { %v307_v45 = vpop.f32.mrf.mxu0 }
  0x9f   :  { %v308_v46 = vadd.f32 %v540_v44, %v307_v45  ;;  %v321_v47 = vpop.f32.mrf.mxu1 }
  0xa1   :  { %v322_v48 = vadd.f32 %v321_v47, %v308_v46 }
  0xa6   :  { %v335_v49 = vpop.f32.mrf.mxu2  ;;  %v309_v52 = vpop.f32.mrf.mxu0 }
  0xa7   :  { %v349_v50 = vpop.f32.mrf.mxu3  ;;  %v336_v51 = vadd.f32 %v335_v49, %v322_v48  ;;  %v310_v54 = vadd.f32 %v540_v44, %v309_v52  ;;  %v323_v55 = vpop.f32.mrf.mxu1 }
  0xa9   :  { %v350_v53 = vadd.f32 %v349_v50, %v336_v51  ;;  %v324_v56 = vadd.f32 %v323_v55, %v310_v54 }
  0xab   :  { %354 = vst [vmem:[%s693_s3] sm:$0xff] %v350_v53 }
  0xae   :  { %v337_v57 = vpop.f32.mrf.mxu2 }
  0xaf   :  { %v338_v58 = vadd.f32 %v337_v57, %v324_v56  ;;  %v351_v59 = vpop.f32.mrf.mxu3 }
  0xb1   :  { %v352_v60 = vadd.f32 %v351_v59, %v338_v58 }
  0xb3   :  { %355 = vst [vmem:[%s693_s3 + $0x8] sm:$0xff] %v352_v60 }

// kernel: gpt2_lm_forward.23
= control target key start
LH: loop header
LB: loop body
LE: loop exit
PB: predicated region body
PF: predicated region fallthrough
CT: control target
= control target key end

     0   :  { %s417_s0 = inlined_call_operand.vmem [shape: bf16[16,128], index: 0, kind: input, shape index: {}]   ;;  %s418_s1 = inlined_call_operand.vmem [shape: bf16[128,256], index: 1, kind: input, shape index: {}]   ;;  %s419_s2 = inlined_call_operand.vmem [shape: f32[1,256], index: 2, kind: input, shape index: {}]   ;;  %s420_s3 = inlined_call_operand.hbm [shape: f32[16,256], index: 3, kind: output, shape index: {}]  }
   0x1   :  { %v237_v0 = vld [vmem:[%s418_s1 + $0x70] sm:$0xf]  ;;  %v259_v1 = vld [vmem:[%s418_s1 + $0x74] sm:$0xf0]  ;;  %v258_v2 = vld [vmem:[%s418_s1 + $0x74] sm:$0xf] }
   0x2   :  { %v238_v3 = vor.u32 %v259_v1, %v237_v0  ;;  %v239_v4 = vld [vmem:[%s418_s1 + $0x78] sm:$0xf0]  ;;  %v229_v5 = vld [vmem:[%s418_s1 + $0x60] sm:$0xf]  ;;  %v257_v6 = vld [vmem:[%s418_s1 + $0x64] sm:$0xf0] }
   0x3   :  { %v242_v7 = vor.u32 %v258_v2, %v239_v4  ;;  %v256_v8 = vld [vmem:[%s418_s1 + $0x64] sm:$0xf]  ;;  %v231_v9 = vld [vmem:[%s418_s1 + $0x68] sm:$0xf0]  ;;  %v230_v10 = vor.u32 %v257_v6, %v229_v5  ;;  %v221_v12 = vld [vmem:[%s418_s1 + $0x50] sm:$0xf] }
   0x4   :  { %125 = vmatpush.bf16.msra.mxu0 %v238_v3  ;;  %v234_v11 = vor.u32 %v256_v8, %v231_v9  ;;  %v255_v13 = vld [vmem:[%s418_s1 + $0x54] sm:$0xf0]  ;;  %v254_v14 = vld [vmem:[%s418_s1 + $0x54] sm:$0xf]  ;;  %v223_v15 = vld [vmem:[%s418_s1 + $0x58] sm:$0xf0] }
   0x5   :  { %139 = vmatpush.bf16.msra.mxu1 %v242_v7  ;;  %v222_v16 = vor.u32 %v255_v13, %v221_v12  ;;  %v226_v17 = vor.u32 %v254_v14, %v223_v15  ;;  %v213_v18 = vld [vmem:[%s418_s1 + $0x40] sm:$0xf]  ;;  %v253_v19 = vld [vmem:[%s418_s1 + $0x44] sm:$0xf0]  ;;  %v252_v20 = vld [vmem:[%s418_s1 + $0x44] sm:$0xf] }
   0x6   :  { %v215_v21 = vld [vmem:[%s418_s1 + $0x48] sm:$0xf0]  ;;  %v214_v22 = vor.u32 %v253_v19, %v213_v18 }
   0x8   :  { %126 = vmatpush.bf16.msra.mxu0 %v230_v10 }
   0x9   :  { %140 = vmatpush.bf16.msra.mxu1 %v234_v11 }
   0xc   :  { %127 = vmatpush.bf16.msra.mxu0 %v222_v16 }
   0xd   :  { %8 = vsyncpa [#allocation3], 0  ;;  %141 = vmatpush.bf16.msra.mxu1 %v226_v17  ;;  %v218_v23 = vor.u32 %v252_v20, %v215_v21  ;;  %v205_v24 = vld [vmem:[%s418_s1 + $0x30] sm:$0xf]  ;;  %v251_v25 = vld [vmem:[%s418_s1 + $0x34] sm:$0xf0] }
   0xe   :  { %v250_v26 = vld [vmem:[%s418_s1 + $0x34] sm:$0xf]  ;;  %v207_v27 = vld [vmem:[%s418_s1 + $0x38] sm:$0xf0]  ;;  %v206_v28 = vor.u32 %v251_v25, %v205_v24  ;;  %v197_v30 = vld [vmem:[%s418_s1 + $0x20] sm:$0xf] }
   0xf   :  { %v210_v29 = vor.u32 %v250_v26, %v207_v27  ;;  %v249_v31 = vld [vmem:[%s418_s1 + $0x24] sm:$0xf0]  ;;  %v248_v32 = vld [vmem:[%s418_s1 + $0x24] sm:$0xf]  ;;  %v199_v33 = vld [vmem:[%s418_s1 + $0x28] sm:$0xf0] }
  0x10   :  { %128 = vmatpush.bf16.msra.mxu0 %v214_v22  ;;  %v198_v34 = vor.u32 %v249_v31, %v197_v30  ;;  %v202_v35 = vor.u32 %v248_v32, %v199_v33  ;;  %v189_v36 = vld [vmem:[%s418_s1 + $0x10] sm:$0xf]  ;;  %v247_v37 = vld [vmem:[%s418_s1 + $0x14] sm:$0xf0]  ;;  %v246_v38 = vld [vmem:[%s418_s1 + $0x14] sm:$0xf] }
  0x11   :  { %142 = vmatpush.bf16.msra.mxu1 %v218_v23  ;;  %v191_v39 = vld [vmem:[%s418_s1 + $0x18] sm:$0xf0]  ;;  %v190_v40 = vor.u32 %v247_v37, %v189_v36  ;;  %v181_v42 = vld [vmem:[%s418_s1] sm:$0xf]  ;;  %v245_v43 = vld [vmem:[%s418_s1 + $0x4] sm:$0xf0] }
  0x12   :  { %v194_v41 = vor.u32 %v246_v38, %v191_v39  ;;  %v244_v44 = vld [vmem:[%s418_s1 + $0x4] sm:$0xf]  ;;  %v183_v45 = vld [vmem:[%s418_s1 + $0x8] sm:$0xf0]  ;;  %v182_v46 = vor.u32 %v245_v43, %v181_v42  ;;  %v33_v49 = vld [vmem:[%s419_s2] sm:$0x3] }
  0x13   :  { %v186_v47 = vor.u32 %v244_v44, %v183_v45  ;;  %v243_v48 = vld [vmem:[%s417_s0] sm:$0xff]  ;;  %v35_v50 = vperm.slane %v33_v49, 0  ;;  %v36_v51 = vperm.slane %v33_v49, 1  ;;  %s289_s1 = smov [#allocation2]   ;;  %s163_s28 = sshll.u32 %s420_s3, 4  ;;  %s164_s28 = int_to_ptr.hbm [resolvable:$true] %s163_s28 }
  0x14   :  { %129 = vmatpush.bf16.msra.mxu0 %v206_v28  ;;  %s161_s26 = sshll.u32 %s289_s1, 4  ;;  %s290_s2 = smov 256   ;;  %s162_s26 = int_to_ptr.vmem [resolvable:$true] %s161_s26 }
  0x15   :  { %143 = vmatpush.bf16.msra.mxu1 %v210_v29  ;;  %s291_s29 = smov 16  }
  0x18   :  { %130 = vmatpush.bf16.msra.mxu0 %v198_v34 }
  0x19   :  { %144 = vmatpush.bf16.msra.mxu1 %v202_v35 }
  0x1c   :  { %131 = vmatpush.bf16.msra.mxu0 %v190_v40 }
  0x1d   :  { %145 = vmatpush.bf16.msra.mxu1 %v194_v41 }
  0x20   :  { %132 = vmatpush.bf16.msra.mxu0 %v182_v46 }
  0x21   :  { %146 = vmatpush.bf16.msra.mxu1 %v186_v47 }
  0x23   :  { %133 = vmatmul.bf16.vlgmr.msra.gmra.mxu0 %v243_v48 }
  0x24   :  { %147 = vmatmul.bf16.vlgmr.msra.gmra.mxu1 %v243_v48 }
  0xa0   :  { %v134_v52 = vpop.f32.mrf.mxu0 }
  0xa1   :  { %v135_v53 = vadd.f32 %v134_v52, %v35_v50  ;;  %v148_v54 = vpop.f32.mrf.mxu1 }
  0xa2   :  { %v149_v55 = vadd.f32 %v148_v54, %v36_v51 }
  0xa3   :  { %153 = vst [vmem:[#allocation2] sm:$0xff] %v135_v53 }
  0xa4   :  { %154 = vst [vmem:[#allocation2 + $0x8] sm:$0xff] %v149_v55 }
  0xa8   :  { %v136_v56 = vpop.f32.mrf.mxu0 }
  0xa9   :  { %v137_v57 = vadd.f32 %v136_v56, %v35_v50  ;;  %v150_v58 = vpop.f32.mrf.mxu1 }
  0xaa   :  { %v151_v59 = vadd.f32 %v150_v58, %v36_v51 }
  0xab   :  { %155 = vst [vmem:[#allocation2 + $0x10] sm:$0xff] %v137_v57 }
  0xac   :  { %156 = vst [vmem:[#allocation2 + $0x18] sm:$0xff] %v151_v59 }
  0xad   :  { %169 = dma.vmem_to_hbm [thread:$0]  %s162_s26, 512, %s164_s28, [#allocation3], %s290_s2, %s290_s2, %s291_s29  }
  0xae   :  { %287 = dma.done.wait [#allocation3], 512  }
  0xaf   :  { %288 = vsyncadd [#allocation3], 4294966784 }
  0xb0   :  { %174 = vsyncpa [#allocation3], 1 }

</bundles_post_ra>
